<compile_context>
chip_gen: v6e
topology: v6e:2x2x1
jax: 0.10.0
libtpu: 0.0.40
codegen_flags: <defaults>
</compile_context>

<pallas_src>
from functools import partial

import jax
import jax.numpy as jnp
from jax.experimental import pallas as pl
from jax.experimental.pallas import tpu as pltpu


def _silu(x):
    return x * jax.nn.sigmoid(x)


def _repeat_rows(x, r):
    """Repeat an (A, B, C) value r times along axis 0 (lane dim unchanged)."""
    a, b, c = x.shape
    return jnp.broadcast_to(x[:, None, :, :], (a, r, b, c)).reshape(a * r, b, c)


def _repeat_cols(x, r):
    """Repeat an (A, B, C) value r times along axis 1 (lane dim unchanged)."""
    a, b, c = x.shape
    return jnp.broadcast_to(x[:, :, None, :], (a, b, r, c)).reshape(a, b * r, c)


def _zero_halo(pad_ref, h, w, c):
    """Zero the 1-pixel border of an (h+2, w+2, c) padded scratch buffer."""
    zr = jnp.zeros((1, w + 2, c), jnp.float32)
    pad_ref[0:1, :, :] = zr
    pad_ref[h + 1:h + 2, :, :] = zr
    zc = jnp.zeros((h + 2, 1, c), jnp.float32)
    pad_ref[:, 0:1, :] = zc
    pad_ref[:, w + 1:w + 2, :] = zc


def decode_block_kernel(y_ref, skip_ref, w_up_ref, w_skip_ref, b_ref, *rest,
                        fuse_final):
    """Fused DecodeBlock forward for one batch element (grid axis = batch).

    y_ref     : (1, H/2, W/2, Cy)  low-res feature to upsample (nearest 2x)
    skip_ref  : (1, H,   W,   Cs)  skip connection at output resolution
    w_up_ref  : (9, Cy, Cout)      3x3 conv taps, upsampled branch, BN-scale folded
    w_skip_ref: (9, Cs, Cout)      3x3 conv taps, skip branch, BN-scale folded
    b_ref     : (1, Cout)          folded conv+BN bias
    if fuse_final:
      wf_ref  : (Cout, 4*ncls)     1x1 classifier weight (4 replicated copies)
      bf_ref  : (1, 4*ncls)        classifier bias (4 replicated copies)
      o_ref   : (1, 4H, 4W*ncls)   lane-dense, 4x-upsampled logits
    else:
      o_ref   : (1, H, W*Cout)     lane-dense block output
    pad_up, pad_skip : (H+2, W+2, C*) VMEM scratch (zero halo, interior rewritten)
    """
    if fuse_final:
        wf_ref, bf_ref, o_ref, pad_up, pad_skip = rest
    else:
        o_ref, pad_up, pad_skip = rest

    H, W, Cs = skip_ref.shape[1], skip_ref.shape[2], skip_ref.shape[3]
    Cy = y_ref.shape[3]
    Cout = b_ref.shape[1]

    # Halo-only zeroing keeps every grid step independent (safe with a
    # "parallel"/megacore-sharded batch axis); the interior is rewritten below.
    _zero_halo(pad_up, H, W, Cy)
    _zero_halo(pad_skip, H, W, Cs)

    # Nearest 2x upsample of the low-res branch, then write both branches into
    # their padded scratches.  Channel concat is implicit via split weights.
    up = _repeat_cols(_repeat_rows(y_ref[0], 2), 2)        # (H, W, Cy)
    pad_up[1:H + 1, 1:W + 1, :] = up
    pad_skip[1:H + 1, 1:W + 1, :] = skip_ref[0]

    pu = pad_up[...]                                       # load once, slice values
    ps = pad_skip[...]

    # 3x3 SAME conv as 9 shifted taps; each tap is a channel matmul on the MXU.
    acc = jnp.zeros((H * W, Cout), jnp.float32)
    for i in range(3):
        for j in range(3):
            t = i * 3 + j
            a = pu[i:i + H, j:j + W, :].reshape(H * W, Cy)
            s = ps[i:i + H, j:j + W, :].reshape(H * W, Cs)
            acc = acc + jnp.dot(a, w_up_ref[t],
                                preferred_element_type=jnp.float32)
            acc = acc + jnp.dot(s, w_skip_ref[t],
                                preferred_element_type=jnp.float32)

    out = _silu(acc + b_ref[...])                          # (H*W, Cout)

    if fuse_final:
        # 1x1 conv commutes with nearest upsampling: classify at low resolution.
        # The 4x column replication is baked into wf_ref (4 concatenated copies),
        # so each matmul output row already holds one group of 4 output pixels.
        k4 = bf_ref.shape[1]                               # 4 * n_classes
        lg = jnp.dot(out, wf_ref[...], preferred_element_type=jnp.float32)
        lg = (lg + bf_ref[...]).reshape(H, W, k4)
        rep = _repeat_rows(lg, 4)                          # (4H, W, 4*ncls)
        for w in range(W):                                 # lane-dense packed store
            o_ref[0, :, w * k4:(w + 1) * k4] = rep[:, w, :]
    else:
        out3 = out.reshape(H, W, Cout)
        for w in range(W):                                 # lane-dense packed store
            o_ref[0, :, w * Cout:(w + 1) * Cout] = out3[:, w, :]


def _full_spec(a):
    nd = a.ndim
    return pl.BlockSpec(a.shape, lambda n, _nd=nd: (0,) * _nd)


def decode_block(y, skip, w_up, w_skip, bias, *, final_w=None, final_b=None):
    """pallas_call wrapper for one DecodeBlock (optionally fused with the
    UNetHead 4x upsample + 1x1 classifier).  All tensors NHWC float32."""
    N, Hy, Wy, Cy = y.shape
    _, H, W, Cs = skip.shape
    assert H == 2 * Hy and W == 2 * Wy, (y.shape, skip.shape)
    Cout = bias.shape[1]
    fuse_final = final_w is not None

    weights = [w_up, w_skip, bias]
    if fuse_final:
        k4 = final_b.shape[1]                              # 4 * n_classes
        out_shape = jax.ShapeDtypeStruct((N, 4 * H, W * k4), jnp.float32)
        weights += [final_w, final_b]
    else:
        out_shape = jax.ShapeDtypeStruct((N, H, W * Cout), jnp.float32)
    out_block = (1,) + out_shape.shape[1:]

    return pl.pallas_call(
        partial(decode_block_kernel, fuse_final=fuse_final),
        out_shape=out_shape,
        grid_spec=pltpu.PrefetchScalarGridSpec(
            num_scalar_prefetch=0,
            grid=(N,),
            in_specs=[pl.BlockSpec((1, Hy, Wy, Cy), lambda n: (n, 0, 0, 0)),
                      pl.BlockSpec((1, H, W, Cs), lambda n: (n, 0, 0, 0))]
                     + [_full_spec(a) for a in weights],
            out_specs=pl.BlockSpec(out_block, lambda n: (n, 0, 0)),
            scratch_shapes=[pltpu.VMEM((H + 2, W + 2, Cy), jnp.float32),
                            pltpu.VMEM((H + 2, W + 2, Cs), jnp.float32)],
        ),
        # Batch elements are independent -> "parallel" lets v7x shard the grid
        # across its two TensorCores; neutral on v5e/v6e.
        compiler_params=pltpu.CompilerParams(dimension_semantics=("parallel",)),
    )(y, skip, *weights)


def unet_head_forward(feats, kparams):
    """UNetHead forward.  feats = [x4, x8, x16, x32] NHWC (strides 4..32)."""
    x4, x8, x16, x32 = feats
    skips = [x16, x8, x4]
    blocks = kparams["blocks"]
    n_classes = kparams["n_classes"]
    N = x32.shape[0]

    y = x32
    for i, (p, skip) in enumerate(zip(blocks, skips)):
        last = i == len(blocks) - 1
        if last:
            y = decode_block(y, skip, p["w_up"], p["w_skip"], p["b"],
                             final_w=kparams["final_w"],
                             final_b=kparams["final_b"])
        else:
            y = decode_block(y, skip, p["w_up"], p["w_skip"], p["b"])
            _, H, W, _ = skip.shape
            y = y.reshape(N, H, W, -1)        # unpack lane-dense layout (free)

    _, H4, W4, _ = x4.shape
    return y.reshape(N, 4 * H4, 4 * W4, n_classes)   # unpack lane-dense layout


def prepare_kernel_params(params, eps=1e-5):
    """Fold eval-mode BatchNorm into the conv weights/bias, split the 3x3 taps
    per concat branch, and pre-replicate the 1x1 classifier 4x (this bakes the
    4x nearest-upsample column replication into the matmul weights)."""
    blocks = []
    for p in params["blocks"]:
        scale = p["gamma"] / jnp.sqrt(p["var"] + eps)            # (Cout,)
        w = p["w"] * scale[None, None, :]                        # (9, Cin, Cout)
        bias = ((p["b"] - p["mean"]) * scale + p["beta"]).reshape(1, -1)
        cy = p["cy"]
        blocks.append(dict(w_up=w[:, :cy, :], w_skip=w[:, cy:, :], b=bias))
    wf, bf = params["final"]["w"], params["final"]["b"]
    final_w = jnp.concatenate([wf] * 4, axis=1)                  # (Cout, 4*ncls)
    final_b = jnp.concatenate([bf.reshape(1, -1)] * 4, axis=1)   # (1, 4*ncls)
    return dict(blocks=blocks, final_w=final_w, final_b=final_b,
                n_classes=int(bf.shape[0]))


def init_params(key, config, n_classes):
    """Deterministic synthetic UNetHead parameters (eval-mode BN running stats)."""
    blocks = []
    for i, (_stride, deconv, deconv_ch, conv_ch) in enumerate(config):
        assert not deconv, "deconv=True (ConvTranspose2d) branch not implemented"
        kk = jax.random.fold_in(key, i)
        cin, cout = deconv_ch + conv_ch, conv_ch
        std = 0.3 / (9 * cin) ** 0.5
        blocks.append(dict(
            w=(jax.random.normal(jax.random.fold_in(kk, 0), (9, cin, cout)) * std
               ).astype(jnp.float32),
            b=(jax.random.normal(jax.random.fold_in(kk, 1), (cout,)) * 0.05
               ).astype(jnp.float32),
            gamma=jax.random.uniform(jax.random.fold_in(kk, 2), (cout,),
                                     minval=0.7, maxval=1.3).astype(jnp.float32),
            beta=(jax.random.normal(jax.random.fold_in(kk, 3), (cout,)) * 0.1
                  ).astype(jnp.float32),
            mean=(jax.random.normal(jax.random.fold_in(kk, 4), (cout,)) * 0.1
                  ).astype(jnp.float32),
            var=jax.random.uniform(jax.random.fold_in(kk, 5), (cout,),
                                   minval=0.5, maxval=1.5).astype(jnp.float32),
            cy=deconv_ch))
    kf = jax.random.fold_in(key, 1000)
    c_last = config[-1][3]
    final = dict(
        w=(jax.random.normal(jax.random.fold_in(kf, 0), (c_last, n_classes))
           * (1.0 / c_last ** 0.5)).astype(jnp.float32),
        b=(jax.random.normal(jax.random.fold_in(kf, 1), (n_classes,)) * 0.05
           ).astype(jnp.float32))
    return dict(blocks=blocks, final=final)


# ----------------------------- pure-JAX reference -----------------------------
def ref_decode_block(y, skip, p, eps=1e-5):
    up = jnp.repeat(jnp.repeat(y, 2, axis=1), 2, axis=2)      # nearest 2x (NHWC)
    x = jnp.concatenate([up, skip], axis=-1)                  # cat((up, skip), C)
    N, H, W, _ = x.shape
    xp = jnp.pad(x, ((0, 0), (1, 1), (1, 1), (0, 0)))
    cout = p["b"].shape[0]
    acc = jnp.zeros((N, H, W, cout), jnp.float32)
    for i in range(3):
        for j in range(3):
            acc = acc + jnp.einsum("nhwc,cd->nhwd", xp[:, i:i + H, j:j + W, :],
                                   p["w"][i * 3 + j],
                                   precision=jax.lax.Precision.HIGHEST)
    acc = acc + p["b"]
    acc = (acc - p["mean"]) / jnp.sqrt(p["var"] + eps) * p["gamma"] + p["beta"]
    return _silu(acc)


def ref_unet_head(feats, params):
    x4, x8, x16, x32 = feats
    y = ref_decode_block(x32, x16, params["blocks"][0])
    y = ref_decode_block(y, x8, params["blocks"][1])
    y = ref_decode_block(y, x4, params["blocks"][2])
    y = jnp.repeat(jnp.repeat(y, 4, axis=1), 4, axis=2)       # nn.Upsample(4)
    y = jnp.einsum("nhwc,cd->nhwd", y, params["final"]["w"],
                   precision=jax.lax.Precision.HIGHEST) + params["final"]["b"]
    return y


if __name__ == "__main__":
    # UNetHead(n_classes=4) with the default config; backbone features (NHWC):
    #   x[-4]: stride 4, 24 ch    x[-3]: stride 8, 40 ch
    #   x[-2]: stride 16, 112 ch  x[-1]: stride 32, 320 ch
    config = [[32, False, 320, 112], [16, False, 112, 40], [8, False, 40, 24]]
    n_classes = 4
    N, s32 = 2, 2                       # batch, spatial size of the stride-32 map

    key = jax.random.PRNGKey(0)
    params = init_params(key, config, n_classes)
    kparams = prepare_kernel_params(params)

    chans = [24, 40, 112, 320]          # x4, x8, x16, x32
    sizes = [8 * s32, 4 * s32, 2 * s32, s32]
    feats = [jax.random.normal(jax.random.fold_in(key, 100 + i), (N, s, s, c),
                               jnp.float32)
             for i, (c, s) in enumerate(zip(chans, sizes))]

    out = unet_head_forward(feats, kparams)
    out = jax.block_until_ready(out)
    assert out.shape == (N, 4 * sizes[0], 4 * sizes[0], n_classes), out.shape

    ref = ref_unet_head(feats, params)
    err = float(jnp.max(jnp.abs(out - ref)))
    scale = float(jnp.max(jnp.abs(ref))) + 1e-6
    assert err / scale < 2e-2, f"relative error {err / scale}"
    print("KERNEL_OK")
</pallas_src>

<mosaic_0001>
module attributes {stable_mosaic.version = 11 : i64} {
  func.func @decode_block_kernel(%arg0: i32, %arg1: memref<1x2x2x320xf32, #tpu.memory_space<vmem>>, %arg2: memref<1x4x4x112xf32, #tpu.memory_space<vmem>>, %arg3: memref<9x320x112xf32, #tpu.memory_space<vmem>>, %arg4: memref<9x112x112xf32, #tpu.memory_space<vmem>>, %arg5: memref<1x112xf32, #tpu.memory_space<vmem>>, %arg6: memref<1x4x448xf32, #tpu.memory_space<vmem>>, %arg7: memref<6x6x320xf32, #tpu.memory_space<vmem>>, %arg8: memref<6x6x112xf32, #tpu.memory_space<vmem>>) attributes {dimension_semantics = [#tpu.dimension_semantics<parallel>], iteration_bounds = array<i64: 2>, scalar_prefetch = 0 : i64, scratch_operands = 2 : i64, tpu.core_type = #tpu.core_type<tc>, window_params = [{transform_indices = @transform_0, window_bounds = array<i64: 1, 2, 2, 320>}, {transform_indices = @transform_1, window_bounds = array<i64: 1, 4, 4, 112>}, {pipeline_mode = #tpu.pipeline_mode<synchronous>, transform_indices = @transform_2, window_bounds = array<i64: 9, 320, 112>}, {pipeline_mode = #tpu.pipeline_mode<synchronous>, transform_indices = @transform_3, window_bounds = array<i64: 9, 112, 112>}, {pipeline_mode = #tpu.pipeline_mode<synchronous>, transform_indices = @transform_4, window_bounds = array<i64: 1, 112>}, {transform_indices = @transform_5, window_bounds = array<i64: 1, 4, 448>}]} {
    %cst = arith.constant 0.000000e+00 : f32
    %0 = vector.broadcast %cst : f32 to vector<1x6x320xf32>
    %c0 = arith.constant 0 : index
    %c0_0 = arith.constant 0 : index
    %c0_1 = arith.constant 0 : index
    %1 = vector.load %arg7[%c0, %c0_0, %c0_1] : memref<6x6x320xf32, #tpu.memory_space<vmem>>, vector<1x6x320xf32>
    tpu.vector_store %arg7[%c0, %c0_0, %c0_1], %0 {strides = array<i32>} : memref<6x6x320xf32, #tpu.memory_space<vmem>>, vector<1x6x320xf32>,
    %c5 = arith.constant 5 : index
    %c0_2 = arith.constant 0 : index
    %c0_3 = arith.constant 0 : index
    %2 = vector.load %arg7[%c5, %c0_2, %c0_3] : memref<6x6x320xf32, #tpu.memory_space<vmem>>, vector<1x6x320xf32>
    tpu.vector_store %arg7[%c5, %c0_2, %c0_3], %0 {strides = array<i32>} : memref<6x6x320xf32, #tpu.memory_space<vmem>>, vector<1x6x320xf32>,
    %cst_4 = arith.constant 0.000000e+00 : f32
    %3 = vector.broadcast %cst_4 : f32 to vector<6x1x320xf32>
    %c0_5 = arith.constant 0 : index
    %c0_6 = arith.constant 0 : index
    %c0_7 = arith.constant 0 : index
    %4 = vector.load %arg7[%c0_5, %c0_6, %c0_7] : memref<6x6x320xf32, #tpu.memory_space<vmem>>, vector<6x1x320xf32>
    tpu.vector_store %arg7[%c0_5, %c0_6, %c0_7], %3 {strides = array<i32>} : memref<6x6x320xf32, #tpu.memory_space<vmem>>, vector<6x1x320xf32>,
    %c0_8 = arith.constant 0 : index
    %c5_9 = arith.constant 5 : index
    %c0_10 = arith.constant 0 : index
    %5 = vector.load %arg7[%c0_8, %c5_9, %c0_10] : memref<6x6x320xf32, #tpu.memory_space<vmem>>, vector<6x1x320xf32>
    tpu.vector_store %arg7[%c0_8, %c5_9, %c0_10], %3 {strides = array<i32>} : memref<6x6x320xf32, #tpu.memory_space<vmem>>, vector<6x1x320xf32>,
    %cst_11 = arith.constant 0.000000e+00 : f32
    %6 = vector.broadcast %cst_11 : f32 to vector<1x6x112xf32>
    %c0_12 = arith.constant 0 : index
    %c0_13 = arith.constant 0 : index
    %c0_14 = arith.constant 0 : index
    %7 = vector.load %arg8[%c0_12, %c0_13, %c0_14] : memref<6x6x112xf32, #tpu.memory_space<vmem>>, vector<1x6x112xf32>
    tpu.vector_store %arg8[%c0_12, %c0_13, %c0_14], %6 {strides = array<i32>} : memref<6x6x112xf32, #tpu.memory_space<vmem>>, vector<1x6x112xf32>,
    %c5_15 = arith.constant 5 : index
    %c0_16 = arith.constant 0 : index
    %c0_17 = arith.constant 0 : index
    %8 = vector.load %arg8[%c5_15, %c0_16, %c0_17] : memref<6x6x112xf32, #tpu.memory_space<vmem>>, vector<1x6x112xf32>
    tpu.vector_store %arg8[%c5_15, %c0_16, %c0_17], %6 {strides = array<i32>} : memref<6x6x112xf32, #tpu.memory_space<vmem>>, vector<1x6x112xf32>,
    %cst_18 = arith.constant 0.000000e+00 : f32
    %9 = vector.broadcast %cst_18 : f32 to vector<6x1x112xf32>
    %c0_19 = arith.constant 0 : index
    %c0_20 = arith.constant 0 : index
    %c0_21 = arith.constant 0 : index
    %10 = vector.load %arg8[%c0_19, %c0_20, %c0_21] : memref<6x6x112xf32, #tpu.memory_space<vmem>>, vector<6x1x112xf32>
    tpu.vector_store %arg8[%c0_19, %c0_20, %c0_21], %9 {strides = array<i32>} : memref<6x6x112xf32, #tpu.memory_space<vmem>>, vector<6x1x112xf32>,
    %c0_22 = arith.constant 0 : index
    %c5_23 = arith.constant 5 : index
    %c0_24 = arith.constant 0 : index
    %11 = vector.load %arg8[%c0_22, %c5_23, %c0_24] : memref<6x6x112xf32, #tpu.memory_space<vmem>>, vector<6x1x112xf32>
    tpu.vector_store %arg8[%c0_22, %c5_23, %c0_24], %9 {strides = array<i32>} : memref<6x6x112xf32, #tpu.memory_space<vmem>>, vector<6x1x112xf32>,
    %c0_25 = arith.constant 0 : index
    %c0_26 = arith.constant 0 : index
    %c0_27 = arith.constant 0 : index
    %c0_28 = arith.constant 0 : index
    %12 = vector.load %arg1[%c0_25, %c0_26, %c0_27, %c0_28] : memref<1x2x2x320xf32, #tpu.memory_space<vmem>>, vector<1x2x2x320xf32>
    %13 = vector.shape_cast %12 : vector<1x2x2x320xf32> to vector<2x2x320xf32>
    %14 = vector.shape_cast %13 : vector<2x2x320xf32> to vector<2x1x2x320xf32>
    %15 = vector.shape_cast %14 : vector<2x1x2x320xf32> to vector<2x1x2x320xf32>
    %16 = vector.broadcast %15 : vector<2x1x2x320xf32> to vector<2x2x2x320xf32>
    %17 = vector.shape_cast %16 : vector<2x2x2x320xf32> to vector<4x2x320xf32>
    %18 = vector.shape_cast %17 : vector<4x2x320xf32> to vector<4x2x1x320xf32>
    %19 = vector.shape_cast %18 : vector<4x2x1x320xf32> to vector<4x2x1x320xf32>
    %20 = vector.broadcast %19 : vector<4x2x1x320xf32> to vector<4x2x2x320xf32>
    %21 = vector.shape_cast %20 : vector<4x2x2x320xf32> to vector<4x4x320xf32>
    %c1 = arith.constant 1 : index
    %c1_29 = arith.constant 1 : index
    %c0_30 = arith.constant 0 : index
    %22 = vector.load %arg7[%c1, %c1_29, %c0_30] : memref<6x6x320xf32, #tpu.memory_space<vmem>>, vector<4x4x320xf32>
    tpu.vector_store %arg7[%c1, %c1_29, %c0_30], %21 {strides = array<i32>} : memref<6x6x320xf32, #tpu.memory_space<vmem>>, vector<4x4x320xf32>,
    %c0_31 = arith.constant 0 : index
    %c0_32 = arith.constant 0 : index
    %c0_33 = arith.constant 0 : index
    %c0_34 = arith.constant 0 : index
    %23 = vector.load %arg2[%c0_31, %c0_32, %c0_33, %c0_34] : memref<1x4x4x112xf32, #tpu.memory_space<vmem>>, vector<1x4x4x112xf32>
    %24 = vector.shape_cast %23 : vector<1x4x4x112xf32> to vector<4x4x112xf32>
    %c1_35 = arith.constant 1 : index
    %c1_36 = arith.constant 1 : index
    %c0_37 = arith.constant 0 : index
    %25 = vector.load %arg8[%c1_35, %c1_36, %c0_37] : memref<6x6x112xf32, #tpu.memory_space<vmem>>, vector<4x4x112xf32>
    tpu.vector_store %arg8[%c1_35, %c1_36, %c0_37], %24 {strides = array<i32>} : memref<6x6x112xf32, #tpu.memory_space<vmem>>, vector<4x4x112xf32>,
    %c0_38 = arith.constant 0 : index
    %c0_39 = arith.constant 0 : index
    %c0_40 = arith.constant 0 : index
    %26 = vector.load %arg7[%c0_38, %c0_39, %c0_40] : memref<6x6x320xf32, #tpu.memory_space<vmem>>, vector<6x6x320xf32>
    %c0_41 = arith.constant 0 : index
    %c0_42 = arith.constant 0 : index
    %c0_43 = arith.constant 0 : index
    %27 = vector.load %arg8[%c0_41, %c0_42, %c0_43] : memref<6x6x112xf32, #tpu.memory_space<vmem>>, vector<6x6x112xf32>
    %cst_44 = arith.constant 0.000000e+00 : f32
    %28 = vector.broadcast %cst_44 : f32 to vector<16x112xf32>
    %29 = vector.extract_strided_slice %26 {offsets = [0, 0, 0], sizes = [4, 4, 320], strides = [1, 1, 1]} : vector<6x6x320xf32> to vector<4x4x320xf32>
    %30 = vector.shape_cast %29 : vector<4x4x320xf32> to vector<16x320xf32>
    %31 = vector.extract_strided_slice %27 {offsets = [0, 0, 0], sizes = [4, 4, 112], strides = [1, 1, 1]} : vector<6x6x112xf32> to vector<4x4x112xf32>
    %32 = vector.shape_cast %31 : vector<4x4x112xf32> to vector<16x112xf32>
    %c0_45 = arith.constant 0 : index
    %c0_46 = arith.constant 0 : index
    %c0_47 = arith.constant 0 : index
    %33 = vector.load %arg3[%c0_45, %c0_46, %c0_47] : memref<9x320x112xf32, #tpu.memory_space<vmem>>, vector<1x320x112xf32>
    %34 = vector.shape_cast %33 : vector<1x320x112xf32> to vector<320x112xf32>
    %cst_48 = arith.constant dense<0.000000e+00> : vector<16x112xf32>
    %35 = tpu.matmul %30, %34, %cst_48 {dimension_numbers = #tpu.dot_dimension_numbers<[1], [0], [0], [1], [0, 0, 1, 1], [], []>} : vector<16x320xf32>, vector<320x112xf32>, vector<16x112xf32> -> vector<16x112xf32>
    %36 = arith.addf %28, %35 : vector<16x112xf32>
    %c0_49 = arith.constant 0 : index
    %c0_50 = arith.constant 0 : index
    %c0_51 = arith.constant 0 : index
    %37 = vector.load %arg4[%c0_49, %c0_50, %c0_51] : memref<9x112x112xf32, #tpu.memory_space<vmem>>, vector<1x112x112xf32>
    %38 = vector.shape_cast %37 : vector<1x112x112xf32> to vector<112x112xf32>
    %cst_52 = arith.constant dense<0.000000e+00> : vector<16x112xf32>
    %39 = tpu.matmul %32, %38, %cst_52 {dimension_numbers = #tpu.dot_dimension_numbers<[1], [0], [0], [1], [0, 0, 1, 1], [], []>} : vector<16x112xf32>, vector<112x112xf32>, vector<16x112xf32> -> vector<16x112xf32>
    %40 = arith.addf %36, %39 : vector<16x112xf32>
    %41 = vector.extract_strided_slice %26 {offsets = [0, 1, 0], sizes = [4, 4, 320], strides = [1, 1, 1]} : vector<6x6x320xf32> to vector<4x4x320xf32>
    %42 = vector.shape_cast %41 : vector<4x4x320xf32> to vector<16x320xf32>
    %43 = vector.extract_strided_slice %27 {offsets = [0, 1, 0], sizes = [4, 4, 112], strides = [1, 1, 1]} : vector<6x6x112xf32> to vector<4x4x112xf32>
    %44 = vector.shape_cast %43 : vector<4x4x112xf32> to vector<16x112xf32>
    %c1_53 = arith.constant 1 : index
    %c0_54 = arith.constant 0 : index
    %c0_55 = arith.constant 0 : index
    %45 = vector.load %arg3[%c1_53, %c0_54, %c0_55] : memref<9x320x112xf32, #tpu.memory_space<vmem>>, vector<1x320x112xf32>
    %46 = vector.shape_cast %45 : vector<1x320x112xf32> to vector<320x112xf32>
    %cst_56 = arith.constant dense<0.000000e+00> : vector<16x112xf32>
    %47 = tpu.matmul %42, %46, %cst_56 {dimension_numbers = #tpu.dot_dimension_numbers<[1], [0], [0], [1], [0, 0, 1, 1], [], []>} : vector<16x320xf32>, vector<320x112xf32>, vector<16x112xf32> -> vector<16x112xf32>
    %48 = arith.addf %40, %47 : vector<16x112xf32>
    %c1_57 = arith.constant 1 : index
    %c0_58 = arith.constant 0 : index
    %c0_59 = arith.constant 0 : index
    %49 = vector.load %arg4[%c1_57, %c0_58, %c0_59] : memref<9x112x112xf32, #tpu.memory_space<vmem>>, vector<1x112x112xf32>
    %50 = vector.shape_cast %49 : vector<1x112x112xf32> to vector<112x112xf32>
    %cst_60 = arith.constant dense<0.000000e+00> : vector<16x112xf32>
    %51 = tpu.matmul %44, %50, %cst_60 {dimension_numbers = #tpu.dot_dimension_numbers<[1], [0], [0], [1], [0, 0, 1, 1], [], []>} : vector<16x112xf32>, vector<112x112xf32>, vector<16x112xf32> -> vector<16x112xf32>
    %52 = arith.addf %48, %51 : vector<16x112xf32>
    %53 = vector.extract_strided_slice %26 {offsets = [0, 2, 0], sizes = [4, 4, 320], strides = [1, 1, 1]} : vector<6x6x320xf32> to vector<4x4x320xf32>
    %54 = vector.shape_cast %53 : vector<4x4x320xf32> to vector<16x320xf32>
    %55 = vector.extract_strided_slice %27 {offsets = [0, 2, 0], sizes = [4, 4, 112], strides = [1, 1, 1]} : vector<6x6x112xf32> to vector<4x4x112xf32>
    %56 = vector.shape_cast %55 : vector<4x4x112xf32> to vector<16x112xf32>
    %c2 = arith.constant 2 : index
    %c0_61 = arith.constant 0 : index
    %c0_62 = arith.constant 0 : index
    %57 = vector.load %arg3[%c2, %c0_61, %c0_62] : memref<9x320x112xf32, #tpu.memory_space<vmem>>, vector<1x320x112xf32>
    %58 = vector.shape_cast %57 : vector<1x320x112xf32> to vector<320x112xf32>
    %cst_63 = arith.constant dense<0.000000e+00> : vector<16x112xf32>
    %59 = tpu.matmul %54, %58, %cst_63 {dimension_numbers = #tpu.dot_dimension_numbers<[1], [0], [0], [1], [0, 0, 1, 1], [], []>} : vector<16x320xf32>, vector<320x112xf32>, vector<16x112xf32> -> vector<16x112xf32>
    %60 = arith.addf %52, %59 : vector<16x112xf32>
    %c2_64 = arith.constant 2 : index
    %c0_65 = arith.constant 0 : index
    %c0_66 = arith.constant 0 : index
    %61 = vector.load %arg4[%c2_64, %c0_65, %c0_66] : memref<9x112x112xf32, #tpu.memory_space<vmem>>, vector<1x112x112xf32>
    %62 = vector.shape_cast %61 : vector<1x112x112xf32> to vector<112x112xf32>
    %cst_67 = arith.constant dense<0.000000e+00> : vector<16x112xf32>
    %63 = tpu.matmul %56, %62, %cst_67 {dimension_numbers = #tpu.dot_dimension_numbers<[1], [0], [0], [1], [0, 0, 1, 1], [], []>} : vector<16x112xf32>, vector<112x112xf32>, vector<16x112xf32> -> vector<16x112xf32>
    %64 = arith.addf %60, %63 : vector<16x112xf32>
    %65 = vector.extract_strided_slice %26 {offsets = [1, 0, 0], sizes = [4, 4, 320], strides = [1, 1, 1]} : vector<6x6x320xf32> to vector<4x4x320xf32>
    %66 = vector.shape_cast %65 : vector<4x4x320xf32> to vector<16x320xf32>
    %67 = vector.extract_strided_slice %27 {offsets = [1, 0, 0], sizes = [4, 4, 112], strides = [1, 1, 1]} : vector<6x6x112xf32> to vector<4x4x112xf32>
    %68 = vector.shape_cast %67 : vector<4x4x112xf32> to vector<16x112xf32>
    %c3 = arith.constant 3 : index
    %c0_68 = arith.constant 0 : index
    %c0_69 = arith.constant 0 : index
    %69 = vector.load %arg3[%c3, %c0_68, %c0_69] : memref<9x320x112xf32, #tpu.memory_space<vmem>>, vector<1x320x112xf32>
    %70 = vector.shape_cast %69 : vector<1x320x112xf32> to vector<320x112xf32>
    %cst_70 = arith.constant dense<0.000000e+00> : vector<16x112xf32>
    %71 = tpu.matmul %66, %70, %cst_70 {dimension_numbers = #tpu.dot_dimension_numbers<[1], [0], [0], [1], [0, 0, 1, 1], [], []>} : vector<16x320xf32>, vector<320x112xf32>, vector<16x112xf32> -> vector<16x112xf32>
    %72 = arith.addf %64, %71 : vector<16x112xf32>
    %c3_71 = arith.constant 3 : index
    %c0_72 = arith.constant 0 : index
    %c0_73 = arith.constant 0 : index
    %73 = vector.load %arg4[%c3_71, %c0_72, %c0_73] : memref<9x112x112xf32, #tpu.memory_space<vmem>>, vector<1x112x112xf32>
    %74 = vector.shape_cast %73 : vector<1x112x112xf32> to vector<112x112xf32>
    %cst_74 = arith.constant dense<0.000000e+00> : vector<16x112xf32>
    %75 = tpu.matmul %68, %74, %cst_74 {dimension_numbers = #tpu.dot_dimension_numbers<[1], [0], [0], [1], [0, 0, 1, 1], [], []>} : vector<16x112xf32>, vector<112x112xf32>, vector<16x112xf32> -> vector<16x112xf32>
    %76 = arith.addf %72, %75 : vector<16x112xf32>
    %77 = vector.extract_strided_slice %26 {offsets = [1, 1, 0], sizes = [4, 4, 320], strides = [1, 1, 1]} : vector<6x6x320xf32> to vector<4x4x320xf32>
    %78 = vector.shape_cast %77 : vector<4x4x320xf32> to vector<16x320xf32>
    %79 = vector.extract_strided_slice %27 {offsets = [1, 1, 0], sizes = [4, 4, 112], strides = [1, 1, 1]} : vector<6x6x112xf32> to vector<4x4x112xf32>
    %80 = vector.shape_cast %79 : vector<4x4x112xf32> to vector<16x112xf32>
    %c4 = arith.constant 4 : index
    %c0_75 = arith.constant 0 : index
    %c0_76 = arith.constant 0 : index
    %81 = vector.load %arg3[%c4, %c0_75, %c0_76] : memref<9x320x112xf32, #tpu.memory_space<vmem>>, vector<1x320x112xf32>
    %82 = vector.shape_cast %81 : vector<1x320x112xf32> to vector<320x112xf32>
    %cst_77 = arith.constant dense<0.000000e+00> : vector<16x112xf32>
    %83 = tpu.matmul %78, %82, %cst_77 {dimension_numbers = #tpu.dot_dimension_numbers<[1], [0], [0], [1], [0, 0, 1, 1], [], []>} : vector<16x320xf32>, vector<320x112xf32>, vector<16x112xf32> -> vector<16x112xf32>
    %84 = arith.addf %76, %83 : vector<16x112xf32>
    %c4_78 = arith.constant 4 : index
    %c0_79 = arith.constant 0 : index
    %c0_80 = arith.constant 0 : index
    %85 = vector.load %arg4[%c4_78, %c0_79, %c0_80] : memref<9x112x112xf32, #tpu.memory_space<vmem>>, vector<1x112x112xf32>
    %86 = vector.shape_cast %85 : vector<1x112x112xf32> to vector<112x112xf32>
    %cst_81 = arith.constant dense<0.000000e+00> : vector<16x112xf32>
    %87 = tpu.matmul %80, %86, %cst_81 {dimension_numbers = #tpu.dot_dimension_numbers<[1], [0], [0], [1], [0, 0, 1, 1], [], []>} : vector<16x112xf32>, vector<112x112xf32>, vector<16x112xf32> -> vector<16x112xf32>
    %88 = arith.addf %84, %87 : vector<16x112xf32>
    %89 = vector.extract_strided_slice %26 {offsets = [1, 2, 0], sizes = [4, 4, 320], strides = [1, 1, 1]} : vector<6x6x320xf32> to vector<4x4x320xf32>
    %90 = vector.shape_cast %89 : vector<4x4x320xf32> to vector<16x320xf32>
    %91 = vector.extract_strided_slice %27 {offsets = [1, 2, 0], sizes = [4, 4, 112], strides = [1, 1, 1]} : vector<6x6x112xf32> to vector<4x4x112xf32>
    %92 = vector.shape_cast %91 : vector<4x4x112xf32> to vector<16x112xf32>
    %c5_82 = arith.constant 5 : index
    %c0_83 = arith.constant 0 : index
    %c0_84 = arith.constant 0 : index
    %93 = vector.load %arg3[%c5_82, %c0_83, %c0_84] : memref<9x320x112xf32, #tpu.memory_space<vmem>>, vector<1x320x112xf32>
    %94 = vector.shape_cast %93 : vector<1x320x112xf32> to vector<320x112xf32>
    %cst_85 = arith.constant dense<0.000000e+00> : vector<16x112xf32>
    %95 = tpu.matmul %90, %94, %cst_85 {dimension_numbers = #tpu.dot_dimension_numbers<[1], [0], [0], [1], [0, 0, 1, 1], [], []>} : vector<16x320xf32>, vector<320x112xf32>, vector<16x112xf32> -> vector<16x112xf32>
    %96 = arith.addf %88, %95 : vector<16x112xf32>
    %c5_86 = arith.constant 5 : index
    %c0_87 = arith.constant 0 : index
    %c0_88 = arith.constant 0 : index
    %97 = vector.load %arg4[%c5_86, %c0_87, %c0_88] : memref<9x112x112xf32, #tpu.memory_space<vmem>>, vector<1x112x112xf32>
    %98 = vector.shape_cast %97 : vector<1x112x112xf32> to vector<112x112xf32>
    %cst_89 = arith.constant dense<0.000000e+00> : vector<16x112xf32>
    %99 = tpu.matmul %92, %98, %cst_89 {dimension_numbers = #tpu.dot_dimension_numbers<[1], [0], [0], [1], [0, 0, 1, 1], [], []>} : vector<16x112xf32>, vector<112x112xf32>, vector<16x112xf32> -> vector<16x112xf32>
    %100 = arith.addf %96, %99 : vector<16x112xf32>
    %101 = vector.extract_strided_slice %26 {offsets = [2, 0, 0], sizes = [4, 4, 320], strides = [1, 1, 1]} : vector<6x6x320xf32> to vector<4x4x320xf32>
    %102 = vector.shape_cast %101 : vector<4x4x320xf32> to vector<16x320xf32>
    %103 = vector.extract_strided_slice %27 {offsets = [2, 0, 0], sizes = [4, 4, 112], strides = [1, 1, 1]} : vector<6x6x112xf32> to vector<4x4x112xf32>
    %104 = vector.shape_cast %103 : vector<4x4x112xf32> to vector<16x112xf32>
    %c6 = arith.constant 6 : index
    %c0_90 = arith.constant 0 : index
    %c0_91 = arith.constant 0 : index
    %105 = vector.load %arg3[%c6, %c0_90, %c0_91] : memref<9x320x112xf32, #tpu.memory_space<vmem>>, vector<1x320x112xf32>
    %106 = vector.shape_cast %105 : vector<1x320x112xf32> to vector<320x112xf32>
    %cst_92 = arith.constant dense<0.000000e+00> : vector<16x112xf32>
    %107 = tpu.matmul %102, %106, %cst_92 {dimension_numbers = #tpu.dot_dimension_numbers<[1], [0], [0], [1], [0, 0, 1, 1], [], []>} : vector<16x320xf32>, vector<320x112xf32>, vector<16x112xf32> -> vector<16x112xf32>
    %108 = arith.addf %100, %107 : vector<16x112xf32>
    %c6_93 = arith.constant 6 : index
    %c0_94 = arith.constant 0 : index
    %c0_95 = arith.constant 0 : index
    %109 = vector.load %arg4[%c6_93, %c0_94, %c0_95] : memref<9x112x112xf32, #tpu.memory_space<vmem>>, vector<1x112x112xf32>
    %110 = vector.shape_cast %109 : vector<1x112x112xf32> to vector<112x112xf32>
    %cst_96 = arith.constant dense<0.000000e+00> : vector<16x112xf32>
    %111 = tpu.matmul %104, %110, %cst_96 {dimension_numbers = #tpu.dot_dimension_numbers<[1], [0], [0], [1], [0, 0, 1, 1], [], []>} : vector<16x112xf32>, vector<112x112xf32>, vector<16x112xf32> -> vector<16x112xf32>
    %112 = arith.addf %108, %111 : vector<16x112xf32>
    %113 = vector.extract_strided_slice %26 {offsets = [2, 1, 0], sizes = [4, 4, 320], strides = [1, 1, 1]} : vector<6x6x320xf32> to vector<4x4x320xf32>
    %114 = vector.shape_cast %113 : vector<4x4x320xf32> to vector<16x320xf32>
    %115 = vector.extract_strided_slice %27 {offsets = [2, 1, 0], sizes = [4, 4, 112], strides = [1, 1, 1]} : vector<6x6x112xf32> to vector<4x4x112xf32>
    %116 = vector.shape_cast %115 : vector<4x4x112xf32> to vector<16x112xf32>
    %c7 = arith.constant 7 : index
    %c0_97 = arith.constant 0 : index
    %c0_98 = arith.constant 0 : index
    %117 = vector.load %arg3[%c7, %c0_97, %c0_98] : memref<9x320x112xf32, #tpu.memory_space<vmem>>, vector<1x320x112xf32>
    %118 = vector.shape_cast %117 : vector<1x320x112xf32> to vector<320x112xf32>
    %cst_99 = arith.constant dense<0.000000e+00> : vector<16x112xf32>
    %119 = tpu.matmul %114, %118, %cst_99 {dimension_numbers = #tpu.dot_dimension_numbers<[1], [0], [0], [1], [0, 0, 1, 1], [], []>} : vector<16x320xf32>, vector<320x112xf32>, vector<16x112xf32> -> vector<16x112xf32>
    %120 = arith.addf %112, %119 : vector<16x112xf32>
    %c7_100 = arith.constant 7 : index
    %c0_101 = arith.constant 0 : index
    %c0_102 = arith.constant 0 : index
    %121 = vector.load %arg4[%c7_100, %c0_101, %c0_102] : memref<9x112x112xf32, #tpu.memory_space<vmem>>, vector<1x112x112xf32>
    %122 = vector.shape_cast %121 : vector<1x112x112xf32> to vector<112x112xf32>
    %cst_103 = arith.constant dense<0.000000e+00> : vector<16x112xf32>
    %123 = tpu.matmul %116, %122, %cst_103 {dimension_numbers = #tpu.dot_dimension_numbers<[1], [0], [0], [1], [0, 0, 1, 1], [], []>} : vector<16x112xf32>, vector<112x112xf32>, vector<16x112xf32> -> vector<16x112xf32>
    %124 = arith.addf %120, %123 : vector<16x112xf32>
    %125 = vector.extract_strided_slice %26 {offsets = [2, 2, 0], sizes = [4, 4, 320], strides = [1, 1, 1]} : vector<6x6x320xf32> to vector<4x4x320xf32>
    %126 = vector.shape_cast %125 : vector<4x4x320xf32> to vector<16x320xf32>
    %127 = vector.extract_strided_slice %27 {offsets = [2, 2, 0], sizes = [4, 4, 112], strides = [1, 1, 1]} : vector<6x6x112xf32> to vector<4x4x112xf32>
    %128 = vector.shape_cast %127 : vector<4x4x112xf32> to vector<16x112xf32>
    %c8 = arith.constant 8 : index
    %c0_104 = arith.constant 0 : index
    %c0_105 = arith.constant 0 : index
    %129 = vector.load %arg3[%c8, %c0_104, %c0_105] : memref<9x320x112xf32, #tpu.memory_space<vmem>>, vector<1x320x112xf32>
    %130 = vector.shape_cast %129 : vector<1x320x112xf32> to vector<320x112xf32>
    %cst_106 = arith.constant dense<0.000000e+00> : vector<16x112xf32>
    %131 = tpu.matmul %126, %130, %cst_106 {dimension_numbers = #tpu.dot_dimension_numbers<[1], [0], [0], [1], [0, 0, 1, 1], [], []>} : vector<16x320xf32>, vector<320x112xf32>, vector<16x112xf32> -> vector<16x112xf32>
    %132 = arith.addf %124, %131 : vector<16x112xf32>
    %c8_107 = arith.constant 8 : index
    %c0_108 = arith.constant 0 : index
    %c0_109 = arith.constant 0 : index
    %133 = vector.load %arg4[%c8_107, %c0_108, %c0_109] : memref<9x112x112xf32, #tpu.memory_space<vmem>>, vector<1x112x112xf32>
    %134 = vector.shape_cast %133 : vector<1x112x112xf32> to vector<112x112xf32>
    %cst_110 = arith.constant dense<0.000000e+00> : vector<16x112xf32>
    %135 = tpu.matmul %128, %134, %cst_110 {dimension_numbers = #tpu.dot_dimension_numbers<[1], [0], [0], [1], [0, 0, 1, 1], [], []>} : vector<16x112xf32>, vector<112x112xf32>, vector<16x112xf32> -> vector<16x112xf32>
    %136 = arith.addf %132, %135 : vector<16x112xf32>
    %c0_111 = arith.constant 0 : index
    %c0_112 = arith.constant 0 : index
    %137 = vector.load %arg5[%c0_111, %c0_112] : memref<1x112xf32, #tpu.memory_space<vmem>>, vector<1x112xf32>
    %138 = vector.broadcast %137 : vector<1x112xf32> to vector<16x112xf32>
    %139 = arith.addf %136, %138 : vector<16x112xf32>
    %140 = arith.negf %139 : vector<16x112xf32>
    %141 = math.exp %140 : vector<16x112xf32>
    %cst_113 = arith.constant 1.000000e+00 : f32
    %142 = vector.broadcast %cst_113 : f32 to vector<16x112xf32>
    %143 = arith.addf %142, %141 : vector<16x112xf32>
    %144 = arith.divf %142, %143 : vector<16x112xf32>
    %145 = arith.mulf %139, %144 : vector<16x112xf32>
    %146 = vector.shape_cast %145 : vector<16x112xf32> to vector<4x4x112xf32>
    %147 = vector.extract_strided_slice %146 {offsets = [0, 0, 0], sizes = [4, 1, 112], strides = [1, 1, 1]} : vector<4x4x112xf32> to vector<4x1x112xf32>
    %148 = vector.shape_cast %147 : vector<4x1x112xf32> to vector<4x112xf32>
    %c0_114 = arith.constant 0 : index
    %c0_115 = arith.constant 0 : index
    %c0_116 = arith.constant 0 : index
    %149 = vector.load %arg6[%c0_114, %c0_115, %c0_116] : memref<1x4x448xf32, #tpu.memory_space<vmem>>, vector<1x4x112xf32>
    %150 = vector.shape_cast %149 : vector<1x4x112xf32> to vector<4x112xf32>
    %151 = vector.shape_cast %148 : vector<4x112xf32> to vector<1x4x112xf32>
    tpu.vector_store %arg6[%c0_114, %c0_115, %c0_116], %151 {strides = array<i32>} : memref<1x4x448xf32, #tpu.memory_space<vmem>>, vector<1x4x112xf32>,
    %152 = vector.extract_strided_slice %146 {offsets = [0, 1, 0], sizes = [4, 1, 112], strides = [1, 1, 1]} : vector<4x4x112xf32> to vector<4x1x112xf32>
    %153 = vector.shape_cast %152 : vector<4x1x112xf32> to vector<4x112xf32>
    %c0_117 = arith.constant 0 : index
    %c0_118 = arith.constant 0 : index
    %c112 = arith.constant 112 : index
    %154 = vector.load %arg6[%c0_117, %c0_118, %c112] : memref<1x4x448xf32, #tpu.memory_space<vmem>>, vector<1x4x112xf32>
    %155 = vector.shape_cast %154 : vector<1x4x112xf32> to vector<4x112xf32>
    %156 = vector.shape_cast %153 : vector<4x112xf32> to vector<1x4x112xf32>
    tpu.vector_store %arg6[%c0_117, %c0_118, %c112], %156 {strides = array<i32>} : memref<1x4x448xf32, #tpu.memory_space<vmem>>, vector<1x4x112xf32>,
    %157 = vector.extract_strided_slice %146 {offsets = [0, 2, 0], sizes = [4, 1, 112], strides = [1, 1, 1]} : vector<4x4x112xf32> to vector<4x1x112xf32>
    %158 = vector.shape_cast %157 : vector<4x1x112xf32> to vector<4x112xf32>
    %c0_119 = arith.constant 0 : index
    %c0_120 = arith.constant 0 : index
    %c224 = arith.constant 224 : index
    %159 = vector.load %arg6[%c0_119, %c0_120, %c224] : memref<1x4x448xf32, #tpu.memory_space<vmem>>, vector<1x4x112xf32>
    %160 = vector.shape_cast %159 : vector<1x4x112xf32> to vector<4x112xf32>
    %161 = vector.shape_cast %158 : vector<4x112xf32> to vector<1x4x112xf32>
    tpu.vector_store %arg6[%c0_119, %c0_120, %c224], %161 {strides = array<i32>} : memref<1x4x448xf32, #tpu.memory_space<vmem>>, vector<1x4x112xf32>,
    %162 = vector.extract_strided_slice %146 {offsets = [0, 3, 0], sizes = [4, 1, 112], strides = [1, 1, 1]} : vector<4x4x112xf32> to vector<4x1x112xf32>
    %163 = vector.shape_cast %162 : vector<4x1x112xf32> to vector<4x112xf32>
    %c0_121 = arith.constant 0 : index
    %c0_122 = arith.constant 0 : index
    %c336 = arith.constant 336 : index
    %164 = vector.load %arg6[%c0_121, %c0_122, %c336] : memref<1x4x448xf32, #tpu.memory_space<vmem>>, vector<1x4x112xf32>
    %165 = vector.shape_cast %164 : vector<1x4x112xf32> to vector<4x112xf32>
    %166 = vector.shape_cast %163 : vector<4x112xf32> to vector<1x4x112xf32>
    tpu.vector_store %arg6[%c0_121, %c0_122, %c336], %166 {strides = array<i32>} : memref<1x4x448xf32, #tpu.memory_space<vmem>>, vector<1x4x112xf32>,
    return
  }
  func.func @transform_0(%arg0: i32) -> (i32, i32, i32, i32) {
    %c0_i32 = arith.constant 0 : i32
    %c0_i32_0 = arith.constant 0 : i32
    %c0_i32_1 = arith.constant 0 : i32
    %c0_i32_2 = arith.constant 0 : i32
    return %arg0, %c0_i32, %c0_i32_0, %c0_i32_1 : i32, i32, i32, i32
  }
  func.func @transform_1(%arg0: i32) -> (i32, i32, i32, i32) {
    %c0_i32 = arith.constant 0 : i32
    %c0_i32_0 = arith.constant 0 : i32
    %c0_i32_1 = arith.constant 0 : i32
    %c0_i32_2 = arith.constant 0 : i32
    return %arg0, %c0_i32, %c0_i32_0, %c0_i32_1 : i32, i32, i32, i32
  }
  func.func @transform_2(%arg0: i32) -> (i32, i32, i32) {
    %c0_i32 = arith.constant 0 : i32
    %c0_i32_0 = arith.constant 0 : i32
    %c0_i32_1 = arith.constant 0 : i32
    %c0_i32_2 = arith.constant 0 : i32
    return %c0_i32, %c0_i32_0, %c0_i32_1 : i32, i32, i32
  }
  func.func @transform_3(%arg0: i32) -> (i32, i32, i32) {
    %c0_i32 = arith.constant 0 : i32
    %c0_i32_0 = arith.constant 0 : i32
    %c0_i32_1 = arith.constant 0 : i32
    %c0_i32_2 = arith.constant 0 : i32
    return %c0_i32, %c0_i32_0, %c0_i32_1 : i32, i32, i32
  }
  func.func @transform_4(%arg0: i32) -> (i32, i32) {
    %c0_i32 = arith.constant 0 : i32
    %c0_i32_0 = arith.constant 0 : i32
    %c0_i32_1 = arith.constant 0 : i32
    return %c0_i32, %c0_i32_0 : i32, i32
  }
  func.func @transform_5(%arg0: i32) -> (i32, i32, i32) {
    %c0_i32 = arith.constant 0 : i32
    %c0_i32_0 = arith.constant 0 : i32
    %c0_i32_1 = arith.constant 0 : i32
    return %arg0, %c0_i32, %c0_i32_0 : i32, i32, i32
  }
}

</mosaic_0001>

<bundles_post_ra>
// kernel: tpu_custom_call.1
= control target key start
LH: loop header
LB: loop body
LE: loop exit
PB: predicated region body
PF: predicated region fallthrough
CT: control target
= control target key end

     0   :  { %s6219_s0 = inlined_call_operand.hbm [shape: f32[2,2,2,320], index: 0, kind: input, shape index: {}]   ;;  %s6220_s1 = inlined_call_operand.hbm [shape: f32[2,4,4,112], index: 1, kind: input, shape index: {}]   ;;  %s6221_s2 = inlined_call_operand.hbm [shape: f32[9,320,112], index: 2, kind: input, shape index: {}]   ;;  %s6222_s3 = inlined_call_operand.hbm [shape: f32[9,112,112], index: 3, kind: input, shape index: {}]   ;;  %s6223_s4 = inlined_call_operand.hbm [shape: f32[1,112], index: 4, kind: input, shape index: {}]   ;;  %s6224_s5 = inlined_call_operand.hbm [shape: f32[2,4,448], index: 5, kind: output, shape index: {}]  }
   0x1   :  { %6228 = sst [smem:[#allocation20_spill]] %s6219_s0 }
   0x2   :  { %6229 = sst [smem:[#allocation21_spill]] %s6221_s2 }
   0x3   :  { %6230 = sst [smem:[#allocation22_spill]] %s6222_s3 }
   0x4   :  { %10 = vsyncpa [#allocation5], 0 }
   0x5   :  { %12 = vsyncpa [#allocation5 + $0x1], 0 }
   0x6   :  { %13 = vsyncpa [#allocation8], 0 }
   0x7   :  { %15 = vsyncpa [#allocation8 + $0x1], 0 }
   0x8   :  { %16 = vsyncpa [#allocation11], 0 }
   0x9   :  { %17 = vsyncpa [#allocation6], 0 }
   0xa   :  { %19 = vsyncpa [#allocation6 + $0x1], 0  ;;  %s5296_s18 = smov 0   ;;  %s5298_s19 = smov 0  }
   0xb   :  { %s5300_s20 = smov 0   ;;  %s5302_s21 = smov 0  }
   0xc LB: > { %s5317_s22 = sadd.s32 4294967295, %s5247_s21   ;;  %s3759_s23 = sadd.s32 4294967294, %s5247_s21   ;;  %s5247_s21 = sphi %s5302_s21, %s6265_s21   ;;  %s5243_s20 = sphi %s5300_s20, %s6264_s20   ;;  %s5239_s19 = sphi %s5298_s19, %s6263_s19   ;;  %s5235_s18 = sphi %s5296_s18, %s6262_s18  }
   0xd   : > { %p45_p0 = scmp.ne.s32.totalorder %s5239_s19, %s5235_s18  ;;  %p6225_p1 = scmp.eq.s32.totalorder %s5317_s22, 0 }
   0xe   : > { %p164_p3 = scmp.eq.s32.totalorder %s3759_s23, 1  ;;  %p3760_p5 = scmp.ge.s32.totalorder %s5247_s21, 1 }
   0xf   : > { %p5326_p4 = por %p6225_p1, %p45_p0  ;;  %p171_p7 = scmp.lt.s32.totalorder %s5247_s21, 3 }
  0x10   : > { %p5331_p6 = por %p164_p3, %p45_p0  ;;  %s5249_s27 = smov [#allocation9]  }
  0x11   : > { %s6231_s24 = scalar_select %p5326_p4, 1, 0 }
  0x12   : > { %s6232_s25 = scalar_select %p5331_p6, 1, 0 }
  0x13   : > { %p5336_p8 = pnand %p3760_p5, %p171_p7  ;;  %s183_s28 = sshll.u32 %s5249_s27, 4  ;;  %s184_s28 = int_to_ptr.vmem [resolvable:$true] %s183_s28 }
  0x14   : > { %s5250_s30 = smov [#allocation10]   ;;  %s5251_s7 = smov [#allocation12]  }
  0x15   : > { %p4920_p9 = pneg %p5336_p8  ;;  %s196_s6 = sshll.u32 %s5250_s30, 4  ;;  %s197_s6 = int_to_ptr.vmem [resolvable:$true] %s196_s6 }
  0x16   : > { %s210_s8 = sshll.u32 %s5251_s7, 4  ;;  %s5048_s9 = scalar_lea.vmem %s184_s28, 46080  ;;  %s211_s8 = int_to_ptr.vmem [resolvable:$true] %s210_s8 }
  0x17   : > { %p5345_p11 = pnand %p4920_p9, %p6225_p1  ;;  %p5049_p13 = scmp.ne.s32.totalorder %s184_s28, %s5048_s9 }
  0x18   : > { %p5056_p5 = scmp.lt.s32.totalorder %s184_s28, %s184_s28  ;;  %p5057_p7 = scmp.lt.s32.totalorder %s5048_s9, %s5048_s9 }
  0x19   : > { %p5039_p12 = pneg %p5345_p11 }
  0x1a   : > { %p5058_p9 = por %p5057_p7, %p5056_p5 }
  0x1b   : > { %p5051_p0 = pnand %p5049_p13, %p5039_p12 }
  0x1d   : > { %p5052_p3 = pneg %p5051_p0 }
  0x1f   : > { %p5059_p10 = pnand %p5058_p9, %p5052_p3 }
  0x21   : > { %5062 = shalt.err (!%p5059_p10)
}
  0x22   : > { %s5252_s10 = smov 128   ;;  %s5253_s11 = smov 8  }
  0x23   : > { %s6235_s2 = sld [smem:[#allocation21_spill]]  ;;  %s5074_s14 = scalar_lea.vmem %s197_s6, 16128 }
  0x24   : > { %p5075_p1 = scmp.ne.s32.totalorder %s197_s6, %s5074_s14  ;;  %p5082_p2 = scmp.lt.s32.totalorder %s197_s6, %s197_s6 }
  0x25   : > { %p5083_p6 = scmp.lt.s32.totalorder %s5074_s14, %s5074_s14 }
  0x26   : > { %p5077_p13 = pnand %p5075_p1, %p5039_p12 }
  0x27   : > { %p5084_p5 = por %p5083_p6, %p5082_p2 }
  0x28   : > { %p5078_p0 = pneg %p5077_p13 }
  0x29   : > { %4923 = dma.hbm_to_vmem [thread:$0]  (!%p5345_p11), %s6235_s2, 46080, %s184_s28, [#allocation8], %s5252_s10, %s5252_s10, %s5253_s11  }
  0x2a   : > { %p5085_p3 = pnand %p5084_p5, %p5078_p0 }
  0x2c   : > { %5088 = shalt.err (!%p5085_p3)
}
  0x2d   : > { %s6236_s3 = sld [smem:[#allocation22_spill]]  ;;  %s5100_s17 = scalar_lea.vmem %s211_s8, 16 }
  0x2e   : > { %p5101_p10 = scmp.ne.s32.totalorder %s211_s8, %s5100_s17  ;;  %s5107_s23 = scalar_lea.vmem %s211_s8, 32 }
  0x2f   : > { %p5108_p9 = scmp.lt.s32.totalorder %s211_s8, %s211_s8  ;;  %p5109_p13 = scmp.lt.s32.totalorder %s5107_s23, %s5100_s17 }
  0x30   : > { %p5103_p7 = pnand %p5101_p10, %p5039_p12 }
  0x31   : > { %p5110_p2 = por %p5109_p13, %p5108_p9 }
  0x32   : > { %p5104_p1 = pneg %p5103_p7 }
  0x33   : > { %4926 = dma.hbm_to_vmem [thread:$0]  (!%p5345_p11), %s6236_s3, 16128, %s197_s6, [#allocation11], %s5252_s10, %s5252_s10, %s5253_s11  }
  0x34   : > { %p5111_p6 = pnand %p5110_p2, %p5104_p1 }
  0x36   : > { %5114 = shalt.err (!%p5111_p6)
}
  0x37   : > { %4929 = dma.hbm_to_vmem [thread:$0]  (!%p5345_p11), %s6223_s4, 16, %s211_s8, [#allocation11]  }
  0x38   : > { %s5376_s30 = sadd.s32 1, %s5247_s21   ;;  %s32_s29 = sadd.s32 1, %s5243_s20 }
  0x39   : > { %s29_s6 = ssub.s32 %s5247_s21, %s5376_s30  ;;  %p39_p0 = scmp.ne.s32.totalorder %s5243_s20, %s5239_s19 }
  0x3a   : > { %p30_p12 = scmp.eq.s32.totalorder %s29_s6, 0  ;;  %p40_p5 = scmp.eq.s32.totalorder %s5247_s21, 0 }
  0x3b   : > { %p4944_p3 = scmp.lt.s32.totalorder %s5247_s21, 2  ;;  %p6237_p7 = scmp.eq.s32.totalorder %s5317_s22, 1 }
  0x3c   : > { %s5386_s7 = scalar_select %p30_p12, %s5243_s20, %s32_s29  }
  0x3d   : > { %p41_p10 = por %p40_p5, %p39_p0  ;;  %p5390_p1 = por %p6237_p7, %p39_p0 }
  0x3e   : > { %s5395_s10 = sand.u32 1, %s5243_s20   ;;  %s4900_s8 = smul.u32 192, %s5247_s21 }
  0x3f   : > { %s6238_s9 = scalar_select %p5390_p1, 1, 0 }
  0x40   : > { %s4899_s11 = smul.u32 12, %s5395_s10  ;;  %s6239_s0 = sld [smem:[#allocation20_spill]] }
  0x41   : > { %p5404_p11 = pnand %p4944_p3, %p41_p10  ;;  %s222_s23 = scalar_lea.sflag [#allocation5], %s5395_s10 }
  0x42   : > { %s225_s16 = scalar_lea.vmem [#allocation4], %s4899_s11 }
  0x43   : > { %s232_s17 = sshll.u32 %s225_s16, 4  ;;  %p5117_p13 = pneg %p5404_p11  ;;  %s5408_s17 = int_to_ptr.vmem [resolvable:$true] %s232_s17 }
  0x46   : > { %s5402_s14 = scalar_lea.hbm %s6239_s0, %s4900_s8  ;;  %s5120_s29 = scalar_lea.hbm %s6239_s0, 384 }
  0x47   : > { %s5115_s27 = scalar_lea.hbm %s5402_s14, 192  ;;  %p5121_p12 = scmp.lt.s32.totalorder %s5402_s14, %s6239_s0 }
  0x48   : > { %p5116_p9 = scmp.ne.s32.totalorder %s5402_s14, %s5115_s27  ;;  %p5122_p0 = scmp.lt.s32.totalorder %s5120_s29, %s5115_s27 }
  0x4a   : > { %p5118_p2 = pnand %p5117_p13, %p5116_p9  ;;  %p5123_p5 = por %p5122_p0, %p5121_p12 }
  0x4c   : > { %p5119_p6 = pneg %p5118_p2 }
  0x4e   : > { %p5124_p3 = pnand %p5123_p5, %p5119_p6 }
  0x50   : > { %5127 = shalt.err (!%p5124_p3)
}
  0x51   : > { %s5128_s11 = scalar_lea.vmem %s5408_s17, 192  ;;  %s5254_s13 = smov [#allocation4]  }
  0x52   : > { %p5129_p10 = scmp.ne.s32.totalorder %s5408_s17, %s5128_s11  ;;  %s5133_s16 = sshll.u32 %s5254_s13, 4  ;;  %s5134_s16 = int_to_ptr.vmem [resolvable:$false] %s5133_s16 }
  0x53   : > { %s5135_s28 = scalar_lea.vmem %s5134_s16, 384  ;;  %p5136_p2 = scmp.lt.s32.totalorder %s5408_s17, %s5134_s16 }
  0x54   : > { %p5131_p7 = pnand %p5129_p10, %p5117_p13  ;;  %p5137_p1 = scmp.lt.s32.totalorder %s5135_s28, %s5128_s11 }
  0x56   : > { %p5132_p9 = pneg %p5131_p7  ;;  %p5138_p4 = por %p5137_p1, %p5136_p2 }
  0x58   : > { %p5139_p12 = pnand %p5138_p4, %p5132_p9 }
  0x5a   : > { %5142 = shalt.err (!%p5139_p12)
}
  0x5b   : > { %s5255_s27 = smov 96   ;;  %s5256_s6 = smov 6  }
  0x5c   : > { %4933 = dma.hbm_to_vmem [thread:$0]  (!%p5404_p11), %s5402_s14, 192, %s5408_s17, %s222_s23, %s5255_s27, %s5255_s27, %s5256_s6  }
  0x5d   : > { %s242_s29 = sand.u32 1, %s5247_s21   ;;  %s3766_s8 = sshll.u32 %s5395_s10, 4 }
  0x5e   : > { %s3871_s12 = sshll.u32 %s5247_s21, 8  ;;  %s246_s11 = scalar_lea.vmem [#allocation7], %s3766_s8 }
  0x5f   : > { %s253_s13 = sshll.u32 %s246_s11, 4  ;;  %s5443_s0 = scalar_lea.hbm %s6220_s1, %s3871_s12  ;;  %s5445_s13 = int_to_ptr.vmem [resolvable:$true] %s253_s13 }
  0x60   : > { %s5447_s2 = scalar_lea.sflag [#allocation8], %s242_s29  ;;  %s5143_s3 = scalar_lea.hbm %s5443_s0, 256 }
  0x61   : > { %p5144_p4 = scmp.ne.s32.totalorder %s5443_s0, %s5143_s3  ;;  %s5148_s17 = scalar_lea.hbm %s6220_s1, 512 }
  0x62   : > { %p5149_p0 = scmp.lt.s32.totalorder %s5443_s0, %s6220_s1  ;;  %p5150_p5 = scmp.lt.s32.totalorder %s5148_s17, %s5143_s3 }
  0x63   : > { %p5146_p1 = pnand %p5144_p4, %p5117_p13 }
  0x64   : > { %p5151_p3 = por %p5150_p5, %p5149_p0 }
  0x65   : > { %p5147_p6 = pneg %p5146_p1 }
  0x67   : > { %p5152_p10 = pnand %p5151_p3, %p5147_p6 }
  0x69   : > { %5155 = shalt.err (!%p5152_p10)
}
  0x6a   : > { %s5156_s6 = scalar_lea.vmem %s5445_s13, 256  ;;  %s5257_s29 = smov [#allocation7]  }
  0x6b   : > { %p5157_p7 = scmp.ne.s32.totalorder %s5445_s13, %s5156_s6  ;;  %s5161_s8 = sshll.u32 %s5257_s29, 4  ;;  %s5162_s8 = int_to_ptr.vmem [resolvable:$false] %s5161_s8 }
  0x6c   : > { %s5163_s12 = scalar_lea.vmem %s5162_s8, 512  ;;  %p5164_p12 = scmp.lt.s32.totalorder %s5445_s13, %s5162_s8 }
  0x6d   : > { %p5159_p9 = pnand %p5157_p7, %p5117_p13  ;;  %p5165_p4 = scmp.lt.s32.totalorder %s5163_s12, %s5156_s6 }
  0x6f   : > { %p5160_p2 = pneg %p5159_p9  ;;  %p5166_p1 = por %p5165_p4, %p5164_p12 }
  0x71   : > { %p5167_p0 = pnand %p5166_p1, %p5160_p2 }
  0x73   : > { %5170 = shalt.err (!%p5167_p0)
}
  0x74   : > { %s5258_s3 = smov 64   ;;  %s5259_s11 = smov 4  }
  0x75   : > { %4936 = dma.hbm_to_vmem [thread:$0]  (!%p5404_p11), %s5443_s0, 256, %s5445_s13, %s5447_s2, %s5258_s3, %s5258_s3, %s5259_s11  }
  0x76   : > { %265 = sbr.rel (%p5336_p8) target bundleno = 905 (0x389), region = 40 }
  0x7b   : > { %s5475_s16 = sand.u32 1, %s5239_s19   ;;  %p6241_p13 = scmp.ne.s32.totalorder %s6231_s24, 0 }
  0x7c   : > { %s4901_s28 = smul.u32 12, %s5475_s16  ;;  %s268_s10 = scalar_lea.sflag [#allocation5], %s5475_s16 }
  0x7e   : > { %s5479_s14 = scalar_lea.vmem [#allocation4], %s4901_s28 }
  0x7f   : > { %5214 = dma.done.wait (%p6241_p13), %s268_s10, 192  }
  0x80   : > { %5216 = vsyncadd (%p6241_p13), %s268_s10, 4294967104  ;;  %s276_s0 = sand.u32 1, %s5317_s22   ;;  %s3770_s2 = sshll.u32 %s5475_s16, 4 }
  0x81   : > { %s277_s26 = scalar_lea.sflag [#allocation8], %s276_s0  ;;  %s5489_s15 = scalar_lea.vmem [#allocation7], %s3770_s2 }
  0x82   : > { %5218 = dma.done.wait (%p6241_p13), %s277_s26, 256  }
  0x83   : > { %5220 = vsyncadd (%p6241_p13), %s277_s26, 4294967040  ;;  %p6242_p8 = scmp.eq.s32.totalorder %s5317_s22, 0 }
  0x85   : > { %5222 = dma.done.wait (%p6242_p8), [#allocation8], 46080   ;;  %p6243_p11 = pmov %p6242_p8 }
  0x86   : > { %p6244_p6 = pmov %p6242_p8 }
  0x87   : > { %5224 = vsyncadd (%p6243_p11), [#allocation8], 4294921216 }
  0x88   : > { %5226 = dma.done.wait (%p6244_p6), [#allocation11], 16144   ;;  %p6245_p5 = pmov %p6244_p6 }
  0x89   : > { %vm371_vm0 = vcmask 914432   ;;  %vm375_vm1 = vcmask 909312   ;;  %v5260_v0 = vmov 0.0   ;;  %vm326_vm2 = vcmask 521216   ;;  %v683_v2 = vld [vmem:[#allocation10 + $0x68] sm:$0xff]  ;;  %v661_v3 = vld [vmem:[#allocation9 + $0xf8] sm:$0xff] }
  0x8a   : > { %5228 = vsyncadd (%p6245_p5), [#allocation11], 4294951152  ;;  %372 = vst.msk [vmem:[#allocation3] sm:$0x3f] %vm371_vm0, %v5260_v0  ;;  %v332_v1 = vlaneseq  ;;  %v645_v4 = vld [vmem:[#allocation9 + $0x78] sm:$0xff]  ;;  %4449 = vmatprep.subr.mxu0 %v683_v2  ;;  %3889 = vmatprep.subr.mxu1 %v661_v3  ;;  %v682_v5 = vld [vmem:[#allocation10 + $0x60] sm:$0xff] }
  0x8b   : > { %374 = vst.msk [vmem:[#allocation3 + $0x28] sm:$0x3f] %vm371_vm0, %v5260_v0  ;;  %324 = vst [vmem:[#allocation2] sm:$0x3f] %v5260_v0  ;;  %v660_v6 = vld [vmem:[#allocation9 + $0xf0] sm:$0xff]  ;;  %4450 = vmatpush3.msra.mxu0 %v683_v2  ;;  %3890 = vmatpush3.msra.mxu1 %v645_v4  ;;  %v681_v8 = vld [vmem:[#allocation10 + $0x58] sm:$0xff] }
  0x8c   : > { %377 = vst.msk [vmem:[#allocation3 + $0x8] sm:$0x1] %vm375_vm1, %v5260_v0  ;;  %383 = vst.msk [vmem:[#allocation3 + $0xd] sm:$0x1] %vm375_vm1, %v5260_v0  ;;  %vm334_vm3 = vcmp.lt.s32.totalorder %v332_v1, 320  ;;  %v644_v7 = vld [vmem:[#allocation9 + $0x70] sm:$0xff]  ;;  %4451 = vmatprep.subr.mxu0 %v682_v5  ;;  %3891 = vmatprep.subr.mxu1 %v660_v6 }
  0x8d   : > { %325 = vst [vmem:[#allocation2 + $0x8] sm:$0x3f] %v5260_v0  ;;  %329 = vst [vmem:[#allocation2 + $0x78] sm:$0x3f] %v5260_v0  ;;  %v659_v9 = vld [vmem:[#allocation9 + $0xe8] sm:$0xff]  ;;  %4452 = vmatpush3.msra.mxu0 %v682_v5  ;;  %3892 = vmatpush3.msra.mxu1 %v644_v7  ;;  %v680_v11 = vld [vmem:[#allocation10 + $0x50] sm:$0xff] }
  0x8e   : > { %330 = vst [vmem:[#allocation2 + $0x80] sm:$0x3f] %v5260_v0  ;;  %378 = vst.msk [vmem:[#allocation3 + $0x10] sm:$0x1] %vm375_vm1, %v5260_v0  ;;  %v643_v10 = vld [vmem:[#allocation9 + $0x68] sm:$0xff]  ;;  %v658_v12 = vld [vmem:[#allocation9 + $0xe0] sm:$0xff]  ;;  %4453 = vmatprep.subr.mxu0 %v681_v8  ;;  %3893 = vmatprep.subr.mxu1 %v659_v9 }
  0x8f   : > { %379 = vst.msk [vmem:[#allocation3 + $0x18] sm:$0x1] %vm375_vm1, %v5260_v0  ;;  %380 = vst.msk [vmem:[#allocation3 + $0x20] sm:$0x1] %vm375_vm1, %v5260_v0  ;;  %v642_v13 = vld [vmem:[#allocation9 + $0x60] sm:$0xff]  ;;  %4454 = vmatpush3.msra.mxu0 %v681_v8  ;;  %3894 = vmatpush3.msra.mxu1 %v643_v10  ;;  %v679_v14 = vld [vmem:[#allocation10 + $0x48] sm:$0xff] }
  0x90   : > { %384 = vst.msk [vmem:[#allocation3 + $0x15] sm:$0x1] %vm375_vm1, %v5260_v0  ;;  %385 = vst.msk [vmem:[#allocation3 + $0x1d] sm:$0x1] %vm375_vm1, %v5260_v0  ;;  %v657_v15 = vld [vmem:[#allocation9 + $0xd8] sm:$0xff]  ;;  %4455 = vmatprep.subr.mxu0 %v680_v11  ;;  %3895 = vmatprep.subr.mxu1 %v658_v12  ;;  %v678_v17 = vld [vmem:[#allocation10 + $0x40] sm:$0xff] }
  0x91   : > { %386 = vst.msk [vmem:[#allocation3 + $0x25] sm:$0x1] %vm375_vm1, %v5260_v0  ;;  %376 = vst.msk [vmem:[#allocation3] sm:$0x1] %vm375_vm1, %v5260_v0  ;;  %v641_v16 = vld [vmem:[#allocation9 + $0x58] sm:$0xff]  ;;  %4456 = vmatpush3.msra.mxu0 %v680_v11  ;;  %3896 = vmatpush3.msra.mxu1 %v642_v13  ;;  %v656_v18 = vld [vmem:[#allocation9 + $0xd0] sm:$0xff] }
  0x92   : > { %381 = vst.msk [vmem:[#allocation3 + $0x28] sm:$0x1] %vm375_vm1, %v5260_v0  ;;  %382 = vst.msk [vmem:[#allocation3 + $0x5] sm:$0x1] %vm375_vm1, %v5260_v0  ;;  %4457 = vmatprep.subr.mxu0 %v679_v14  ;;  %3897 = vmatprep.subr.mxu1 %v657_v15  ;;  %v640_v19 = vld [vmem:[#allocation9 + $0x50] sm:$0xff]  ;;  %v677_v20 = vld [vmem:[#allocation10 + $0x38] sm:$0xff] }
  0x93   : > { %387 = vst.msk [vmem:[#allocation3 + $0x2d] sm:$0x1] %vm375_vm1, %v5260_v0  ;;  %4458 = vmatpush3.msra.mxu0 %v679_v14  ;;  %3898 = vmatpush3.msra.mxu1 %v641_v16  ;;  %v655_v21 = vld [vmem:[#allocation9 + $0xc8] sm:$0xff]  ;;  %v409_v22 = vshrl.u32 %v332_v1, 7  ;;  %v5261_v23 = vmov 1983009808  }
  0x94   : > { %327 = vst.msk [vmem:[#allocation2 + $0x10] sm:$0x3f] %vm326_vm2, %v5260_v0  ;;  %331 = vst.msk [vmem:[#allocation2 + $0x88] sm:$0x3f] %vm326_vm2, %v5260_v0  ;;  %v458_v24 = vunpack.c.l.s4 %v5261_v23  ;;  %4459 = vmatprep.subr.mxu0 %v678_v17  ;;  %3899 = vmatprep.subr.mxu1 %v656_v18  ;;  %v639_v25 = vld [vmem:[#allocation9 + $0x48] sm:$0xff]  ;;  %vm585_vm4 = vcmask 912384  }
  0x95   : > { %336 = vst.msk [vmem:[#allocation2] ss:$8 sm:$0x7] %vm334_vm3, %v5260_v0  ;;  %339 = vst.msk [vmem:[#allocation2 + $0x18] ss:$8 sm:$0x7] %vm334_vm3, %v5260_v0  ;;  %4460 = vmatpush3.msra.mxu0 %v678_v17  ;;  %3900 = vmatpush3.msra.mxu1 %v640_v19 }
  0x96   : > { %354 = vst.msk [vmem:[#allocation2 + $0x5] ss:$8 sm:$0x7] %vm334_vm3, %v5260_v0  ;;  %357 = vst.msk [vmem:[#allocation2 + $0x1d] ss:$8 sm:$0x7] %vm334_vm3, %v5260_v0  ;;  %4461 = vmatprep.subr.mxu0 %v677_v20  ;;  %3901 = vmatprep.subr.mxu1 %v655_v21  ;;  %v459_v34 = vunpack.c.0.s8 %v458_v24 }
  0x97   : > { %342 = vst.msk [vmem:[#allocation2 + $0x30] ss:$8 sm:$0x7] %vm334_vm3, %v5260_v0  ;;  %345 = vst.msk [vmem:[#allocation2 + $0x48] ss:$8 sm:$0x7] %vm334_vm3, %v5260_v0  ;;  %4462 = vmatpush3.msra.mxu0 %v677_v20  ;;  %3902 = vmatpush3.msra.mxu1 %v639_v25 }
  0x98   : > { %348 = vst.msk [vmem:[#allocation2 + $0x60] ss:$8 sm:$0x7] %vm334_vm3, %v5260_v0  ;;  %360 = vst.msk [vmem:[#allocation2 + $0x35] ss:$8 sm:$0x7] %vm334_vm3, %v5260_v0  ;;  %v5532_v46 = vsub.s32 %v459_v34, %v409_v22 }
  0x99   : > { %363 = vst.msk [vmem:[#allocation2 + $0x4d] ss:$8 sm:$0x7] %vm334_vm3, %v5260_v0  ;;  %366 = vst.msk [vmem:[#allocation2 + $0x65] ss:$8 sm:$0x7] %vm334_vm3, %v5260_v0 }
  0x9a   : > { %351 = vst.msk [vmem:[#allocation2 + $0x78] ss:$8 sm:$0x7] %vm334_vm3, %v5260_v0  ;;  %369 = vst.msk [vmem:[#allocation2 + $0x7d] ss:$8 sm:$0x7] %vm334_vm3, %v5260_v0 }
  0x9b   : > { %v676_v26 = vld [vmem:[#allocation10 + $0x30] sm:$0xff]  ;;  %v654_v27 = vld [vmem:[#allocation9 + $0xc0] sm:$0xff]  ;;  %v675_v30 = vld [vmem:[#allocation10 + $0x28] sm:$0xff]  ;;  %v5518_v33 = vsub.s32 0, %v409_v22  ;;  %v5523_v38 = vsub.s32 1, %v409_v22  ;;  %v5527_v42 = vsub.s32 2, %v409_v22 }
  0x9c   : > { %v638_v28 = vld [vmem:[#allocation9 + $0x40] sm:$0xff]  ;;  %v653_v31 = vld [vmem:[#allocation9 + $0xb8] sm:$0xff]  ;;  %4463 = vmatprep.subr.mxu0 %v676_v26  ;;  %3903 = vmatprep.subr.mxu1 %v654_v27  ;;  %v652_v40 = vld [vmem:[#allocation9 + $0xb0] sm:$0xff]  ;;  %vm690_vm5 = vcmask 916480   ;;  %vm943_vm6 = vcmask 1042432   ;;  %vm944_vm7 = vcmask 1046532  }
  0x9d   : > { %v580_v29 = vld [vmem:[%s5489_s15] sm:$0xf]  ;;  %v583_v32 = vld [vmem:[%s5489_s15 + $0xc] sm:$0xf]  ;;  %v581_v36 = vld [vmem:[%s5489_s15 + $0x4] sm:$0xf]  ;;  %4464 = vmatpush3.msra.mxu0 %v676_v26  ;;  %3904 = vmatpush3.msra.mxu1 %v638_v28 }
  0x9e   : > { %586 = vst.msk [vmem:[#allocation3 + $0x9] sm:$0xf] %vm585_vm4, %v580_v29  ;;  %v637_v35 = vld [vmem:[#allocation9 + $0x38] sm:$0xff]  ;;  %589 = vst.msk [vmem:[#allocation3 + $0x21] sm:$0xf] %vm585_vm4, %v583_v32  ;;  %v674_v39 = vld [vmem:[#allocation10 + $0x20] sm:$0xff]  ;;  %4465 = vmatprep.subr.mxu0 %v675_v30  ;;  %3905 = vmatprep.subr.mxu1 %v653_v31 }
  0x9f   : > { %v582_v37 = vld [vmem:[%s5489_s15 + $0x8] sm:$0xf]  ;;  %587 = vst.msk [vmem:[#allocation3 + $0x11] sm:$0xf] %vm585_vm4, %v581_v36  ;;  %v636_v41 = vld [vmem:[#allocation9 + $0x30] sm:$0xff]  ;;  %4466 = vmatpush3.msra.mxu0 %v675_v30  ;;  %3906 = vmatpush3.msra.mxu1 %v637_v35  ;;  %v650_v52 = vld [vmem:[#allocation9 + $0xa0] sm:$0xff] }
  0xa0   : > { %588 = vst.msk [vmem:[#allocation3 + $0x19] sm:$0xf] %vm585_vm4, %v582_v37  ;;  %v673_v43 = vld [vmem:[#allocation10 + $0x18] sm:$0xff]  ;;  %v651_v44 = vld [vmem:[#allocation9 + $0xa8] sm:$0xff]  ;;  %4467 = vmatprep.subr.mxu0 %v674_v39  ;;  %3907 = vmatprep.subr.mxu1 %v652_v40  ;;  %v672_v48 = vld [vmem:[#allocation10 + $0x10] sm:$0xff]  ;;  %vm569_vm9 = vcmask 520193  }
  0xa1   : > { %v5530_v45 = vld.sshfl [vmem:[%s5479_s14] sm:$0x77 pattern:$0x75316420]  ;;  %4468 = vmatpush3.msra.mxu0 %v674_v39  ;;  %3908 = vmatpush3.msra.mxu1 %v636_v41  ;;  %v634_v53 = vld [vmem:[#allocation9 + $0x20] sm:$0xff]  ;;  %vm5597_vm8 = vmor %vm943_vm6, %vm944_vm7  ;;  %vm780_vm10 = vcmask 523264  }
  0xa2   : > { %v635_v47 = vld [vmem:[#allocation9 + $0x28] sm:$0xff]  ;;  %v5536_v49 = vcombine.high %v5530_v45, %v5530_v45  ;;  %v411_v50 = vrot.slane %v5530_v45, %v5518_v33  ;;  %v415_v51 = vrot.slane %v5530_v45, %v5523_v38  ;;  %v5542_v54 = vld [vmem:[#allocation3] sm:$0x3f]  ;;  %4469 = vmatprep.subr.mxu0 %v673_v43  ;;  %3909 = vmatprep.subr.mxu1 %v651_v44  ;;  %v670_v6 = vld [vmem:[#allocation10] sm:$0xff]  ;;  %vm1303_vm11 = vcmask 1041408   ;;  %s5262_s24 = smov 112  }
  0xa3   : > { %v3776_v59 = vld.sshfl [vmem:[%s5479_s14 + $0x6] sm:$0x77 pattern:$0x75316420]  ;;  %4470 = vmatpush3.msra.mxu0 %v673_v43  ;;  %3910 = vmatpush3.msra.mxu1 %v635_v47  ;;  %v5553_v62 = vcombine.high %v5542_v54, %v5542_v54  ;;  %v419_v63 = vrot.slane %v5530_v45, %v5527_v42  ;;  %v3797_v14 = vrot.slane %v5542_v54, 9  ;;  %v646_v30 = vld [vmem:[#allocation9 + $0x80] sm:$0xff] }
  0xa4   : > { %v423_v56 = vrot.slane %v5536_v49, %v5518_v33  ;;  %v427_v57 = vrot.slane %v5536_v49, %v5523_v38  ;;  %v456_v58 = vcombine.low %v411_v50, %v415_v51  ;;  %v671_v60 = vld [vmem:[#allocation10 + $0x8] sm:$0xff]  ;;  %v649_v61 = vld [vmem:[#allocation9 + $0x98] sm:$0xff]  ;;  %4471 = vmatprep.subr.mxu0 %v672_v48  ;;  %3911 = vmatprep.subr.mxu1 %v650_v52  ;;  %v648_v7 = vld [vmem:[#allocation9 + $0x90] sm:$0xff]  ;;  %vm1304_vm12 = vcmask 1045508   ;;  %s6162_s13 = scalar_lea.vmem [#allocation13], %s3770_s2  ;;  %s5263_s17 = smov 80  }
  0xa5   : > { %v5544_v55 = vld [vmem:[#allocation3 + $0x8] sm:$0x3f]  ;;  %v633_v0 = vld [vmem:[#allocation9 + $0x18] sm:$0xff]  ;;  %4472 = vmatpush3.msra.mxu0 %v672_v48  ;;  %3912 = vmatpush3.msra.mxu1 %v634_v53  ;;  %v407_v10 = vcombine.high %v3776_v59, %v3776_v59  ;;  %v435_v12 = vrot.slane %v3776_v59, %v5518_v33  ;;  %v439_v13 = vrot.slane %v3776_v59, %v5523_v38  ;;  %v632_v15 = vld [vmem:[#allocation9 + $0x10] sm:$0xff]  ;;  %v984_v19 = vrot.slane %v5553_v62, 5  ;;  %s5264_s23 = smov 96  }
  0xa6   : > { %v688_v1 = vcombine.low %v5542_v54, %v5544_v55  ;;  %v5559_v2 = vld [vmem:[#allocation3 + $0x10] sm:$0x3f]  ;;  %v463_v4 = vrot.slane %v456_v58, %v5532_v46  ;;  %v472_v5 = vcombine.low %v423_v56, %v427_v57  ;;  %v5566_v8 = vcombine.high %v5544_v55, %v5544_v55  ;;  %4473 = vmatprep.subr.mxu0 %v671_v60  ;;  %v669_v21 = vld [vmem:[#allocation9 + $0x138] sm:$0xff]  ;;  %v668_v31 = vld [vmem:[#allocation9 + $0x130] sm:$0xff]  ;;  %s3872_s27 = sshll.u32 %s5317_s22, 8  ;;  %s3638_s6 = sshll.u32 %s6162_s13, 4  ;;  %s6176_s6 = int_to_ptr.vmem [resolvable:$true] %s3638_s6 }
  0xa7   : > { %v5561_v3 = vld [vmem:[#allocation3 + $0x18] sm:$0x3f]  ;;  %3913 = vmatprep.subr.mxu1 %v649_v61  ;;  %4474 = vmatpush3.msra.mxu0 %v671_v60  ;;  %v443_v16 = vrot.slane %v3776_v59, %v5527_v42  ;;  %v447_v17 = vrot.slane %v407_v10, %v5518_v33  ;;  %v451_v18 = vrot.slane %v407_v10, %v5523_v38  ;;  %v647_v20 = vld [vmem:[#allocation9 + $0x88] sm:$0xff]  ;;  %v3798_v29 = vrot.slane %v5544_v55, 9  ;;  %v630_v36 = vld [vmem:[#allocation9] sm:$0xff]  ;;  %s6174_s12 = scalar_lea.hbm %s6224_s5, %s3872_s27  ;;  %s3624_s22 = scalar_lea.sflag [#allocation6], %s5475_s16 }
  0xa8   : > { %v5570_v9 = vcombine.low %v5559_v2, %v5561_v3  ;;  %v479_v11 = vrot.slane %v472_v5, %v5532_v46  ;;  %3914 = vmatpush3.msra.mxu1 %v633_v0  ;;  %4475 = vmatprep.subr.mxu0 %v670_v6  ;;  %v455_v23 = vrot.slane %v407_v10, %v5527_v42  ;;  %v631_v25 = vld [vmem:[#allocation9 + $0x8] sm:$0xff]  ;;  %v988_v35 = vrot.slane %v5566_v8, 5  ;;  %v1030_v43 = vld [vmem:[#allocation9 + $0x238] sm:$0xff]  ;;  %v666_v50 = vld [vmem:[#allocation9 + $0x120] sm:$0xff]  ;;  %s5171_s3 = scalar_lea.vmem %s6176_s6, 256  ;;  %p6259_p10 = scmp.ne.s32.totalorder %s6238_s9, 0 }
  0xa9   : > { %3915 = vmatprep.subr.mxu1 %v648_v7  ;;  %v488_v24 = vcombine.low %v435_v12, %v439_v13  ;;  %4476 = vmatpush3.msra.mxu0 %v670_v6  ;;  %v502_v26 = vrot.slane %v443_v16, %v5532_v46  ;;  %v504_v27 = vcombine.low %v447_v17, %v451_v18  ;;  %v3799_v57 = vrot.slane %v5559_v2, 9  ;;  %v665_v58 = vld [vmem:[#allocation9 + $0x118] sm:$0xff]  ;;  %v664_v5 = vld [vmem:[#allocation9 + $0x110] sm:$0xff]  ;;  %v663_v12 = vld [vmem:[#allocation9 + $0x108] sm:$0xff]  ;;  %p5172_p3 = scmp.ne.s32.totalorder %s6176_s6, %s5171_s3  ;;  %s5265_s11 = smov [#allocation13]  }
  0xaa   : > { %v3777_v22 = vcombine.low %v463_v4, %v479_v11  ;;  %4477 = vmatprep.mubr.msk.f32.mxu0 %vm690_vm5, %v688_v1  ;;  %v431_v28 = vrot.slane %v5536_v49, %v5527_v42  ;;  %3916 = vmatpush3.msra.mxu1 %v632_v15  ;;  %v470_v34 = vrot.slane %v419_v63, %v5532_v46  ;;  %v667_v42 = vld [vmem:[#allocation9 + $0x128] sm:$0xff]  ;;  %v3800_v63 = vrot.slane %v5561_v3, 9  ;;  %v591_v15 = vld [vmem:[#allocation2 + $0x8] sm:$0x3f]  ;;  %vm5745_vm13 = vmor %vm1303_vm11, %vm1304_vm12  ;;  %s5175_s28 = sshll.u32 %s5265_s11, 4  ;;  %s5176_s28 = int_to_ptr.vmem [resolvable:$false] %s5175_s28 }
  0xab   : > { %4478 = vmatmul.mubr.msk.f32.vlgmr.msra.gmra.mxu0 %vm690_vm5, %v5570_v9  ;;  %v495_v33 = vrot.slane %v488_v24, %v5532_v46  ;;  %3917 = vmatprep.subr.mxu1 %v647_v20  ;;  %v511_v37 = vrot.slane %v504_v27, %v5532_v46  ;;  %v518_v39 = vrot.slane %v455_v23, %v5532_v46  ;;  %v590_v11 = vld [vmem:[#allocation2] sm:$0x3f]  ;;  %v5654_v27 = vld [vmem:[#allocation2 + $0x10] sm:$0x3f]  ;;  %v1007_v20 = vld [vmem:[#allocation9 + $0x180] sm:$0xff]  ;;  %vm3551_vm14 = vcmask 1041409   ;;  %p5173_p7 = pnand %p5172_p3, %p6259_p10  ;;  %p5178_p2 = scmp.lt.s32.totalorder %s6176_s6, %s5176_s28 }
  0xac   : > { %v528_v32 = vrot.slane %v3777_v22, %v5532_v46  ;;  %4480 = vmatprep.subr.mxu0 %v669_v21  ;;  %v486_v38 = vrot.slane %v431_v28, %v5532_v46  ;;  %3918 = vmatpush3.msra.mxu1 %v631_v25  ;;  %v5603_v51 = vsel %vm5597_vm8, %v3797_v14, %v984_v19  ;;  %v662_v19 = vld [vmem:[#allocation9 + $0x100] sm:$0xff]  ;;  %v1038_v25 = vld [vmem:[#allocation9 + $0x278] sm:$0xff]  ;;  %vm3553_vm15 = vcmask 1045509   ;;  %s5177_s10 = scalar_lea.vmem %s5176_s28, 512 }
  0xad   : > { %4481 = vmatpush3.msra.mxu0 %v669_v21  ;;  %3919 = vmatprep.subr.mxu1 %v646_v30  ;;  %v3779_v44 = vcombine.low %v495_v33, %v511_v37  ;;  %v3780_v47 = vcombine.low %v502_v26, %v518_v39  ;;  %v5607_v52 = vsel %vm5597_vm8, %v3798_v29, %v988_v35  ;;  %v1014_v26 = vld [vmem:[#allocation9 + $0x1b8] sm:$0xff]  ;;  %v1029_v29 = vld [vmem:[#allocation9 + $0x230] sm:$0xff]  ;;  %v1028_v37 = vld [vmem:[#allocation9 + $0x228] sm:$0xff]  ;;  %vm3556_vm0 = vcmask 1042434   ;;  %p5174_p9 = pneg %p5173_p7  ;;  %p5179_p12 = scmp.lt.s32.totalorder %s5177_s10, %s5171_s3 }
  0xae   : > { %v536_v40 = vcombine.high %v528_v32, %v528_v32  ;;  %v554_v41 = vrot.slane %v528_v32, 7  ;;  %4482 = vmatprep.subr.mxu0 %v668_v31  ;;  %v3778_v45 = vcombine.low %v470_v34, %v486_v38  ;;  %3920 = vmatpush3.msra.mxu1 %v630_v36  ;;  %v5617_v60 = vcombine.high %v5559_v2, %v5559_v2  ;;  %v1013_v30 = vld [vmem:[#allocation9 + $0x1b0] sm:$0xff]  ;;  %v1022_v28 = vld [vmem:[#allocation9 + $0x1f8] sm:$0xff]  ;;  %v3437_v48 = vld [vmem:[#allocation10 + $0x3c0] sm:$0xff] }
  0xaf   : > { %4483 = vmatpush3.msra.mxu0 %v668_v31  ;;  %3937 = vmatprep.subr.mxu1 %v1030_v43  ;;  %v545_v53 = vrot.slane %v3779_v44, %v5532_v46  ;;  %v552_v56 = vrot.slane %v3780_v47, %v5532_v46  ;;  %v5621_v61 = vcombine.high %v5561_v3, %v5561_v3  ;;  %v1027_v43 = vld [vmem:[#allocation9 + $0x220] sm:$0xff]  ;;  %v1037_v44 = vld [vmem:[#allocation9 + $0x270] sm:$0xff]  ;;  %vm3558_vm1 = vcmask 1046534   ;;  %p5180_p4 = por %p5179_p12, %p5178_p2 }
  0xb0   : > { %v555_v49 = vrot.slane %v536_v40, 7  ;;  %567 = vst [vmem:[#allocation2 + $0x18] sm:$0x1e] %v554_v41  ;;  %571 = vst [vmem:[#allocation2 + $0x30] sm:$0x1e] %v554_v41  ;;  %4484 = vmatprep.subr.mxu0 %v667_v42  ;;  %v535_v54 = vrot.slane %v3778_v45, %v5532_v46  ;;  %v992_v6 = vrot.slane %v5617_v60, 5  ;;  %v5688_v45 = vcombine.high %v5654_v27, %v5654_v27 }
  0xb1   : > { %4485 = vmatpush3.msra.mxu0 %v667_v42  ;;  %v553_v46 = vcombine.high %v545_v53, %v545_v53  ;;  %v557_v0 = vrot.slane %v545_v53, 7  ;;  %v559_v4 = vrot.slane %v552_v56, 7  ;;  %v996_v7 = vrot.slane %v5621_v61, 5  ;;  %v1012_v41 = vld [vmem:[#allocation9 + $0x1a8] sm:$0xff]  ;;  %p5181_p1 = pnand %p5180_p4, %p5174_p9 }
  0xb2   : > { %568 = vst [vmem:[#allocation2 + $0x20] sm:$0x1e] %v555_v49  ;;  %572 = vst [vmem:[#allocation2 + $0x38] sm:$0x1e] %v555_v49  ;;  %4486 = vmatprep.subr.mxu0 %v666_v50  ;;  %v556_v1 = vrot.slane %v535_v54, 7  ;;  %v5632_v13 = vsel %vm5597_vm8, %v3799_v57, %v992_v6  ;;  %v5683_v42 = vcombine.low %v590_v11, %v591_v15  ;;  %v1026_v57 = vld [vmem:[#allocation9 + $0x218] sm:$0xff] }
  0xb3   : > { %4487 = vmatpush3.msra.mxu0 %v666_v50  ;;  %v558_v10 = vrot.slane %v553_v46, 7  ;;  %574 = vst [vmem:[#allocation2 + $0x48] sm:$0x1e] %v557_v0  ;;  %577 = vst [vmem:[#allocation2 + $0x60] sm:$0x1e] %v557_v0  ;;  %v5636_v14 = vsel %vm5597_vm8, %v3800_v63, %v996_v7  ;;  %v1011_v50 = vld [vmem:[#allocation9 + $0x1a0] sm:$0xff]  ;;  %v5705_v54 = vcombine.high %v590_v11, %v591_v15 }
  0xb4   : > { %4488 = vmatprep.subr.mxu0 %v665_v58  ;;  %570 = vst.msk [vmem:[#allocation2 + $0x28] sm:$0x1e] %vm569_vm9, %v556_v1  ;;  %579 = vst.msk [vmem:[#allocation2 + $0x70] sm:$0x1e] %vm569_vm9, %v559_v4  ;;  %v5644_v18 = vcombine.low %v5632_v13, %v5636_v14  ;;  %v1010_v0 = vld [vmem:[#allocation9 + $0x198] sm:$0xff]  ;;  %v1035_v6 = vld [vmem:[#allocation9 + $0x260] sm:$0xff] }
  0xb5   : > { %573 = vst.msk [vmem:[#allocation2 + $0x40] sm:$0x1e] %vm569_vm9, %v556_v1  ;;  %576 = vst.msk [vmem:[#allocation2 + $0x58] sm:$0x1e] %vm569_vm9, %v559_v4  ;;  %4489 = vmatpush3.msra.mxu0 %v665_v58  ;;  %v1036_v58 = vld [vmem:[#allocation9 + $0x268] sm:$0xff]  ;;  %v3790_v7 = vrot.slane %v5654_v27, 9 }
  0xb6   : > { %575 = vst [vmem:[#allocation2 + $0x50] sm:$0x1e] %v558_v10  ;;  %578 = vst [vmem:[#allocation2 + $0x68] sm:$0x1e] %v558_v10  ;;  %4490 = vmatprep.subr.mxu0 %v664_v5  ;;  %v952_v10 = vrot.slane %v5688_v45, 5  ;;  %vm3561_vm2 = vcmask 1043459  }
  0xb7   : > { %v5638_v16 = vld [vmem:[#allocation2 + $0x18] sm:$0x3f]  ;;  %v5640_v17 = vld [vmem:[#allocation2 + $0x30] sm:$0x3f]  ;;  %4491 = vmatpush3.msra.mxu0 %v664_v5  ;;  %v1025_v5 = vld [vmem:[#allocation9 + $0x210] sm:$0xff]  ;;  %vm3563_vm3 = vcmask 1047559  }
  0xb8   : > { %v3783_v22 = vcombine.low %v590_v11, %v5638_v16  ;;  %4492 = vmatprep.subr.mxu0 %v663_v12  ;;  %v3806_v11 = vrot.slane %v5654_v27, 10  ;;  %vm3581_vm6 = vcmask 1044352   ;;  %vm3582_vm7 = vcmask 785412  }
  0xb9   : > { %v5648_v21 = vld [vmem:[#allocation2 + $0x20] sm:$0x3f]  ;;  %v5652_v24 = vld [vmem:[#allocation2 + $0x38] sm:$0x3f]  ;;  %4493 = vmatpush3.msra.mxu0 %v663_v12  ;;  %v1312_v12 = vrot.slane %v5688_v45, 6  ;;  %v3789_v45 = vrot.slane %v5683_v42, 9 }
  0xba   : > { %v3784_v23 = vcombine.low %v591_v15, %v5648_v21  ;;  %4494 = vmatprep.subr.mxu0 %v662_v19  ;;  %v5658_v31 = vld [vmem:[#allocation2 + $0x48] sm:$0x3f]  ;;  %v5692_v47 = vcombine.low %v5638_v16, %v5648_v21  ;;  %v5696_v49 = vcombine.high %v5638_v16, %v5648_v21  ;;  %v5709_v56 = vcombine.low %v5640_v17, %v5652_v24 }
  0xbb   : > { %4495 = vmatpush3.msra.mxu0 %v662_v19  ;;  %v5660_v32 = vld [vmem:[#allocation2 + $0x28] sm:$0x3f]  ;;  %v5670_v36 = vcombine.low %v5640_v17, %v5658_v31  ;;  %v5717_v46 = vcombine.high %v5640_v17, %v5652_v24  ;;  %vm3600_vm9 = vcmask 1044224   ;;  %vm3620_vm11 = vcmask 523268  }
  0xbc   : > { %849 = vmatprep.mubr.f32.mxu1 %v3784_v23  ;;  %v5662_v33 = vld [vmem:[#allocation2 + $0x40] sm:$0x3f]  ;;  %v5664_v34 = vld [vmem:[#allocation2 + $0x58] sm:$0x3f]  ;;  %4499 = vmatprep.subr.mxu0 %v1038_v25  ;;  %v772_v38 = vcombine.low %v5654_v27, %v5660_v32  ;;  %v5703_v53 = vcombine.high %v5660_v32, %v5660_v32  ;;  %v3791_v15 = vrot.slane %v5692_v47, 9  ;;  %v956_v19 = vrot.slane %v5696_v49, 5 }
  0xbd   : > { %850 = vmatmul.mubr.f32.vlgmr.msra.gmra.mxu1 %v3783_v22  ;;  %v5666_v35 = vld [vmem:[#allocation2 + $0x50] sm:$0x3f]  ;;  %v5676_v39 = vcombine.low %v5662_v33, %v5664_v34  ;;  %v5713_v63 = vcombine.high %v5662_v33, %v5662_v33  ;;  %v5721_v1 = vcombine.high %v5664_v34, %v5664_v34  ;;  %v1009_v22 = vld [vmem:[#allocation9 + $0x190] sm:$0xff]  ;;  %v3792_v23 = vrot.slane %v5660_v32, 9 }
  0xbe   : > { %3938 = vmatpush3.msra.mxu1 %v1014_v26  ;;  %v5680_v40 = vcombine.low %v5652_v24, %v5666_v35  ;;  %4496 = vmatprep.mubr.msk.f32.mxu0 %vm780_vm10, %v772_v38  ;;  %v1024_v26 = vld [vmem:[#allocation9 + $0x208] sm:$0xff]  ;;  %v3796_v38 = vrot.slane %v5664_v34, 9  ;;  %v3808_v4 = vrot.slane %v5660_v32, 10  ;;  %vm3597_vm12 = vcmask 785408  }
  0xbf   : > { %3939 = vmatprep.subr.mxu1 %v1029_v29  ;;  %4497 = vmatmul.mubr.msk.f32.vlgmr.msra.gmra.mxu0 %vm780_vm10, %v5676_v39  ;;  %v1034_v29 = vld [vmem:[#allocation9 + $0x258] sm:$0xff]  ;;  %v968_v27 = vrot.slane %v5713_v63, 5 }
  0xc0   : > { %3940 = vmatpush3.msra.mxu1 %v1013_v30  ;;  %854 = vmatprep.mubr.f32.mxu1 %v5680_v40  ;;  %v3794_v30 = vrot.slane %v5662_v33, 9 }
  0xc1   : > { %3941 = vmatprep.subr.mxu1 %v1028_v37  ;;  %855 = vmatmul.mubr.f32.gmra.mxu1 %v5670_v36  ;;  %v1008_v37 = vld [vmem:[#allocation9 + $0x188] sm:$0xff] }
  0xc2   : > { %3942 = vmatpush3.msra.mxu1 %v1012_v41  ;;  %4500 = vmatpush3.msra.mxu0 %v1038_v25  ;;  %v960_v25 = vrot.slane %v5703_v53, 5  ;;  %v976_v41 = vrot.slane %v5721_v1, 5  ;;  %v5765_v59 = vsel %vm5597_vm8, %v3794_v30, %v968_v27 }
  0xc3   : > { %3943 = vmatprep.subr.mxu1 %v1027_v43  ;;  %4501 = vmatprep.subr.mxu0 %v1037_v44  ;;  %v3793_v43 = vrot.slane %v5709_v56, 9 }
  0xc4   : > { %3944 = vmatpush3.msra.mxu1 %v1011_v50  ;;  %4502 = vmatpush3.msra.mxu0 %v1037_v44  ;;  %v964_v44 = vrot.slane %v5717_v46, 5  ;;  %v948_v50 = vrot.slane %v5705_v54, 5 }
  0xc5   : > { %3945 = vmatprep.subr.mxu1 %v1026_v57  ;;  %4503 = vmatprep.subr.mxu0 %v1036_v58  ;;  %v1023_v57 = vld [vmem:[#allocation9 + $0x200] sm:$0xff] }
  0xc6   : > { %3946 = vmatpush3.msra.mxu1 %v1010_v0  ;;  %4504 = vmatpush3.msra.mxu0 %v1036_v58  ;;  %v1033_v58 = vld [vmem:[#allocation9 + $0x250] sm:$0xff]  ;;  %v953_v0 = vsel %vm5597_vm8, %v3790_v7, %v952_v10  ;;  %v5760_v7 = vsel %vm5745_vm13, %v3806_v11, %v1312_v12  ;;  %v1320_v10 = vrot.slane %v5703_v53, 6  ;;  %v5772_v53 = vsel %vm5597_vm8, %v3796_v38, %v976_v41  ;;  %v1020_v41 = vld [vmem:[#allocation9 + $0x1e8] sm:$0xff] }
  0xc7   : > { %3947 = vmatprep.subr.mxu1 %v1025_v5  ;;  %4505 = vmatprep.subr.mxu0 %v1035_v6  ;;  %v5776_v11 = vsel %vm5597_vm8, %v3793_v43, %v964_v44  ;;  %v1005_v38 = vld [vmem:[#allocation9 + $0x170] sm:$0xff]  ;;  %v5800_v43 = vcombine.low %v5765_v59, %v5772_v53  ;;  %v5808_v44 = vcombine.low %v5658_v31, %v5666_v35 }
  0xc8   : > { %3948 = vmatpush3.msra.mxu1 %v1009_v22  ;;  %4506 = vmatpush3.msra.mxu0 %v1035_v6  ;;  %v5752_v22 = vsel %vm5597_vm8, %v3792_v23, %v960_v25  ;;  %v5756_v6 = vsel %vm5597_vm8, %v3791_v15, %v956_v19  ;;  %v3810_v23 = vrot.slane %v5662_v33, 10  ;;  %v1328_v25 = vrot.slane %v5713_v63, 6  ;;  %v1006_v19 = vld [vmem:[#allocation9 + $0x178] sm:$0xff]  ;;  %v1021_v63 = vld [vmem:[#allocation9 + $0x1f0] sm:$0xff] }
  0xc9   : > { %3949 = vmatprep.subr.mxu1 %v1024_v26  ;;  %4507 = vmatprep.subr.mxu0 %v1034_v29  ;;  %v1032_v26 = vld [vmem:[#allocation9 + $0x248] sm:$0xff]  ;;  %v3812_v15 = vrot.slane %v5664_v34, 10  ;;  %v5780_v12 = vsel %vm5745_vm13, %v3808_v4, %v1320_v10  ;;  %v1031_v34 = vld [vmem:[#allocation9 + $0x240] sm:$0xff]  ;;  %v1041_v4 = vcombine.low %v953_v0, %v5752_v22  ;;  %v949_v0 = vsel %vm5597_vm8, %v3789_v45, %v948_v50  ;;  %v1002_v45 = vld [vmem:[#allocation9 + $0x158] sm:$0xff] }
  0xca   : > { %3950 = vmatpush3.msra.mxu1 %v1008_v37  ;;  %4508 = vmatpush3.msra.mxu0 %v1034_v29  ;;  %v1336_v29 = vrot.slane %v5721_v1, 6  ;;  %v1397_v30 = vcombine.low %v5760_v7, %v5780_v12  ;;  %v5787_v27 = vsel %vm5745_vm13, %v3810_v23, %v1328_v25  ;;  %v2026_v37 = vcombine.high %v5756_v6, %v5776_v11  ;;  %v1019_v10 = vld [vmem:[#allocation9 + $0x1e0] sm:$0xff]  ;;  %v1018_v25 = vld [vmem:[#allocation9 + $0x1d8] sm:$0xff]  ;;  %v1568_v7 = vld [vmem:[#allocation10 + $0x110] sm:$0xff] }
  0xcb   : > { %3951 = vmatprep.subr.mxu1 %v1023_v57  ;;  %4509 = vmatprep.subr.mxu0 %v1033_v58  ;;  %v5812_v57 = vcombine.high %v5658_v31, %v5666_v35  ;;  %v1003_v23 = vld [vmem:[#allocation9 + $0x160] sm:$0xff]  ;;  %v3795_v50 = vrot.slane %v5808_v44, 9 }
  0xcc   : > { %3952 = vmatpush3.msra.mxu1 %v1007_v20  ;;  %4510 = vmatpush3.msra.mxu0 %v1033_v58  ;;  %v5794_v20 = vsel %vm5745_vm13, %v3812_v15, %v1336_v29  ;;  %v1004_v58 = vld [vmem:[#allocation9 + $0x168] sm:$0xff]  ;;  %v1218_v15 = vld [vmem:[#allocation10 + $0xd0] sm:$0xff]  ;;  %v1015_v1 = vld [vmem:[#allocation9 + $0x1c0] sm:$0xff] }
  0xcd   : > { %3953 = vmatprep.subr.mxu1 %v1022_v28  ;;  %4511 = vmatprep.subr.mxu0 %v1032_v26  ;;  %v5804_v28 = vcombine.low %v5787_v27, %v5794_v20 }
  0xce   : > { %3954 = vmatpush3.msra.mxu1 %v1006_v19  ;;  %4512 = vmatpush3.msra.mxu0 %v1032_v26  ;;  %v1219_v26 = vld [vmem:[#allocation10 + $0xd8] sm:$0xff]  ;;  %v1040_v19 = vcombine.high %v949_v0, %v5756_v6 }
  0xcf   : > { %3955 = vmatprep.subr.mxu1 %v1021_v63  ;;  %4513 = vmatprep.subr.mxu0 %v1031_v34  ;;  %v972_v63 = vrot.slane %v5812_v57, 5 }
  0xd0   : > { %3956 = vmatpush3.msra.mxu1 %v1005_v38  ;;  %4514 = vmatpush3.msra.mxu0 %v1031_v34  ;;  %v1017_v34 = vld [vmem:[#allocation9 + $0x1d0] sm:$0xff] }
  0xd1   : > { %3957 = vmatprep.subr.mxu1 %v1020_v41  ;;  %4515 = vmatprep.mubr.msk.f32.mxu0 %vm780_vm10, %v1041_v4  ;;  %v1001_v38 = vld [vmem:[#allocation9 + $0x150] sm:$0xff]  ;;  %v1217_v4 = vld [vmem:[#allocation10 + $0xc8] sm:$0xff]  ;;  %v5826_v29 = vsel %vm5597_vm8, %v3795_v50, %v972_v63 }
  0xd2   : > { %3958 = vmatpush3.msra.mxu1 %v1004_v58  ;;  %4516 = vmatmul.mubr.msk.f32.vlgmr.msra.gmra.mxu0 %vm780_vm10, %v5800_v43  ;;  %v1016_v41 = vld [vmem:[#allocation9 + $0x1c8] sm:$0xff]  ;;  %v1385_v50 = vld [vmem:[#allocation9 + $0x370] sm:$0xff] }
  0xd3   : > { %3959 = vmatprep.subr.mxu1 %v1019_v10  ;;  %4518 = vmatprep.subr.mxu0 %v1219_v26  ;;  %v1000_v58 = vld [vmem:[#allocation9 + $0x148] sm:$0xff]  ;;  %v1216_v10 = vld [vmem:[#allocation10 + $0xc0] sm:$0xff]  ;;  %v1369_v63 = vld [vmem:[#allocation9 + $0x2f0] sm:$0xff] }
  0xd4   : > { %3960 = vmatpush3.msra.mxu1 %v1003_v23  ;;  %4519 = vmatpush3.msra.mxu0 %v1219_v26  ;;  %v999_v26 = vld [vmem:[#allocation9 + $0x140] sm:$0xff]  ;;  %v1039_v23 = vcombine.low %v949_v0, %v5756_v6  ;;  %v5835_v0 = vcombine.low %v5776_v11, %v5826_v29 }
  0xd5   : > { %3961 = vmatprep.subr.mxu1 %v1018_v25  ;;  %4520 = vmatprep.subr.mxu0 %v1218_v15  ;;  %v1215_v25 = vld [vmem:[#allocation10 + $0xb8] sm:$0xff] }
  0xd6   : > { %3962 = vmatpush3.msra.mxu1 %v1002_v45  ;;  %1117 = vmatprep.mubr.f32.mxu1 %v1040_v19  ;;  %v1386_v45 = vld [vmem:[#allocation9 + $0x378] sm:$0xff] }
  0xd7   : > { %3963 = vmatprep.subr.mxu1 %v1017_v34  ;;  %4521 = vmatpush3.msra.mxu0 %v1218_v15  ;;  %v5831_v15 = vcombine.high %v5776_v11, %v5826_v29  ;;  %v1370_v19 = vld [vmem:[#allocation9 + $0x2f8] sm:$0xff]  ;;  %v1214_v34 = vld [vmem:[#allocation10 + $0xb0] sm:$0xff] }
  0xd8   : > { %3964 = vmatpush3.msra.mxu1 %v1001_v38  ;;  %4522 = vmatprep.subr.mxu0 %v1217_v4  ;;  %v1384_v38 = vld [vmem:[#allocation9 + $0x368] sm:$0xff] }
  0xd9   : > { %3965 = vmatprep.subr.mxu1 %v1016_v41  ;;  %4523 = vmatpush3.msra.mxu0 %v1217_v4  ;;  %v1383_v4 = vld [vmem:[#allocation9 + $0x360] sm:$0xff]  ;;  %v1213_v41 = vld [vmem:[#allocation10 + $0xa8] sm:$0xff] }
  0xda   : > { %3966 = vmatpush3.msra.mxu1 %v1000_v58  ;;  %4524 = vmatprep.subr.mxu0 %v1216_v10  ;;  %v1367_v58 = vld [vmem:[#allocation9 + $0x2e0] sm:$0xff] }
  0xdb   : > { %3967 = vmatprep.subr.mxu1 %v1015_v1  ;;  %4525 = vmatpush3.msra.mxu0 %v1216_v10  ;;  %v1368_v1 = vld [vmem:[#allocation9 + $0x2e8] sm:$0xff]  ;;  %v1382_v10 = vld [vmem:[#allocation9 + $0x358] sm:$0xff] }
  0xdc   : > { %3968 = vmatpush3.msra.mxu1 %v999_v26  ;;  %4526 = vmatprep.subr.mxu0 %v1215_v25  ;;  %v1212_v26 = vld [vmem:[#allocation10 + $0xa0] sm:$0xff] }
  0xdd   : > { %1118 = vmatmul.mubr.f32.vlgmr.msra.gmra.mxu1 %v1039_v23  ;;  %4001 = vmatprep.subr.mxu1 %v1386_v45  ;;  %v1366_v45 = vld [vmem:[#allocation9 + $0x2d8] sm:$0xff]  ;;  %v1208_v23 = vld [vmem:[#allocation10 + $0x80] sm:$0xff] }
  0xde   : > { %4002 = vmatpush3.msra.mxu1 %v1370_v19  ;;  %1122 = vmatprep.mubr.f32.mxu1 %v5831_v15  ;;  %v1211_v19 = vld [vmem:[#allocation10 + $0x98] sm:$0xff] }
  0xdf   : > { %4003 = vmatprep.subr.mxu1 %v1385_v50  ;;  %4527 = vmatpush3.msra.mxu0 %v1215_v25  ;;  %v1381_v25 = vld [vmem:[#allocation9 + $0x350] sm:$0xff] }
  0xe0   : > { %4004 = vmatpush3.msra.mxu1 %v1369_v63  ;;  %4528 = vmatprep.subr.mxu0 %v1214_v34  ;;  %v1365_v50 = vld [vmem:[#allocation9 + $0x2d0] sm:$0xff]  ;;  %v2206_v63 = vcombine.low %v5607_v52, %v5632_v13  ;;  %v2313_v13 = vld [vmem:[#allocation9 + $0x698] sm:$0xff] }
  0xe1   : > { %1123 = vmatmul.mubr.f32.gmra.mxu1 %v5835_v0  ;;  %4005 = vmatprep.subr.mxu1 %v1384_v38  ;;  %v1210_v38 = vld [vmem:[#allocation10 + $0x90] sm:$0xff] }
  0xe2   : > { %4006 = vmatpush3.msra.mxu1 %v1368_v1  ;;  %4529 = vmatpush3.msra.mxu0 %v1214_v34  ;;  %v1380_v34 = vld [vmem:[#allocation9 + $0x348] sm:$0xff] }
  0xe3   : > { %4007 = vmatprep.subr.mxu1 %v1383_v4  ;;  %4530 = vmatprep.subr.mxu0 %v1213_v41  ;;  %v1364_v1 = vld [vmem:[#allocation9 + $0x2c8] sm:$0xff]  ;;  %v1379_v4 = vld [vmem:[#allocation9 + $0x340] sm:$0xff] }
  0xe4   : > { %4008 = vmatpush3.msra.mxu1 %v1367_v58  ;;  %4531 = vmatpush3.msra.mxu0 %v1213_v41  ;;  %v1209_v58 = vld [vmem:[#allocation10 + $0x88] sm:$0xff]  ;;  %v1363_v41 = vld [vmem:[#allocation9 + $0x2c0] sm:$0xff] }
  0xe5   : > { %4009 = vmatprep.subr.mxu1 %v1382_v10  ;;  %4532 = vmatprep.subr.mxu0 %v1212_v26  ;;  %v1378_v10 = vld [vmem:[#allocation9 + $0x338] sm:$0xff] }
  0xe6   : > { %4010 = vmatpush3.msra.mxu1 %v1366_v45  ;;  %4533 = vmatpush3.msra.mxu0 %v1212_v26  ;;  %v1362_v45 = vld [vmem:[#allocation9 + $0x2b8] sm:$0xff]  ;;  %v1377_v26 = vld [vmem:[#allocation9 + $0x330] sm:$0xff] }
  0xe7   : > { %4011 = vmatprep.subr.mxu1 %v1381_v25  ;;  %4534 = vmatprep.subr.mxu0 %v1211_v19  ;;  %v1207_v25 = vld [vmem:[#allocation10 + $0x78] sm:$0xff] }
  0xe8   : > { %4012 = vmatpush3.msra.mxu1 %v1365_v50  ;;  %4535 = vmatpush3.msra.mxu0 %v1211_v19  ;;  %v1361_v50 = vld [vmem:[#allocation9 + $0x2b0] sm:$0xff]  ;;  %v1376_v19 = vld [vmem:[#allocation9 + $0x328] sm:$0xff] }
  0xe9   : > { %4013 = vmatprep.subr.mxu1 %v1380_v34  ;;  %4536 = vmatprep.subr.mxu0 %v1210_v38  ;;  %v1206_v34 = vld [vmem:[#allocation10 + $0x70] sm:$0xff] }
  0xea   : > { %4014 = vmatpush3.msra.mxu1 %v1364_v1  ;;  %4537 = vmatpush3.msra.mxu0 %v1210_v38  ;;  %v1360_v1 = vld [vmem:[#allocation9 + $0x2a8] sm:$0xff]  ;;  %v1375_v38 = vld [vmem:[#allocation9 + $0x320] sm:$0xff] }
  0xeb   : > { %4015 = vmatprep.subr.mxu1 %v1379_v4  ;;  %4538 = vmatprep.subr.mxu0 %v1209_v58  ;;  %v3805_v4 = vrot.slane %v5683_v42, 10  ;;  %v1358_v42 = vld [vmem:[#allocation9 + $0x298] sm:$0xff] }
  0xec   : > { %4016 = vmatpush3.msra.mxu1 %v1363_v41  ;;  %4539 = vmatpush3.msra.mxu0 %v1209_v58  ;;  %v1308_v41 = vrot.slane %v5705_v54, 6  ;;  %v3807_v58 = vrot.slane %v5692_v47, 10  ;;  %v1373_v47 = vld [vmem:[#allocation9 + $0x310] sm:$0xff] }
  0xed   : > { %4017 = vmatprep.subr.mxu1 %v1378_v10  ;;  %4540 = vmatprep.subr.mxu0 %v1208_v23  ;;  %v1316_v10 = vrot.slane %v5696_v49, 6  ;;  %v1393_v49 = vld [vmem:[#allocation9 + $0x3b0] sm:$0xff] }
  0xee   : > { %4018 = vmatpush3.msra.mxu1 %v1362_v45  ;;  %4541 = vmatpush3.msra.mxu0 %v1208_v23  ;;  %v1359_v45 = vld [vmem:[#allocation9 + $0x2a0] sm:$0xff]  ;;  %v1374_v23 = vld [vmem:[#allocation9 + $0x318] sm:$0xff]  ;;  %v1357_v54 = vld [vmem:[#allocation9 + $0x290] sm:$0xff] }
  0xef   : > { %4019 = vmatprep.subr.mxu1 %v1377_v26  ;;  %4542 = vmatprep.subr.mxu0 %v1207_v25  ;;  %v1394_v26 = vld [vmem:[#allocation9 + $0x3b8] sm:$0xff] }
  0xf0   : > { %4020 = vmatpush3.msra.mxu1 %v1361_v50  ;;  %4543 = vmatpush3.msra.mxu0 %v1207_v25  ;;  %v6250_v25 = vcombine.low %v5603_v51, %v5607_v52  ;;  %v1309_v50 = vsel %vm5745_vm13, %v3805_v4, %v1308_v41  ;;  %v3809_v51 = vrot.slane %v5709_v56, 10  ;;  %v1356_v4 = vld [vmem:[#allocation9 + $0x288] sm:$0xff]  ;;  %v1371_v41 = vld [vmem:[#allocation9 + $0x300] sm:$0xff] }
  0xf1   : > { %4021 = vmatprep.subr.mxu1 %v1376_v19  ;;  %4544 = vmatprep.subr.mxu0 %v1206_v34  ;;  %v5857_v19 = vsel %vm5745_vm13, %v3807_v58, %v1316_v10  ;;  %v1391_v56 = vld [vmem:[#allocation9 + $0x3a0] sm:$0xff] }
  0xf2   : > { %4022 = vmatpush3.msra.mxu1 %v1360_v1  ;;  %4545 = vmatpush3.msra.mxu0 %v1206_v34  ;;  %v1372_v34 = vld [vmem:[#allocation9 + $0x308] sm:$0xff]  ;;  %v1396_v58 = vcombine.high %v1309_v50, %v5857_v19  ;;  %v1355_v10 = vld [vmem:[#allocation9 + $0x280] sm:$0xff] }
  0xf3   : > { %4023 = vmatprep.subr.mxu1 %v1375_v38  ;;  %4546 = vmatprep.mubr.msk.f32.mxu0 %vm690_vm5, %v6250_v25  ;;  %v1392_v1 = vld [vmem:[#allocation9 + $0x3a8] sm:$0xff]  ;;  %v1324_v38 = vrot.slane %v5717_v46, 6  ;;  %v2344_v25 = vcombine.low %v5780_v12, %v5787_v27  ;;  %v1395_v46 = vcombine.low %v1309_v50, %v5857_v19  ;;  %v2338_v52 = vld [vmem:[#allocation9 + $0x760] sm:$0xff]  ;;  %v2305_v27 = vld [vmem:[#allocation9 + $0x658] sm:$0xff] }
  0xf4   : > { %4024 = vmatpush3.msra.mxu1 %v1359_v45  ;;  %4547 = vmatmul.mubr.msk.f32.vlgmr.msra.gmra.mxu0 %vm690_vm5, %v5644_v18  ;;  %v3811_v45 = vrot.slane %v5808_v44, 10  ;;  %v2624_v12 = vld [vmem:[#allocation9 + $0x7e8] sm:$0xff] }
  0xf5   : > { %4025 = vmatprep.subr.mxu1 %v1374_v23  ;;  %4549 = vmatprep.subr.mxu0 %v1394_v26  ;;  %v1332_v23 = vrot.slane %v5812_v57, 6  ;;  %v5869_v44 = vsel %vm5745_vm13, %v3809_v51, %v1324_v38  ;;  %v1388_v51 = vld [vmem:[#allocation9 + $0x388] sm:$0xff]  ;;  %v1572_v38 = vld [vmem:[#allocation10 + $0x130] sm:$0xff] }
  0xf6   : > { %4026 = vmatpush3.msra.mxu1 %v1358_v42  ;;  %4550 = vmatpush3.msra.mxu0 %v1394_v26  ;;  %v1390_v26 = vld [vmem:[#allocation9 + $0x398] sm:$0xff]  ;;  %v1575_v42 = vld [vmem:[#allocation10 + $0x148] sm:$0xff] }
  0xf7   : > { %4027 = vmatprep.subr.mxu1 %v1373_v47  ;;  %4551 = vmatprep.subr.mxu0 %v1393_v49  ;;  %v5873_v57 = vsel %vm5745_vm13, %v3811_v45, %v1332_v23  ;;  %v1389_v47 = vld [vmem:[#allocation9 + $0x390] sm:$0xff]  ;;  %v1571_v45 = vld [vmem:[#allocation10 + $0x128] sm:$0xff]  ;;  %v1695_v23 = vld [vmem:[#allocation9 + $0x4b8] sm:$0xff] }
  0xf8   : > { %4028 = vmatpush3.msra.mxu1 %v1357_v54  ;;  %4552 = vmatpush3.msra.mxu0 %v1393_v49  ;;  %v1574_v49 = vld [vmem:[#allocation10 + $0x140] sm:$0xff]  ;;  %v5877_v54 = vcombine.high %v5869_v44, %v5873_v57  ;;  %v5881_v50 = vcombine.low %v5869_v44, %v5873_v57 }
  0xf9   : > { %4029 = vmatprep.subr.mxu1 %v1372_v34  ;;  %4553 = vmatprep.subr.mxu0 %v1392_v1  ;;  %v1573_v34 = vld [vmem:[#allocation10 + $0x138] sm:$0xff] }
  0xfa   : > { %4030 = vmatpush3.msra.mxu1 %v1356_v4  ;;  %4554 = vmatpush3.msra.mxu0 %v1392_v1  ;;  %v1387_v1 = vld [vmem:[#allocation9 + $0x380] sm:$0xff]  ;;  %v1679_v4 = vld [vmem:[#allocation9 + $0x438] sm:$0xff] }
  0xfb   : > { %4031 = vmatprep.subr.mxu1 %v1371_v41  ;;  %4555 = vmatprep.subr.mxu0 %v1391_v56  ;;  %v1570_v41 = vld [vmem:[#allocation10 + $0x120] sm:$0xff] }
  0xfc   : > { %4032 = vmatpush3.msra.mxu1 %v1355_v10  ;;  %1473 = vmatprep.mubr.f32.mxu1 %v1396_v58  ;;  %v1678_v58 = vld [vmem:[#allocation9 + $0x430] sm:$0xff]  ;;  %v1569_v10 = vld [vmem:[#allocation10 + $0x118] sm:$0xff] }
  0xfd   : > { %4556 = vmatpush3.msra.mxu0 %v1391_v56  ;;  %1474 = vmatmul.mubr.f32.vlgmr.msra.gmra.mxu1 %v1395_v46  ;;  %v1694_v56 = vld [vmem:[#allocation9 + $0x4b0] sm:$0xff]  ;;  %v1693_v46 = vld [vmem:[#allocation9 + $0x4a8] sm:$0xff] }
  0xfe   : > { %4557 = vmatprep.subr.mxu0 %v1390_v26  ;;  %4568 = vmatprep.subr.mxu1 %v1575_v42 }
  0xff   : > { %4558 = vmatpush3.msra.mxu0 %v1390_v26  ;;  %4569 = vmatpush3.msra.mxu1 %v1575_v42  ;;  %v1677_v26 = vld [vmem:[#allocation9 + $0x428] sm:$0xff]  ;;  %v1676_v42 = vld [vmem:[#allocation9 + $0x420] sm:$0xff] }
 0x100   : > { %4559 = vmatprep.subr.mxu0 %v1389_v47  ;;  %4570 = vmatprep.subr.mxu1 %v1574_v49 }
 0x101   : > { %1478 = vmatprep.mubr.f32.mxu1 %v5877_v54  ;;  %4560 = vmatpush3.msra.mxu0 %v1389_v47  ;;  %v1567_v47 = vld [vmem:[#allocation10 + $0x108] sm:$0xff] }
 0x102   : > { %4571 = vmatpush3.msra.mxu1 %v1574_v49  ;;  %4561 = vmatprep.subr.mxu0 %v1388_v51  ;;  %v1691_v49 = vld [vmem:[#allocation9 + $0x498] sm:$0xff] }
 0x103   : > { %1479 = vmatmul.mubr.f32.gmra.mxu1 %v5881_v50  ;;  %4572 = vmatprep.subr.mxu1 %v1573_v34 }
 0x104   : > { %4562 = vmatpush3.msra.mxu0 %v1388_v51  ;;  %4573 = vmatpush3.msra.mxu1 %v1573_v34  ;;  %v1675_v51 = vld [vmem:[#allocation9 + $0x418] sm:$0xff]  ;;  %v1566_v34 = vld [vmem:[#allocation10 + $0x100] sm:$0xff] }
 0x105   : > { %4563 = vmatprep.subr.mxu0 %v1387_v1  ;;  %4574 = vmatprep.subr.mxu1 %v1572_v38 }
 0x106   : > { %4564 = vmatpush3.msra.mxu0 %v1387_v1  ;;  %4565 = vmatprep.mubr.msk.f32.mxu0 %vm780_vm10, %v1397_v30  ;;  %v1692_v30 = vld [vmem:[#allocation9 + $0x4a0] sm:$0xff]  ;;  %v1690_v1 = vld [vmem:[#allocation9 + $0x490] sm:$0xff] }
 0x107   : > { %4575 = vmatpush3.msra.mxu1 %v1572_v38  ;;  %4566 = vmatmul.mubr.msk.f32.vlgmr.msra.gmra.mxu0 %vm780_vm10, %v5804_v28  ;;  %v5033_v38 = vld [vmem:[#allocation3] sm:$0x3f] }
 0x108   : > { %4576 = vmatprep.subr.mxu1 %v1571_v45  ;;  %4065 = vmatprep.subr.mxu0 %v1695_v23  ;;  %v1340_v23 = vrot.slane %v5553_v62, 6  ;;  %v1673_v62 = vld [vmem:[#allocation9 + $0x408] sm:$0xff] }
 0x109   : > { %4577 = vmatpush3.msra.mxu1 %v1571_v45  ;;  %4066 = vmatpush3.msra.mxu0 %v1679_v4  ;;  %v3813_v45 = vrot.slane %v5033_v38, 10  ;;  %v1674_v4 = vld [vmem:[#allocation9 + $0x410] sm:$0xff]  ;;  %v1688_v38 = vld [vmem:[#allocation9 + $0x480] sm:$0xff] }
 0x10a   : > { %4578 = vmatprep.subr.mxu1 %v1570_v41  ;;  %4067 = vmatprep.subr.mxu0 %v1694_v56 }
 0x10b   : > { %4579 = vmatpush3.msra.mxu1 %v1570_v41  ;;  %4068 = vmatpush3.msra.mxu0 %v1678_v58  ;;  %v5034_v41 = vld [vmem:[#allocation3 + $0x8] sm:$0x3f]  ;;  %v1344_v58 = vrot.slane %v5566_v8, 6 }
 0x10c   : > { %4580 = vmatprep.subr.mxu1 %v1569_v10  ;;  %4069 = vmatprep.subr.mxu0 %v1693_v46  ;;  %v3814_v56 = vrot.slane %v5034_v41, 10  ;;  %v3816_v46 = vrot.slane %v5561_v3, 10  ;;  %v1672_v8 = vld [vmem:[#allocation9 + $0x400] sm:$0xff]  ;;  %v1341_v3 = vsel %vm5745_vm13, %v3813_v45, %v1340_v23  ;;  %v1686_v23 = vld [vmem:[#allocation9 + $0x470] sm:$0xff] }
 0x10d   : > { %4581 = vmatpush3.msra.mxu1 %v1569_v10  ;;  %4070 = vmatpush3.msra.mxu0 %v1677_v26  ;;  %v3815_v10 = vrot.slane %v5559_v2, 10  ;;  %v1348_v26 = vrot.slane %v5617_v60, 6  ;;  %v1562_v45 = vld [vmem:[#allocation10 + $0xe0] sm:$0xff] }
 0x10e   : > { %4582 = vmatprep.subr.mxu1 %v1568_v7  ;;  %4071 = vmatprep.subr.mxu0 %v1692_v30  ;;  %v1565_v30 = vld [vmem:[#allocation10 + $0xf8] sm:$0xff]  ;;  %v5901_v60 = vsel %vm5745_vm13, %v3814_v56, %v1344_v58  ;;  %v1670_v56 = vld [vmem:[#allocation9 + $0x3f0] sm:$0xff]  ;;  %v1685_v58 = vld [vmem:[#allocation9 + $0x468] sm:$0xff] }
 0x10f   : > { %4583 = vmatpush3.msra.mxu1 %v1568_v7  ;;  %4072 = vmatpush3.msra.mxu0 %v1676_v42  ;;  %v1352_v7 = vrot.slane %v5621_v61, 6  ;;  %v1689_v42 = vld [vmem:[#allocation9 + $0x488] sm:$0xff] }
 0x110   : > { %4584 = vmatprep.subr.mxu1 %v1567_v47  ;;  %4073 = vmatprep.subr.mxu0 %v1691_v49  ;;  %v1564_v49 = vld [vmem:[#allocation10 + $0xf0] sm:$0xff]  ;;  %v1563_v61 = vld [vmem:[#allocation10 + $0xe8] sm:$0xff] }
 0x111   : > { %4585 = vmatpush3.msra.mxu1 %v1567_v47  ;;  %4074 = vmatpush3.msra.mxu0 %v1675_v51  ;;  %v1687_v47 = vld [vmem:[#allocation9 + $0x478] sm:$0xff]  ;;  %v5905_v51 = vsel %vm5745_vm13, %v3815_v10, %v1348_v26  ;;  %v1669_v10 = vld [vmem:[#allocation9 + $0x3e8] sm:$0xff]  ;;  %v1684_v26 = vld [vmem:[#allocation9 + $0x460] sm:$0xff] }
 0x112   : > { %4586 = vmatprep.subr.mxu1 %v1566_v34  ;;  %4075 = vmatprep.subr.mxu0 %v1690_v1  ;;  %v1671_v1 = vld [vmem:[#allocation9 + $0x3f8] sm:$0xff] }
 0x113   : > { %4587 = vmatpush3.msra.mxu1 %v1566_v34  ;;  %4076 = vmatpush3.msra.mxu0 %v1674_v4  ;;  %v5909_v34 = vsel %vm5745_vm13, %v3816_v46, %v1352_v7  ;;  %v1576_v4 = vcombine.low %v1341_v3, %v5901_v60  ;;  %v2016_v46 = vld [vmem:[#allocation9 + $0x5f8] sm:$0xff]  ;;  %v2014_v3 = vld [vmem:[#allocation9 + $0x5e8] sm:$0xff] }
 0x114   : > { %4588 = vmatprep.subr.mxu1 %v1565_v30  ;;  %4077 = vmatprep.subr.mxu0 %v1689_v42  ;;  %v5914_v41 = vcombine.low %v5905_v51, %v5909_v34  ;;  %v2000_v7 = vld [vmem:[#allocation9 + $0x578] sm:$0xff]  ;;  %v6251_v42 = vcombine.low %v5648_v21, %v5652_v24  ;;  %v1681_v21 = vld [vmem:[#allocation9 + $0x448] sm:$0xff]  ;;  %v1997_v24 = vld [vmem:[#allocation9 + $0x560] sm:$0xff] }
 0x115   : > { %4589 = vmatpush3.msra.mxu1 %v1565_v30  ;;  %4078 = vmatpush3.msra.mxu0 %v1673_v62  ;;  %v1668_v30 = vld [vmem:[#allocation9 + $0x3e0] sm:$0xff]  ;;  %v2015_v62 = vld [vmem:[#allocation9 + $0x5f0] sm:$0xff] }
 0x116   : > { %4590 = vmatprep.subr.mxu1 %v1564_v49  ;;  %4079 = vmatprep.subr.mxu0 %v1688_v38  ;;  %v1999_v38 = vld [vmem:[#allocation9 + $0x570] sm:$0xff] }
 0x117   : > { %4591 = vmatpush3.msra.mxu1 %v1564_v49  ;;  %4080 = vmatpush3.msra.mxu0 %v1672_v8  ;;  %v1683_v49 = vld [vmem:[#allocation9 + $0x458] sm:$0xff] }
 0x118   : > { %4592 = vmatprep.subr.mxu1 %v1563_v61  ;;  %4081 = vmatprep.subr.mxu0 %v1687_v47  ;;  %v1667_v8 = vld [vmem:[#allocation9 + $0x3d8] sm:$0xff]  ;;  %v1998_v47 = vld [vmem:[#allocation9 + $0x568] sm:$0xff] }
 0x119   : > { %4593 = vmatpush3.msra.mxu1 %v1563_v61  ;;  %4082 = vmatpush3.msra.mxu0 %v1671_v1  ;;  %v1682_v61 = vld [vmem:[#allocation9 + $0x450] sm:$0xff] }
 0x11a   : > { %4594 = vmatprep.subr.mxu1 %v1562_v45  ;;  %4083 = vmatprep.subr.mxu0 %v1686_v23  ;;  %v1666_v1 = vld [vmem:[#allocation9 + $0x3d0] sm:$0xff]  ;;  %v1665_v23 = vld [vmem:[#allocation9 + $0x3c8] sm:$0xff] }
 0x11b   : > { %4595 = vmatpush3.msra.mxu1 %v1562_v45  ;;  %4596 = vmatprep.mubr.msk.f32.mxu1 %vm690_vm5, %v1576_v4  ;;  %v2013_v45 = vld [vmem:[#allocation9 + $0x5e0] sm:$0xff]  ;;  %v5922_v4 = vld [vmem:[#allocation2 + $0x68] sm:$0x3f] }
 0x11c   : > { %4084 = vmatpush3.msra.mxu0 %v1670_v56  ;;  %4597 = vmatmul.mubr.msk.f32.vlgmr.msra.gmra.mxu1 %vm690_vm5, %v5914_v41  ;;  %v2012_v56 = vld [vmem:[#allocation9 + $0x5d8] sm:$0xff] }
 0x11d   : > { %4085 = vmatprep.subr.mxu0 %v1685_v58  ;;  %1782 = vmatprep.mubr.f32.mxu0 %v6251_v42  ;;  %v1680_v58 = vld [vmem:[#allocation9 + $0x440] sm:$0xff]  ;;  %v5926_v42 = vld [vmem:[#allocation2 + $0x60] sm:$0x3f] }
 0x11e   : > { %4086 = vmatpush3.msra.mxu0 %v1669_v10  ;;  %4129 = vmatprep.subr.mxu1 %v2016_v46  ;;  %v1996_v10 = vld [vmem:[#allocation9 + $0x558] sm:$0xff]  ;;  %v1664_v46 = vld [vmem:[#allocation9 + $0x3c0] sm:$0xff] }
 0x11f   : > { %4087 = vmatprep.subr.mxu0 %v1684_v26  ;;  %4130 = vmatpush3.msra.mxu1 %v2000_v7  ;;  %v2011_v26 = vld [vmem:[#allocation9 + $0x5d0] sm:$0xff]  ;;  %v1703_v7 = vld [vmem:[#allocation9 + $0x4f8] sm:$0xff] }
 0x120   : > { %4088 = vmatpush3.msra.mxu0 %v1668_v30  ;;  %4131 = vmatprep.subr.mxu1 %v2015_v62  ;;  %v3824_v30 = vcombine.low %v5666_v35, %v5922_v4  ;;  %v1702_v62 = vld [vmem:[#allocation9 + $0x4f0] sm:$0xff]  ;;  %v1701_v35 = vld [vmem:[#allocation9 + $0x4e8] sm:$0xff] }
 0x121   : > { %4089 = vmatprep.subr.mxu0 %v1683_v49  ;;  %4132 = vmatpush3.msra.mxu1 %v1999_v38  ;;  %v1995_v49 = vld [vmem:[#allocation9 + $0x550] sm:$0xff]  ;;  %v6252_v38 = vcombine.low %v5638_v16, %v5640_v17  ;;  %v1699_v16 = vld [vmem:[#allocation9 + $0x4d8] sm:$0xff]  ;;  %v6253_v17 = vcombine.low %v5660_v32, %v5662_v33  ;;  %v2006_v32 = vld [vmem:[#allocation9 + $0x5a8] sm:$0xff] }
 0x122   : > { %4090 = vmatpush3.msra.mxu0 %v1667_v8  ;;  %4133 = vmatprep.subr.mxu1 %v2014_v3  ;;  %v3823_v8 = vcombine.low %v5658_v31, %v5926_v42  ;;  %v2010_v3 = vld [vmem:[#allocation9 + $0x5c8] sm:$0xff]  ;;  %v1993_v31 = vld [vmem:[#allocation9 + $0x540] sm:$0xff] }
 0x123   : > { %4091 = vmatprep.subr.mxu0 %v1682_v61  ;;  %4134 = vmatpush3.msra.mxu1 %v1998_v47  ;;  %v1700_v61 = vld [vmem:[#allocation9 + $0x4e0] sm:$0xff]  ;;  %v1994_v47 = vld [vmem:[#allocation9 + $0x548] sm:$0xff] }
 0x124   : > { %4092 = vmatpush3.msra.mxu0 %v1666_v1  ;;  %4135 = vmatprep.subr.mxu1 %v2013_v45  ;;  %v2009_v1 = vld [vmem:[#allocation9 + $0x5c0] sm:$0xff]  ;;  %v2008_v45 = vld [vmem:[#allocation9 + $0x5b8] sm:$0xff] }
 0x125   : > { %4093 = vmatprep.subr.mxu0 %v1681_v21  ;;  %4136 = vmatpush3.msra.mxu1 %v1997_v24  ;;  %v1698_v21 = vld [vmem:[#allocation9 + $0x4d0] sm:$0xff]  ;;  %v1992_v24 = vld [vmem:[#allocation9 + $0x538] sm:$0xff]  ;;  %v1696_v33 = vld [vmem:[#allocation9 + $0x4c0] sm:$0xff] }
 0x126   : > { %4094 = vmatpush3.msra.mxu0 %v1665_v23  ;;  %4137 = vmatprep.subr.mxu1 %v2012_v56  ;;  %v2007_v23 = vld [vmem:[#allocation9 + $0x5b0] sm:$0xff]  ;;  %v1697_v56 = vld [vmem:[#allocation9 + $0x4c8] sm:$0xff] }
 0x127   : > { %4095 = vmatprep.subr.mxu0 %v1680_v58  ;;  %4138 = vmatpush3.msra.mxu1 %v1996_v10  ;;  %v5937_v58 = vld [vmem:[#allocation2 + $0x70] sm:$0x3f]  ;;  %v1991_v10 = vld [vmem:[#allocation9 + $0x530] sm:$0xff] }
 0x128   : > { %4096 = vmatpush3.msra.mxu0 %v1664_v46  ;;  %4139 = vmatprep.subr.mxu1 %v2011_v26  ;;  %v1990_v46 = vld [vmem:[#allocation9 + $0x528] sm:$0xff]  ;;  %v5035_v26 = vld [vmem:[#allocation2 + $0x58] sm:$0x3f] }
 0x129   : > { %1783 = vmatmul.mubr.f32.vlgmr.msra.gmra.mxu0 %v6252_v38  ;;  %4599 = vmatprep.subr.mxu0 %v1703_v7  ;;  %v1883_v38 = vld [vmem:[#allocation10 + $0x1b0] sm:$0xff] }
 0x12a   : > { %4600 = vmatpush3.msra.mxu0 %v1703_v7  ;;  %1787 = vmatprep.mubr.f32.mxu0 %v3824_v30  ;;  %v1709_v7 = vcombine.low %v5035_v26, %v5937_v58  ;;  %v2005_v30 = vld [vmem:[#allocation9 + $0x5a0] sm:$0xff]  ;;  %v2203_v26 = vld [vmem:[#allocation10 + $0x218] sm:$0xff] }
 0x12b   : > { %4601 = vmatprep.subr.mxu0 %v1702_v62  ;;  %4140 = vmatpush3.msra.mxu1 %v1995_v49  ;;  %v1989_v49 = vld [vmem:[#allocation9 + $0x520] sm:$0xff] }
 0x12c   : > { %4602 = vmatpush3.msra.mxu0 %v1702_v62  ;;  %4141 = vmatprep.subr.mxu1 %v2010_v3  ;;  %v1884_v62 = vld [vmem:[#allocation10 + $0x1b8] sm:$0xff] }
 0x12d   : > { %4603 = vmatprep.subr.mxu0 %v1701_v35  ;;  %1788 = vmatmul.mubr.f32.gmra.mxu0 %v3823_v8  ;;  %v2004_v8 = vld [vmem:[#allocation9 + $0x598] sm:$0xff] }
 0x12e   : > { %4604 = vmatpush3.msra.mxu0 %v1701_v35  ;;  %4615 = vmatprep.mubr.msk.f32.mxu0 %vm780_vm10, %v6253_v17  ;;  %v1988_v3 = vld [vmem:[#allocation9 + $0x518] sm:$0xff]  ;;  %v1882_v35 = vld [vmem:[#allocation10 + $0x1a8] sm:$0xff] }
 0x12f   : > { %4605 = vmatprep.subr.mxu0 %v1700_v61  ;;  %4142 = vmatpush3.msra.mxu1 %v1994_v47  ;;  %v1987_v47 = vld [vmem:[#allocation9 + $0x510] sm:$0xff]  ;;  %v1986_v17 = vld [vmem:[#allocation9 + $0x508] sm:$0xff] }
 0x130   : > { %4606 = vmatpush3.msra.mxu0 %v1700_v61  ;;  %4143 = vmatprep.subr.mxu1 %v2009_v1  ;;  %v2003_v61 = vld [vmem:[#allocation9 + $0x590] sm:$0xff]  ;;  %v1881_v1 = vld [vmem:[#allocation10 + $0x1a0] sm:$0xff] }
 0x131   : > { %4607 = vmatprep.subr.mxu0 %v1699_v16  ;;  %4144 = vmatpush3.msra.mxu1 %v1993_v31  ;;  %v1880_v31 = vld [vmem:[#allocation10 + $0x198] sm:$0xff] }
 0x132   : > { %4608 = vmatpush3.msra.mxu0 %v1699_v16  ;;  %4145 = vmatprep.subr.mxu1 %v2008_v45  ;;  %v2002_v16 = vld [vmem:[#allocation9 + $0x588] sm:$0xff]  ;;  %v2001_v45 = vld [vmem:[#allocation9 + $0x580] sm:$0xff] }
 0x133   : > { %4609 = vmatprep.subr.mxu0 %v1698_v21  ;;  %4146 = vmatpush3.msra.mxu1 %v1992_v24  ;;  %v1879_v24 = vld [vmem:[#allocation10 + $0x190] sm:$0xff] }
 0x134   : > { %4610 = vmatpush3.msra.mxu0 %v1698_v21  ;;  %4147 = vmatprep.subr.mxu1 %v2007_v23  ;;  %v1985_v21 = vld [vmem:[#allocation9 + $0x500] sm:$0xff]  ;;  %v2205_v23 = vld [vmem:[#allocation10 + $0x228] sm:$0xff] }
 0x135   : > { %4611 = vmatprep.subr.mxu0 %v1697_v56  ;;  %4148 = vmatpush3.msra.mxu1 %v1991_v10  ;;  %v1877_v10 = vld [vmem:[#allocation10 + $0x180] sm:$0xff] }
 0x136   : > { %4612 = vmatpush3.msra.mxu0 %v1697_v56  ;;  %4149 = vmatprep.subr.mxu1 %v2006_v32  ;;  %v1878_v56 = vld [vmem:[#allocation10 + $0x188] sm:$0xff]  ;;  %v2204_v32 = vld [vmem:[#allocation10 + $0x220] sm:$0xff] }
 0x137   : > { %4613 = vmatprep.subr.mxu0 %v1696_v33  ;;  %4150 = vmatpush3.msra.mxu1 %v1990_v46  ;;  %v1876_v46 = vld [vmem:[#allocation10 + $0x178] sm:$0xff] }
 0x138   : > { %4614 = vmatpush3.msra.mxu0 %v1696_v33  ;;  %4151 = vmatprep.subr.mxu1 %v2005_v30  ;;  %v6254_v33 = vcombine.low %v5756_v6, %v5776_v11  ;;  %v2202_v30 = vld [vmem:[#allocation10 + $0x210] sm:$0xff]  ;;  %v1873_v6 = vld [vmem:[#allocation10 + $0x160] sm:$0xff]  ;;  %v5949_v11 = vcombine.low %v5926_v42, %v5922_v4 }
 0x139   : > { %4616 = vmatmul.mubr.msk.f32.vlgmr.msra.gmra.mxu0 %vm780_vm10, %v1709_v7  ;;  %4618 = vmatprep.subr.mxu0 %v1884_v62  ;;  %v1875_v7 = vld [vmem:[#allocation10 + $0x170] sm:$0xff] }
 0x13a   : > { %4619 = vmatpush3.msra.mxu0 %v1884_v62  ;;  %4152 = vmatpush3.msra.mxu1 %v1989_v49  ;;  %v2201_v62 = vld [vmem:[#allocation10 + $0x208] sm:$0xff]  ;;  %v5953_v49 = vcombine.high %v5926_v42, %v5922_v4 }
 0x13b   : > { %4620 = vmatprep.subr.mxu0 %v1883_v38  ;;  %4153 = vmatprep.subr.mxu1 %v2004_v8  ;;  %v5955_v8 = vld [vmem:[#allocation3 + $0x20] sm:$0x3f] }
 0x13c   : > { %4621 = vmatpush3.msra.mxu0 %v1883_v38  ;;  %4154 = vmatpush3.msra.mxu1 %v1988_v3  ;;  %v2200_v38 = vld [vmem:[#allocation10 + $0x200] sm:$0xff]  ;;  %v1872_v3 = vld [vmem:[#allocation10 + $0x158] sm:$0xff] }
 0x13d   : > { %4622 = vmatprep.subr.mxu0 %v1882_v35  ;;  %4155 = vmatprep.subr.mxu1 %v2003_v61  ;;  %v2199_v61 = vld [vmem:[#allocation10 + $0x1f8] sm:$0xff] }
 0x13e   : > { %4623 = vmatpush3.msra.mxu0 %v1882_v35  ;;  %4156 = vmatpush3.msra.mxu1 %v1987_v47  ;;  %v6255_v35 = vcombine.low %v5544_v55, %v5559_v2  ;;  %v1871_v47 = vld [vmem:[#allocation10 + $0x150] sm:$0xff]  ;;  %v2024_v55 = vld [vmem:[#allocation9 + $0x638] sm:$0xff] }
 0x13f   : > { %4624 = vmatprep.subr.mxu0 %v1881_v1  ;;  %4157 = vmatprep.subr.mxu1 %v2002_v16  ;;  %v2023_v2 = vld [vmem:[#allocation9 + $0x630] sm:$0xff] }
 0x140   : > { %4625 = vmatpush3.msra.mxu0 %v1881_v1  ;;  %4158 = vmatpush3.msra.mxu1 %v1986_v17  ;;  %v5036_v1 = vld [vmem:[#allocation3 + $0x18] sm:$0x3f] }
 0x141   : > { %4626 = vmatprep.subr.mxu0 %v1880_v31  ;;  %4159 = vmatprep.subr.mxu1 %v2001_v45  ;;  %v1887_v16 = vcombine.low %v5036_v1, %v5955_v8  ;;  %v2198_v17 = vld [vmem:[#allocation10 + $0x1f0] sm:$0xff]  ;;  %v1973_v45 = vrot.slane %v5953_v49, 5  ;;  %v2017_v1 = vld [vmem:[#allocation9 + $0x600] sm:$0xff] }
 0x142   : > { %4627 = vmatpush3.msra.mxu0 %v1880_v31  ;;  %4160 = vmatpush3.msra.mxu1 %v1985_v21  ;;  %v3829_v31 = vrot.slane %v5949_v11, 9  ;;  %v2197_v21 = vld [vmem:[#allocation10 + $0x1e8] sm:$0xff] }
 0x143   : > { %4628 = vmatprep.subr.mxu0 %v1879_v24  ;;  %2103 = vmatprep.mubr.f32.mxu1 %v2026_v37  ;;  %v1874_v37 = vld [vmem:[#allocation10 + $0x168] sm:$0xff] }
 0x144   : > { %4629 = vmatpush3.msra.mxu0 %v1879_v24  ;;  %4668 = vmatprep.subr.mxu1 %v2205_v23  ;;  %v5967_v24 = vsel %vm5597_vm8, %v3829_v31, %v1973_v45  ;;  %v2192_v31 = vld [vmem:[#allocation10 + $0x1c0] sm:$0xff]  ;;  %v6256_v45 = vcombine.low %v5752_v22, %v5765_v59  ;;  %v2331_v59 = vld [vmem:[#allocation9 + $0x728] sm:$0xff]  ;;  %v2340_v22 = vld [vmem:[#allocation9 + $0x770] sm:$0xff] }
 0x145   : > { %4630 = vmatprep.subr.mxu0 %v1878_v56  ;;  %2104 = vmatmul.mubr.f32.vlgmr.msra.gmra.mxu1 %v6254_v33  ;;  %v2195_v33 = vld [vmem:[#allocation10 + $0x1d8] sm:$0xff] }
 0x146   : > { %4631 = vmatpush3.msra.mxu0 %v1878_v56  ;;  %4669 = vmatpush3.msra.mxu1 %v2205_v23  ;;  %v2022_v23 = vld [vmem:[#allocation9 + $0x628] sm:$0xff]  ;;  %v2196_v56 = vld [vmem:[#allocation10 + $0x1e0] sm:$0xff] }
 0x147   : > { %4632 = vmatprep.subr.mxu0 %v1877_v10  ;;  %4670 = vmatprep.subr.mxu1 %v2204_v32 }
 0x148   : > { %4633 = vmatpush3.msra.mxu0 %v1877_v10  ;;  %4671 = vmatpush3.msra.mxu1 %v2204_v32  ;;  %v5971_v10 = vcombine.high %v5937_v58, %v5937_v58  ;;  %v2021_v32 = vld [vmem:[#allocation9 + $0x620] sm:$0xff] }
 0x149   : > { %4634 = vmatprep.subr.mxu0 %v1876_v46  ;;  %4672 = vmatprep.subr.mxu1 %v2203_v26 }
 0x14a   : > { %4635 = vmatpush3.msra.mxu0 %v1876_v46  ;;  %4673 = vmatpush3.msra.mxu1 %v2203_v26  ;;  %v2029_v46 = vcombine.high %v5826_v29, %v5967_v24  ;;  %v5977_v26 = vcombine.high %v5955_v8, %v5955_v8 }
 0x14b   : > { %4636 = vmatprep.subr.mxu0 %v1875_v7  ;;  %4674 = vmatprep.subr.mxu1 %v2202_v30 }
 0x14c   : > { %4637 = vmatpush3.msra.mxu0 %v1875_v7  ;;  %4675 = vmatpush3.msra.mxu1 %v2202_v30  ;;  %v2020_v7 = vld [vmem:[#allocation9 + $0x618] sm:$0xff]  ;;  %v2028_v30 = vcombine.low %v5826_v29, %v5967_v24  ;;  %v2193_v29 = vld [vmem:[#allocation10 + $0x1c8] sm:$0xff] }
 0x14d   : > { %4638 = vmatprep.subr.mxu0 %v1874_v37  ;;  %4676 = vmatprep.subr.mxu1 %v2201_v62 }
 0x14e   : > { %4639 = vmatpush3.msra.mxu0 %v1874_v37  ;;  %4646 = vmatprep.mubr.msk.f32.mxu0 %vm690_vm5, %v6255_v35  ;;  %v3830_v37 = vrot.slane %v5937_v58, 9  ;;  %v1982_v35 = vrot.slane %v5977_v26, 5 }
 0x14f   : > { %4640 = vmatprep.subr.mxu0 %v1873_v6  ;;  %4677 = vmatpush3.msra.mxu1 %v2201_v62  ;;  %v1977_v62 = vrot.slane %v5971_v10, 5 }
 0x150   : > { %4641 = vmatpush3.msra.mxu0 %v1873_v6  ;;  %4678 = vmatprep.subr.mxu1 %v2200_v38  ;;  %v2019_v6 = vld [vmem:[#allocation9 + $0x610] sm:$0xff] }
 0x151   : > { %4642 = vmatprep.subr.mxu0 %v1872_v3  ;;  %4679 = vmatpush3.msra.mxu1 %v2200_v38  ;;  %v2194_v38 = vld [vmem:[#allocation10 + $0x1d0] sm:$0xff] }
 0x152   : > { %4643 = vmatpush3.msra.mxu0 %v1872_v3  ;;  %4680 = vmatprep.subr.mxu1 %v2199_v61  ;;  %v3831_v3 = vrot.slane %v5955_v8, 9 }
 0x153   : > { %4644 = vmatprep.subr.mxu0 %v1871_v47  ;;  %4681 = vmatpush3.msra.mxu1 %v2199_v61  ;;  %v2018_v61 = vld [vmem:[#allocation9 + $0x608] sm:$0xff] }
 0x154   : > { %4645 = vmatpush3.msra.mxu0 %v1871_v47  ;;  %4682 = vmatprep.subr.mxu1 %v2198_v17  ;;  %v5987_v47 = vsel %vm5597_vm8, %v3830_v37, %v1977_v62  ;;  %v2312_v37 = vld [vmem:[#allocation9 + $0x690] sm:$0xff]  ;;  %v2327_v62 = vld [vmem:[#allocation9 + $0x708] sm:$0xff] }
 0x155   : > { %4647 = vmatmul.mubr.msk.f32.vlgmr.msra.gmra.mxu0 %vm690_vm5, %v1887_v16  ;;  %4649 = vmatprep.subr.mxu0 %v2024_v55  ;;  %v5991_v16 = vsel %vm5597_vm8, %v3831_v3, %v1982_v35  ;;  %v2295_v3 = vrot.slane %v5971_v10, 6  ;;  %v2311_v35 = vld [vmem:[#allocation9 + $0x688] sm:$0xff]  ;;  %v2309_v10 = vld [vmem:[#allocation9 + $0x678] sm:$0xff] }
 0x156   : > { %4650 = vmatpush3.msra.mxu0 %v2024_v55  ;;  %4683 = vmatpush3.msra.mxu1 %v2198_v17  ;;  %v2030_v17 = vcombine.low %v5772_v53, %v5987_v47  ;;  %v2333_v55 = vld [vmem:[#allocation9 + $0x738] sm:$0xff] }
 0x157   : > { %4651 = vmatprep.subr.mxu0 %v2023_v2  ;;  %4684 = vmatprep.subr.mxu1 %v2197_v21  ;;  %v2341_v53 = vld [vmem:[#allocation9 + $0x778] sm:$0xff] }
 0x158   : > { %4652 = vmatpush3.msra.mxu0 %v2023_v2  ;;  %4685 = vmatpush3.msra.mxu1 %v2197_v21  ;;  %v2317_v2 = vld [vmem:[#allocation9 + $0x6b8] sm:$0xff]  ;;  %v2207_v21 = vcombine.low %v5636_v14, %v5991_v16  ;;  %v2315_v14 = vld [vmem:[#allocation9 + $0x6a8] sm:$0xff] }
 0x159   : > { %4653 = vmatprep.subr.mxu0 %v2022_v23  ;;  %4686 = vmatprep.subr.mxu1 %v2196_v56 }
 0x15a   : > { %4654 = vmatpush3.msra.mxu0 %v2022_v23  ;;  %4687 = vmatpush3.msra.mxu1 %v2196_v56  ;;  %v2332_v23 = vld [vmem:[#allocation9 + $0x730] sm:$0xff] }
 0x15b   : > { %4655 = vmatprep.subr.mxu0 %v2021_v32  ;;  %4688 = vmatprep.subr.mxu1 %v2195_v33  ;;  %v2316_v56 = vld [vmem:[#allocation9 + $0x6b0] sm:$0xff] }
 0x15c   : > { %4656 = vmatpush3.msra.mxu0 %v2021_v32  ;;  %2108 = vmatprep.mubr.f32.mxu1 %v2029_v46  ;;  %v2330_v32 = vld [vmem:[#allocation9 + $0x720] sm:$0xff] }
 0x15d   : > { %4657 = vmatprep.subr.mxu0 %v2020_v7  ;;  %4689 = vmatpush3.msra.mxu1 %v2195_v33  ;;  %v2339_v33 = vld [vmem:[#allocation9 + $0x768] sm:$0xff]  ;;  %v2314_v46 = vld [vmem:[#allocation9 + $0x6a0] sm:$0xff] }
 0x15e   : > { %4658 = vmatpush3.msra.mxu0 %v2020_v7  ;;  %2109 = vmatmul.mubr.f32.gmra.mxu1 %v2028_v30  ;;  %v2329_v7 = vld [vmem:[#allocation9 + $0x718] sm:$0xff] }
 0x15f   : > { %4659 = vmatprep.subr.mxu0 %v2019_v6  ;;  %4690 = vmatprep.subr.mxu1 %v2194_v38  ;;  %v2337_v30 = vld [vmem:[#allocation9 + $0x758] sm:$0xff] }
 0x160   : > { %4660 = vmatpush3.msra.mxu0 %v2019_v6  ;;  %4691 = vmatpush3.msra.mxu1 %v2194_v38  ;;  %v2336_v6 = vld [vmem:[#allocation9 + $0x750] sm:$0xff]  ;;  %v3837_v38 = vrot.slane %v5937_v58, 10 }
 0x161   : > { %4661 = vmatprep.subr.mxu0 %v2018_v61  ;;  %4692 = vmatprep.subr.mxu1 %v2193_v29 }
 0x162   : > { %4662 = vmatpush3.msra.mxu0 %v2018_v61  ;;  %4665 = vmatprep.mubr.msk.f32.mxu0 %vm780_vm10, %v6256_v45  ;;  %v2326_v61 = vld [vmem:[#allocation9 + $0x700] sm:$0xff]  ;;  %v6011_v45 = vsel %vm5745_vm13, %v3837_v38, %v2295_v3  ;;  %v2291_v38 = vrot.slane %v5953_v49, 6  ;;  %v2637_v3 = vld [vmem:[#allocation9 + $0x850] sm:$0xff] }
 0x163   : > { %4663 = vmatprep.subr.mxu0 %v2017_v1  ;;  %4693 = vmatpush3.msra.mxu1 %v2193_v29  ;;  %v2335_v29 = vld [vmem:[#allocation9 + $0x748] sm:$0xff] }
 0x164   : > { %4664 = vmatpush3.msra.mxu0 %v2017_v1  ;;  %4694 = vmatprep.subr.mxu1 %v2192_v31  ;;  %v2310_v1 = vld [vmem:[#allocation9 + $0x680] sm:$0xff] }
 0x165   : > { %4666 = vmatmul.mubr.msk.f32.vlgmr.msra.gmra.mxu0 %vm780_vm10, %v2030_v17  ;;  %4193 = vmatprep.subr.mxu0 %v2333_v55  ;;  %v2325_v17 = vld [vmem:[#allocation9 + $0x6f8] sm:$0xff]  ;;  %v2324_v55 = vld [vmem:[#allocation9 + $0x6f0] sm:$0xff] }
 0x166   : > { %4695 = vmatpush3.msra.mxu1 %v2192_v31  ;;  %4194 = vmatpush3.msra.mxu0 %v2317_v2  ;;  %v2334_v31 = vld [vmem:[#allocation9 + $0x740] sm:$0xff]  ;;  %v2642_v2 = vld [vmem:[#allocation9 + $0x878] sm:$0xff] }
 0x167   : > { %4696 = vmatprep.mubr.msk.f32.mxu1 %vm690_vm5, %v2206_v63  ;;  %4195 = vmatprep.subr.mxu0 %v2332_v23  ;;  %v2328_v63 = vld [vmem:[#allocation9 + $0x710] sm:$0xff]  ;;  %v2347_v23 = vcombine.low %v5794_v20, %v6011_v45  ;;  %v2306_v20 = vld [vmem:[#allocation9 + $0x660] sm:$0xff] }
 0x168   : > { %4699 = vmatprep.subr.mxu1 %v2341_v53  ;;  %4697 = vmatmul.mubr.msk.f32.vlgmr.msra.gmra.mxu1 %vm690_vm5, %v2207_v21  ;;  %v2308_v21 = vld [vmem:[#allocation9 + $0x670] sm:$0xff] }
 0x169   : > { %4196 = vmatpush3.msra.mxu0 %v2316_v56  ;;  %4700 = vmatpush3.msra.mxu1 %v2341_v53  ;;  %v2323_v53 = vld [vmem:[#allocation9 + $0x6e8] sm:$0xff]  ;;  %v2626_v56 = vld [vmem:[#allocation9 + $0x7f8] sm:$0xff] }
 0x16a   : > { %4197 = vmatprep.subr.mxu0 %v2331_v59  ;;  %4701 = vmatprep.subr.mxu1 %v2340_v22  ;;  %v2307_v59 = vld [vmem:[#allocation9 + $0x668] sm:$0xff] }
 0x16b   : > { %4198 = vmatpush3.msra.mxu0 %v2315_v14  ;;  %4702 = vmatpush3.msra.mxu1 %v2340_v22  ;;  %v2641_v22 = vld [vmem:[#allocation9 + $0x870] sm:$0xff]  ;;  %v2322_v14 = vld [vmem:[#allocation9 + $0x6e0] sm:$0xff]  ;;  %v4479_v5 = vpop.f32.mrf.mxu0 }
 0x16c   : > { %4199 = vmatprep.subr.mxu0 %v2330_v32  ;;  %4703 = vmatprep.subr.mxu1 %v2339_v33  ;;  %v2625_v32 = vld [vmem:[#allocation9 + $0x7f0] sm:$0xff] }
 0x16d   : > { %4200 = vmatpush3.msra.mxu0 %v2314_v46  ;;  %4704 = vmatpush3.msra.mxu1 %v2339_v33  ;;  %v2640_v33 = vld [vmem:[#allocation9 + $0x868] sm:$0xff]  ;;  %v2321_v46 = vld [vmem:[#allocation9 + $0x6d8] sm:$0xff] }
 0x16e   : > { %4201 = vmatprep.subr.mxu0 %v2329_v7  ;;  %4705 = vmatprep.subr.mxu1 %v2338_v52  ;;  %v2320_v7 = vld [vmem:[#allocation9 + $0x6d0] sm:$0xff] }
 0x16f   : > { %4202 = vmatpush3.msra.mxu0 %v2313_v13  ;;  %4706 = vmatpush3.msra.mxu1 %v2338_v52  ;;  %v2623_v52 = vld [vmem:[#allocation9 + $0x7e0] sm:$0xff]  ;;  %v2304_v13 = vld [vmem:[#allocation9 + $0x650] sm:$0xff] }
 0x170   : > { %4203 = vmatprep.subr.mxu0 %v2328_v63  ;;  %4707 = vmatprep.subr.mxu1 %v2337_v30  ;;  %v2638_v63 = vld [vmem:[#allocation9 + $0x858] sm:$0xff] }
 0x171   : > { %4204 = vmatpush3.msra.mxu0 %v2312_v37  ;;  %4708 = vmatpush3.msra.mxu1 %v2337_v30  ;;  %v2319_v30 = vld [vmem:[#allocation9 + $0x6c8] sm:$0xff]  ;;  %v2622_v37 = vld [vmem:[#allocation9 + $0x7d8] sm:$0xff] }
 0x172   : > { %4205 = vmatprep.subr.mxu0 %v2327_v62  ;;  %4709 = vmatprep.subr.mxu1 %v2336_v6  ;;  %v2303_v62 = vld [vmem:[#allocation9 + $0x648] sm:$0xff] }
 0x173   : > { %4206 = vmatpush3.msra.mxu0 %v2311_v35  ;;  %4710 = vmatpush3.msra.mxu1 %v2336_v6  ;;  %v3836_v6 = vrot.slane %v5949_v11, 10  ;;  %v2318_v35 = vld [vmem:[#allocation9 + $0x6c0] sm:$0xff]  ;;  %v2620_v11 = vld [vmem:[#allocation9 + $0x7c8] sm:$0xff] }
 0x174   : > { %4207 = vmatprep.subr.mxu0 %v2326_v61  ;;  %4711 = vmatprep.subr.mxu1 %v2335_v29  ;;  %v2621_v61 = vld [vmem:[#allocation9 + $0x7d0] sm:$0xff] }
 0x175   : > { %4208 = vmatpush3.msra.mxu0 %v2310_v1  ;;  %4712 = vmatpush3.msra.mxu1 %v2335_v29  ;;  %v2302_v29 = vld [vmem:[#allocation9 + $0x640] sm:$0xff]  ;;  %v2343_v1 = vcombine.high %v5857_v19, %v5869_v44  ;;  %v6028_v49 = vsel %vm5745_vm13, %v3836_v6, %v2291_v38 }
 0x176   : > { %4209 = vmatprep.subr.mxu0 %v2325_v17  ;;  %4713 = vmatprep.subr.mxu1 %v2334_v31  ;;  %v2636_v17 = vld [vmem:[#allocation9 + $0x848] sm:$0xff]  ;;  %v2627_v6 = vld [vmem:[#allocation9 + $0x800] sm:$0xff] }
 0x177   : > { %4210 = vmatpush3.msra.mxu0 %v2309_v10  ;;  %4714 = vmatpush3.msra.mxu1 %v2334_v31  ;;  %v2342_v31 = vcombine.low %v5857_v19, %v5869_v44  ;;  %v2522_v10 = vld [vmem:[#allocation10 + $0x298] sm:$0xff]  ;;  %v2346_v19 = vcombine.high %v5873_v57, %v6028_v49  ;;  %v2345_v44 = vcombine.low %v5873_v57, %v6028_v49  ;;  %v2611_v38 = vld [vmem:[#allocation9 + $0x780] sm:$0xff] }
 0x178   : > { %4211 = vmatprep.subr.mxu0 %v2324_v55  ;;  %4715 = vmatprep.mubr.msk.f32.mxu1 %vm780_vm10, %v2344_v25  ;;  %v2639_v25 = vld [vmem:[#allocation9 + $0x860] sm:$0xff]  ;;  %v2518_v57 = vld [vmem:[#allocation10 + $0x278] sm:$0xff] }
 0x179   : > { %4257 = vmatprep.subr.mxu1 %v2642_v2  ;;  %4212 = vmatpush3.msra.mxu0 %v2308_v21  ;;  %v2635_v55 = vld [vmem:[#allocation9 + $0x840] sm:$0xff]  ;;  %v2521_v21 = vld [vmem:[#allocation10 + $0x290] sm:$0xff] }
 0x17a   : > { %4716 = vmatmul.mubr.msk.f32.vlgmr.msra.gmra.mxu1 %vm780_vm10, %v2347_v23  ;;  %4213 = vmatprep.subr.mxu0 %v2323_v53  ;;  %v2619_v2 = vld [vmem:[#allocation9 + $0x7c0] sm:$0xff]  ;;  %v2634_v23 = vld [vmem:[#allocation9 + $0x838] sm:$0xff] }
 0x17b   : > { %4258 = vmatpush3.msra.mxu1 %v2626_v56  ;;  %4214 = vmatpush3.msra.mxu0 %v2307_v59  ;;  %v2618_v53 = vld [vmem:[#allocation9 + $0x7b8] sm:$0xff]  ;;  %v2520_v56 = vld [vmem:[#allocation10 + $0x288] sm:$0xff]  ;;  %v2633_v59 = vld [vmem:[#allocation9 + $0x830] sm:$0xff] }
 0x17c   : > { %4259 = vmatprep.subr.mxu1 %v2641_v22  ;;  %4215 = vmatprep.subr.mxu0 %v2322_v14  ;;  %v2617_v22 = vld [vmem:[#allocation9 + $0x7b0] sm:$0xff]  ;;  %v2519_v14 = vld [vmem:[#allocation10 + $0x280] sm:$0xff] }
 0x17d   : > { %4260 = vmatpush3.msra.mxu1 %v2625_v32  ;;  %4216 = vmatpush3.msra.mxu0 %v2306_v20  ;;  %v2632_v32 = vld [vmem:[#allocation9 + $0x828] sm:$0xff] }
 0x17e   : > { %4261 = vmatprep.subr.mxu1 %v2640_v33  ;;  %4217 = vmatprep.subr.mxu0 %v2321_v46  ;;  %v2616_v20 = vld [vmem:[#allocation9 + $0x7a8] sm:$0xff]  ;;  %v2631_v33 = vld [vmem:[#allocation9 + $0x820] sm:$0xff] }
 0x17f   : > { %4262 = vmatpush3.msra.mxu1 %v2624_v12  ;;  %4218 = vmatpush3.msra.mxu0 %v2305_v27  ;;  %v2615_v46 = vld [vmem:[#allocation9 + $0x7a0] sm:$0xff]  ;;  %v2517_v12 = vld [vmem:[#allocation10 + $0x270] sm:$0xff]  ;;  %v2630_v27 = vld [vmem:[#allocation9 + $0x818] sm:$0xff] }
 0x180   : > { %4263 = vmatprep.subr.mxu1 %v2639_v25  ;;  %4219 = vmatprep.subr.mxu0 %v2320_v7  ;;  %v2614_v25 = vld [vmem:[#allocation9 + $0x798] sm:$0xff]  ;;  %v2516_v7 = vld [vmem:[#allocation10 + $0x268] sm:$0xff] }
 0x181   : > { %4264 = vmatpush3.msra.mxu1 %v2623_v52  ;;  %4220 = vmatpush3.msra.mxu0 %v2304_v13  ;;  %v2629_v52 = vld [vmem:[#allocation9 + $0x810] sm:$0xff] }
 0x182   : > { %4265 = vmatprep.subr.mxu1 %v2638_v63  ;;  %4221 = vmatprep.subr.mxu0 %v2319_v30  ;;  %v2613_v13 = vld [vmem:[#allocation9 + $0x790] sm:$0xff]  ;;  %v2515_v63 = vld [vmem:[#allocation10 + $0x260] sm:$0xff]  ;;  %v2628_v30 = vld [vmem:[#allocation9 + $0x808] sm:$0xff] }
 0x183   : > { %4266 = vmatpush3.msra.mxu1 %v2622_v37  ;;  %4222 = vmatpush3.msra.mxu0 %v2303_v62  ;;  %v2612_v37 = vld [vmem:[#allocation9 + $0x788] sm:$0xff]  ;;  %v2514_v62 = vld [vmem:[#allocation10 + $0x258] sm:$0xff] }
 0x184   : > { %4267 = vmatprep.subr.mxu1 %v2637_v3  ;;  %4223 = vmatprep.subr.mxu0 %v2318_v35  ;;  %v2513_v3 = vld [vmem:[#allocation10 + $0x250] sm:$0xff]  ;;  %v2824_v35 = vld [vmem:[#allocation10 + $0x308] sm:$0xff] }
 0x185   : > { %4268 = vmatpush3.msra.mxu1 %v2621_v61  ;;  %4224 = vmatpush3.msra.mxu0 %v2302_v29  ;;  %v2512_v61 = vld [vmem:[#allocation10 + $0x248] sm:$0xff]  ;;  %v3838_v29 = vrot.slane %v5955_v8, 10 }
 0x186   : > { %4269 = vmatprep.subr.mxu1 %v2636_v17  ;;  %2420 = vmatprep.mubr.f32.mxu0 %v2343_v1  ;;  %v2299_v1 = vrot.slane %v5977_v26, 6  ;;  %v2823_v17 = vld [vmem:[#allocation10 + $0x300] sm:$0xff]  ;;  %v2821_v26 = vld [vmem:[#allocation10 + $0x2f0] sm:$0xff] }
 0x187   : > { %4270 = vmatpush3.msra.mxu1 %v2620_v11  ;;  %2421 = vmatmul.mubr.f32.vlgmr.msra.gmra.mxu0 %v2342_v31  ;;  %v2511_v31 = vld [vmem:[#allocation10 + $0x240] sm:$0xff]  ;;  %v2822_v11 = vld [vmem:[#allocation10 + $0x2f8] sm:$0xff] }
 0x188   : > { %4718 = vmatprep.subr.mxu0 %v2522_v10  ;;  %4271 = vmatprep.subr.mxu1 %v2635_v55  ;;  %v2509_v55 = vld [vmem:[#allocation10 + $0x230] sm:$0xff] }
 0x189   : > { %4719 = vmatpush3.msra.mxu0 %v2522_v10  ;;  %4272 = vmatpush3.msra.mxu1 %v2619_v2  ;;  %v2510_v10 = vld [vmem:[#allocation10 + $0x238] sm:$0xff]  ;;  %v2820_v2 = vld [vmem:[#allocation10 + $0x2e8] sm:$0xff] }
 0x18a   : > { %4720 = vmatprep.subr.mxu0 %v2521_v21  ;;  %4273 = vmatprep.subr.mxu1 %v2634_v23  ;;  %v2650_v23 = vld [vmem:[#allocation9 + $0x8b8] sm:$0xff] }
 0x18b   : > { %2425 = vmatprep.mubr.f32.mxu0 %v2346_v19  ;;  %4721 = vmatpush3.msra.mxu0 %v2521_v21  ;;  %v2819_v19 = vld [vmem:[#allocation10 + $0x2e0] sm:$0xff] }
 0x18c   : > { %4274 = vmatpush3.msra.mxu1 %v2618_v53  ;;  %2426 = vmatmul.mubr.f32.gmra.mxu0 %v2345_v44  ;;  %v2649_v44 = vld [vmem:[#allocation9 + $0x8b0] sm:$0xff]  ;;  %v2647_v53 = vld [vmem:[#allocation9 + $0x8a0] sm:$0xff] }
 0x18d   : > { %4722 = vmatprep.subr.mxu0 %v2520_v56  ;;  %4275 = vmatprep.subr.mxu1 %v2633_v59  ;;  %v6048_v59 = vld [vmem:[#allocation2 + $0x80] sm:$0x3f] }
 0x18e   : > { %4723 = vmatpush3.msra.mxu0 %v2520_v56  ;;  %4276 = vmatpush3.msra.mxu1 %v2617_v22  ;;  %v2816_v56 = vld [vmem:[#allocation10 + $0x2c8] sm:$0xff]  ;;  %v2646_v22 = vld [vmem:[#allocation9 + $0x898] sm:$0xff] }
 0x18f   : > { %4724 = vmatprep.subr.mxu0 %v2519_v14  ;;  %4277 = vmatprep.subr.mxu1 %v2632_v32  ;;  %v6050_v32 = vld [vmem:[#allocation2 + $0x78] sm:$0x3f] }
 0x190   : > { %4725 = vmatpush3.msra.mxu0 %v2519_v14  ;;  %4278 = vmatpush3.msra.mxu1 %v2616_v20  ;;  %v2815_v14 = vld [vmem:[#allocation10 + $0x2c0] sm:$0xff]  ;;  %v2645_v20 = vld [vmem:[#allocation9 + $0x890] sm:$0xff] }
 0x191   : > { %4726 = vmatprep.subr.mxu0 %v2518_v57  ;;  %4279 = vmatprep.subr.mxu1 %v2631_v33  ;;  %v3844_v33 = vcombine.low %v5922_v4, %v6048_v59 }
 0x192   : > { %4727 = vmatpush3.msra.mxu0 %v2518_v57  ;;  %4280 = vmatpush3.msra.mxu1 %v2615_v46  ;;  %v2814_v57 = vld [vmem:[#allocation10 + $0x2b8] sm:$0xff]  ;;  %v3843_v46 = vcombine.low %v5926_v42, %v6050_v32  ;;  %v2811_v42 = vld [vmem:[#allocation10 + $0x2a0] sm:$0xff] }
 0x193   : > { %4728 = vmatprep.subr.mxu0 %v2517_v12  ;;  %4281 = vmatprep.subr.mxu1 %v2630_v27  ;;  %v2813_v27 = vld [vmem:[#allocation10 + $0x2b0] sm:$0xff] }
 0x194   : > { %4729 = vmatpush3.msra.mxu0 %v2517_v12  ;;  %4282 = vmatpush3.msra.mxu1 %v2614_v25  ;;  %v2644_v12 = vld [vmem:[#allocation9 + $0x888] sm:$0xff]  ;;  %v6056_v25 = vld [vmem:[#allocation2 + $0x88] sm:$0x3f] }
 0x195   : > { %4730 = vmatprep.subr.mxu0 %v2516_v7  ;;  %4283 = vmatprep.subr.mxu1 %v2629_v52  ;;  %v2812_v52 = vld [vmem:[#allocation10 + $0x2a8] sm:$0xff]  ;;  %v2653_v4 = vcombine.low %v5937_v58, %v6056_v25 }
 0x196   : > { %4731 = vmatpush3.msra.mxu0 %v2516_v7  ;;  %4284 = vmatpush3.msra.mxu1 %v2613_v13  ;;  %v2643_v7 = vld [vmem:[#allocation9 + $0x880] sm:$0xff] }
 0x197   : > { %4732 = vmatprep.subr.mxu0 %v2515_v63  ;;  %4285 = vmatprep.subr.mxu1 %v2628_v30  ;;  %v6060_v13 = vld [vmem:[#allocation3 + $0x28] sm:$0x3f]  ;;  %v2937_v30 = vld [vmem:[#allocation9 + $0x938] sm:$0xff] }
 0x198   : > { %4733 = vmatpush3.msra.mxu0 %v2515_v63  ;;  %4286 = vmatpush3.msra.mxu1 %v2612_v37  ;;  %v2953_v63 = vld [vmem:[#allocation9 + $0x9b8] sm:$0xff]  ;;  %v2952_v37 = vld [vmem:[#allocation9 + $0x9b0] sm:$0xff]  ;;  %v2826_v58 = vcombine.low %v5955_v8, %v6060_v13  ;;  %v2959_v8 = vld [vmem:[#allocation9 + $0x9e8] sm:$0xff] }
 0x199   : > { %4734 = vmatprep.subr.mxu0 %v2514_v62  ;;  %4287 = vmatprep.subr.mxu1 %v2627_v6  ;;  %v2936_v6 = vld [vmem:[#allocation9 + $0x930] sm:$0xff] }
 0x19a   : > { %4735 = vmatpush3.msra.mxu0 %v2514_v62  ;;  %4288 = vmatpush3.msra.mxu1 %v2611_v38  ;;  %v2961_v62 = vld [vmem:[#allocation9 + $0x9f8] sm:$0xff]  ;;  %v2951_v38 = vld [vmem:[#allocation9 + $0x9a8] sm:$0xff] }
 0x19b   : > { %4736 = vmatprep.subr.mxu0 %v2513_v3  ;;  %2722 = vmatprep.mubr.f32.mxu1 %v5680_v40  ;;  %v6040_v40 = vsel %vm5745_vm13, %v3838_v29, %v2299_v1  ;;  %v2949_v29 = vld [vmem:[#allocation9 + $0x998] sm:$0xff]  ;;  %v2958_v1 = vld [vmem:[#allocation9 + $0x9e0] sm:$0xff] }
 0x19c   : > { %4768 = vmatprep.subr.mxu1 %v2824_v35  ;;  %4737 = vmatpush3.msra.mxu0 %v2513_v3  ;;  %v2524_v21 = vcombine.low %v5909_v34, %v6040_v40  ;;  %v2817_v34 = vld [vmem:[#allocation10 + $0x2d0] sm:$0xff]  ;;  %v2935_v3 = vld [vmem:[#allocation9 + $0x928] sm:$0xff] }
 0x19d   : > { %2723 = vmatmul.mubr.f32.vlgmr.msra.gmra.mxu1 %v5670_v36  ;;  %4738 = vmatprep.subr.mxu0 %v2512_v61  ;;  %v2523_v36 = vcombine.low %v5901_v60, %v5905_v51  ;;  %v2818_v60 = vld [vmem:[#allocation10 + $0x2d8] sm:$0xff]  ;;  %v2648_v51 = vld [vmem:[#allocation9 + $0x8a8] sm:$0xff] }
 0x19e   : > { %4769 = vmatpush3.msra.mxu1 %v2824_v35  ;;  %4739 = vmatpush3.msra.mxu0 %v2512_v61  ;;  %v2950_v35 = vld [vmem:[#allocation9 + $0x9a0] sm:$0xff] }
 0x19f   : > { %4770 = vmatprep.subr.mxu1 %v2823_v17  ;;  %4740 = vmatprep.subr.mxu0 %v2511_v31  ;;  %v2934_v61 = vld [vmem:[#allocation9 + $0x920] sm:$0xff] }
 0x1a0   : > { %4771 = vmatpush3.msra.mxu1 %v2823_v17  ;;  %4741 = vmatpush3.msra.mxu0 %v2511_v31  ;;  %v2933_v17 = vld [vmem:[#allocation9 + $0x918] sm:$0xff]  ;;  %v2948_v31 = vld [vmem:[#allocation9 + $0x990] sm:$0xff] }
 0x1a1   : > { %4772 = vmatprep.subr.mxu1 %v2822_v11  ;;  %4742 = vmatprep.subr.mxu0 %v2510_v10 }
 0x1a2   : > { %4773 = vmatpush3.msra.mxu1 %v2822_v11  ;;  %4743 = vmatpush3.msra.mxu0 %v2510_v10  ;;  %v2957_v11 = vld [vmem:[#allocation9 + $0x9d8] sm:$0xff]  ;;  %v2932_v10 = vld [vmem:[#allocation9 + $0x910] sm:$0xff] }
 0x1a3   : > { %4774 = vmatprep.subr.mxu1 %v2821_v26  ;;  %4744 = vmatprep.subr.mxu0 %v2509_v55 }
 0x1a4   : > { %4775 = vmatpush3.msra.mxu1 %v2821_v26  ;;  %4745 = vmatpush3.msra.mxu0 %v2509_v55  ;;  %v2947_v26 = vld [vmem:[#allocation9 + $0x988] sm:$0xff]  ;;  %v2956_v55 = vld [vmem:[#allocation9 + $0x9d0] sm:$0xff] }
 0x1a5   : > { %4776 = vmatprep.subr.mxu1 %v2820_v2  ;;  %4746 = vmatprep.mubr.msk.f32.mxu0 %vm690_vm5, %v2523_v36  ;;  %v3850_v36 = vrot.slane %v6056_v25, 9 }
 0x1a6   : > { %4777 = vmatpush3.msra.mxu1 %v2820_v2  ;;  %4747 = vmatmul.mubr.msk.f32.vlgmr.msra.gmra.mxu0 %vm690_vm5, %v2524_v21  ;;  %v2931_v21 = vld [vmem:[#allocation9 + $0x908] sm:$0xff] }
 0x1a7   : > { %4749 = vmatprep.subr.mxu0 %v2650_v23  ;;  %4778 = vmatprep.subr.mxu1 %v2819_v19 }
 0x1a8   : > { %4750 = vmatpush3.msra.mxu0 %v2650_v23  ;;  %4779 = vmatpush3.msra.mxu1 %v2819_v19  ;;  %v2946_v23 = vld [vmem:[#allocation9 + $0x980] sm:$0xff]  ;;  %v2955_v19 = vld [vmem:[#allocation9 + $0x9c8] sm:$0xff] }
 0x1a9   : > { %4751 = vmatprep.subr.mxu0 %v2649_v44  ;;  %4780 = vmatprep.subr.mxu1 %v2818_v60 }
 0x1aa   : > { %4752 = vmatpush3.msra.mxu0 %v2649_v44  ;;  %4781 = vmatpush3.msra.mxu1 %v2818_v60  ;;  %v2930_v44 = vld [vmem:[#allocation9 + $0x900] sm:$0xff]  ;;  %v2945_v60 = vld [vmem:[#allocation9 + $0x978] sm:$0xff] }
 0x1ab   : > { %4753 = vmatprep.subr.mxu0 %v2648_v51  ;;  %4782 = vmatprep.subr.mxu1 %v2817_v34 }
 0x1ac   : > { %4754 = vmatpush3.msra.mxu0 %v2648_v51  ;;  %4783 = vmatpush3.msra.mxu1 %v2817_v34  ;;  %v2954_v51 = vld [vmem:[#allocation9 + $0x9c0] sm:$0xff] }
 0x1ad   : > { %4755 = vmatprep.subr.mxu0 %v2647_v53  ;;  %4784 = vmatprep.subr.mxu1 %v2816_v56 }
 0x1ae   : > { %4756 = vmatpush3.msra.mxu0 %v2647_v53  ;;  %4785 = vmatpush3.msra.mxu1 %v2816_v56  ;;  %v2929_v53 = vld [vmem:[#allocation9 + $0x8f8] sm:$0xff]  ;;  %v2944_v56 = vld [vmem:[#allocation9 + $0x970] sm:$0xff] }
 0x1af   : > { %4757 = vmatprep.subr.mxu0 %v2646_v22  ;;  %4786 = vmatprep.subr.mxu1 %v2815_v14 }
 0x1b0   : > { %4758 = vmatpush3.msra.mxu0 %v2646_v22  ;;  %4787 = vmatpush3.msra.mxu1 %v2815_v14  ;;  %v3260_v22 = vld [vmem:[#allocation9 + $0xaf8] sm:$0xff]  ;;  %v2928_v14 = vld [vmem:[#allocation9 + $0x8f0] sm:$0xff] }
 0x1b1   : > { %4759 = vmatprep.subr.mxu0 %v2645_v20  ;;  %4788 = vmatprep.subr.mxu1 %v2814_v57 }
 0x1b2   : > { %2727 = vmatprep.mubr.f32.mxu1 %v3844_v33  ;;  %4760 = vmatpush3.msra.mxu0 %v2645_v20  ;;  %v3244_v33 = vld [vmem:[#allocation9 + $0xa78] sm:$0xff] }
 0x1b3   : > { %4789 = vmatpush3.msra.mxu1 %v2814_v57  ;;  %4761 = vmatprep.subr.mxu0 %v2644_v12  ;;  %v2943_v57 = vld [vmem:[#allocation9 + $0x968] sm:$0xff] }
 0x1b4   : > { %2728 = vmatmul.mubr.f32.gmra.mxu1 %v3843_v46  ;;  %4790 = vmatprep.subr.mxu1 %v2813_v27  ;;  %v2927_v46 = vld [vmem:[#allocation9 + $0x8e8] sm:$0xff] }
 0x1b5   : > { %4762 = vmatpush3.msra.mxu0 %v2644_v12  ;;  %4791 = vmatpush3.msra.mxu1 %v2813_v27  ;;  %v3259_v12 = vld [vmem:[#allocation9 + $0xaf0] sm:$0xff]  ;;  %v2942_v27 = vld [vmem:[#allocation9 + $0x960] sm:$0xff] }
 0x1b6   : > { %4763 = vmatprep.subr.mxu0 %v2643_v7  ;;  %4792 = vmatprep.subr.mxu1 %v2812_v52 }
 0x1b7   : > { %4764 = vmatpush3.msra.mxu0 %v2643_v7  ;;  %4765 = vmatprep.mubr.msk.f32.mxu0 %vm780_vm10, %v5676_v39  ;;  %v2960_v39 = vld [vmem:[#allocation9 + $0x9f0] sm:$0xff] }
 0x1b8   : > { %4793 = vmatpush3.msra.mxu1 %v2812_v52  ;;  %4766 = vmatmul.mubr.msk.f32.vlgmr.msra.gmra.mxu0 %vm780_vm10, %v2653_v4  ;;  %v3243_v7 = vld [vmem:[#allocation9 + $0xa70] sm:$0xff]  ;;  %v2926_v52 = vld [vmem:[#allocation9 + $0x8e0] sm:$0xff]  ;;  %v2941_v4 = vld [vmem:[#allocation9 + $0x958] sm:$0xff] }
 0x1b9   : > { %4794 = vmatprep.subr.mxu1 %v2811_v42  ;;  %4321 = vmatprep.subr.mxu0 %v2953_v63  ;;  %v3242_v63 = vld [vmem:[#allocation9 + $0xa68] sm:$0xff] }
 0x1ba   : > { %4795 = vmatpush3.msra.mxu1 %v2811_v42  ;;  %4322 = vmatpush3.msra.mxu0 %v2937_v30  ;;  %v6084_v42 = vcombine.low %v6050_v32, %v6048_v59  ;;  %v2925_v30 = vld [vmem:[#allocation9 + $0x8d8] sm:$0xff] }
 0x1bb   : > { %4796 = vmatprep.mubr.msk.f32.mxu1 %vm690_vm5, %v5570_v9  ;;  %4323 = vmatprep.subr.mxu0 %v2952_v37  ;;  %v6072_v9 = vcombine.high %v6056_v25, %v6056_v25  ;;  %v3257_v37 = vld [vmem:[#allocation9 + $0xae0] sm:$0xff] }
 0x1bc   : > { %4799 = vmatprep.subr.mxu1 %v2961_v62  ;;  %4797 = vmatmul.mubr.msk.f32.vlgmr.msra.gmra.mxu1 %vm690_vm5, %v2826_v58  ;;  %v2940_v58 = vld [vmem:[#allocation9 + $0x950] sm:$0xff] }
 0x1bd   : > { %4324 = vmatpush3.msra.mxu0 %v2936_v6  ;;  %4800 = vmatpush3.msra.mxu1 %v2961_v62  ;;  %v2914_v2 = vrot.slane %v6072_v9, 5  ;;  %v3241_v62 = vld [vmem:[#allocation9 + $0xa60] sm:$0xff]  ;;  %v2924_v6 = vld [vmem:[#allocation9 + $0x8d0] sm:$0xff] }
 0x1be   : > { %4325 = vmatprep.subr.mxu0 %v2951_v38  ;;  %4801 = vmatprep.subr.mxu1 %v2960_v39  ;;  %v3256_v38 = vld [vmem:[#allocation9 + $0xad8] sm:$0xff] }
 0x1bf   : > { %4326 = vmatpush3.msra.mxu0 %v2935_v3  ;;  %4802 = vmatpush3.msra.mxu1 %v2960_v39  ;;  %v2915_v34 = vsel %vm5597_vm8, %v3850_v36, %v2914_v2  ;;  %v2939_v39 = vld [vmem:[#allocation9 + $0x948] sm:$0xff]  ;;  %v3849_v3 = vrot.slane %v6084_v42, 9  ;;  %v3134_v36 = vld [vmem:[#allocation10 + $0x370] sm:$0xff]  ;;  %v3252_v2 = vld [vmem:[#allocation9 + $0xab8] sm:$0xff] }
 0x1c0   : > { %4327 = vmatprep.subr.mxu0 %v2950_v35  ;;  %4803 = vmatprep.subr.mxu1 %v2959_v8  ;;  %v2964_v20 = vcombine.low %v5987_v47, %v2915_v34  ;;  %v3258_v47 = vld [vmem:[#allocation9 + $0xae8] sm:$0xff] }
 0x1c1   : > { %4328 = vmatpush3.msra.mxu0 %v2934_v61  ;;  %4804 = vmatpush3.msra.mxu1 %v2959_v8  ;;  %v3255_v8 = vld [vmem:[#allocation9 + $0xad0] sm:$0xff]  ;;  %v2938_v61 = vld [vmem:[#allocation9 + $0x940] sm:$0xff]  ;;  %v3234_v34 = vld [vmem:[#allocation9 + $0xa28] sm:$0xff] }
 0x1c2   : > { %4329 = vmatprep.subr.mxu0 %v2949_v29  ;;  %4805 = vmatprep.subr.mxu1 %v2958_v1  ;;  %v3239_v29 = vld [vmem:[#allocation9 + $0xa50] sm:$0xff] }
 0x1c3   : > { %4330 = vmatpush3.msra.mxu0 %v2933_v17  ;;  %4806 = vmatpush3.msra.mxu1 %v2958_v1  ;;  %v2922_v1 = vld [vmem:[#allocation9 + $0x8c0] sm:$0xff]  ;;  %v3254_v17 = vld [vmem:[#allocation9 + $0xac8] sm:$0xff] }
 0x1c4   : > { %4331 = vmatprep.subr.mxu0 %v2948_v31  ;;  %4807 = vmatprep.subr.mxu1 %v2957_v11  ;;  %v3238_v31 = vld [vmem:[#allocation9 + $0xa48] sm:$0xff] }
 0x1c5   : > { %4332 = vmatpush3.msra.mxu0 %v2932_v10  ;;  %4808 = vmatpush3.msra.mxu1 %v2957_v11  ;;  %v3135_v10 = vld [vmem:[#allocation10 + $0x378] sm:$0xff] }
 0x1c6   : > { %4333 = vmatprep.subr.mxu0 %v2947_v26  ;;  %4809 = vmatprep.subr.mxu1 %v2956_v55  ;;  %v3253_v26 = vld [vmem:[#allocation9 + $0xac0] sm:$0xff] }
 0x1c7   : > { %4334 = vmatpush3.msra.mxu0 %v2931_v21  ;;  %4810 = vmatpush3.msra.mxu1 %v2956_v55  ;;  %v3237_v55 = vld [vmem:[#allocation9 + $0xa40] sm:$0xff] }
 0x1c8   : > { %4335 = vmatprep.subr.mxu0 %v2946_v23  ;;  %4811 = vmatprep.subr.mxu1 %v2955_v19 }
 0x1c9   : > { %4336 = vmatpush3.msra.mxu0 %v2930_v44  ;;  %4812 = vmatpush3.msra.mxu1 %v2955_v19  ;;  %v3236_v19 = vld [vmem:[#allocation9 + $0xa38] sm:$0xff]  ;;  %v3133_v44 = vld [vmem:[#allocation10 + $0x368] sm:$0xff] }
 0x1ca   : > { %4337 = vmatprep.subr.mxu0 %v2945_v60  ;;  %4813 = vmatprep.subr.mxu1 %v2954_v51  ;;  %v3251_v60 = vld [vmem:[#allocation9 + $0xab0] sm:$0xff] }
 0x1cb   : > { %4338 = vmatpush3.msra.mxu0 %v2929_v53  ;;  %4814 = vmatpush3.msra.mxu1 %v2954_v51  ;;  %v3250_v51 = vld [vmem:[#allocation9 + $0xaa8] sm:$0xff]  ;;  %v3249_v53 = vld [vmem:[#allocation9 + $0xaa0] sm:$0xff] }
 0x1cc   : > { %4339 = vmatprep.subr.mxu0 %v2944_v56  ;;  %4815 = vmatprep.mubr.msk.f32.mxu1 %vm780_vm10, %v5800_v43  ;;  %v6088_v43 = vcombine.high %v6050_v32, %v6048_v59  ;;  %v3240_v59 = vld [vmem:[#allocation9 + $0xa58] sm:$0xff]  ;;  %v2923_v32 = vld [vmem:[#allocation9 + $0x8c8] sm:$0xff]  ;;  %v3233_v56 = vld [vmem:[#allocation9 + $0xa20] sm:$0xff] }
 0x1cd   : > { %4385 = vmatprep.subr.mxu1 %v3260_v22  ;;  %4340 = vmatpush3.msra.mxu0 %v2928_v14  ;;  %v3130_v22 = vld [vmem:[#allocation10 + $0x350] sm:$0xff]  ;;  %v3248_v14 = vld [vmem:[#allocation9 + $0xa98] sm:$0xff] }
 0x1ce   : > { %4816 = vmatmul.mubr.msk.f32.vlgmr.msra.gmra.mxu1 %vm780_vm10, %v2964_v20  ;;  %4341 = vmatprep.subr.mxu0 %v2943_v57  ;;  %v2910_v35 = vrot.slane %v6088_v43, 5  ;;  %v3232_v20 = vld [vmem:[#allocation9 + $0xa18] sm:$0xff]  ;;  %v3129_v57 = vld [vmem:[#allocation10 + $0x348] sm:$0xff] }
 0x1cf   : > { %4386 = vmatpush3.msra.mxu1 %v3244_v33  ;;  %4342 = vmatpush3.msra.mxu0 %v2927_v46  ;;  %v3247_v33 = vld [vmem:[#allocation9 + $0xa90] sm:$0xff] }
 0x1d0   : > { %4387 = vmatprep.subr.mxu1 %v3259_v12  ;;  %4343 = vmatprep.subr.mxu0 %v2942_v27  ;;  %v2911_v11 = vsel %vm5597_vm8, %v3849_v3, %v2910_v35  ;;  %v3231_v46 = vld [vmem:[#allocation9 + $0xa10] sm:$0xff]  ;;  %v3128_v12 = vld [vmem:[#allocation10 + $0x340] sm:$0xff]  ;;  %v3246_v27 = vld [vmem:[#allocation9 + $0xa88] sm:$0xff] }
 0x1d1   : > { %4388 = vmatpush3.msra.mxu1 %v3243_v7  ;;  %4344 = vmatpush3.msra.mxu0 %v2926_v52  ;;  %v2963_v21 = vcombine.high %v5967_v24, %v2911_v11  ;;  %v2962_v23 = vcombine.low %v5967_v24, %v2911_v11  ;;  %v3131_v24 = vld [vmem:[#allocation10 + $0x358] sm:$0xff]  ;;  %v3230_v7 = vld [vmem:[#allocation9 + $0xa08] sm:$0xff]  ;;  %v3439_v35 = vld [vmem:[#allocation10 + $0x3d0] sm:$0xff] }
 0x1d2   : > { %4389 = vmatprep.subr.mxu1 %v3258_v47  ;;  %4345 = vmatprep.subr.mxu0 %v2941_v4  ;;  %v3127_v52 = vld [vmem:[#allocation10 + $0x338] sm:$0xff]  ;;  %v3245_v47 = vld [vmem:[#allocation9 + $0xa80] sm:$0xff]  ;;  %v6100_v4 = vcombine.high %v6060_v13, %v6060_v13  ;;  %v3435_v11 = vld [vmem:[#allocation10 + $0x3b0] sm:$0xff] }
 0x1d3   : > { %4390 = vmatpush3.msra.mxu1 %v3242_v63  ;;  %4346 = vmatpush3.msra.mxu0 %v2925_v30  ;;  %v3229_v63 = vld [vmem:[#allocation9 + $0xa00] sm:$0xff]  ;;  %v3126_v30 = vld [vmem:[#allocation10 + $0x330] sm:$0xff] }
 0x1d4   : > { %4391 = vmatprep.subr.mxu1 %v3257_v37  ;;  %4347 = vmatprep.subr.mxu0 %v2940_v58  ;;  %v3442_v37 = vld [vmem:[#allocation10 + $0x3e8] sm:$0xff] }
 0x1d5   : > { %4392 = vmatpush3.msra.mxu1 %v3241_v62  ;;  %4348 = vmatpush3.msra.mxu0 %v2924_v6  ;;  %v3125_v58 = vld [vmem:[#allocation10 + $0x328] sm:$0xff]  ;;  %v3851_v62 = vrot.slane %v6060_v13, 9  ;;  %v2919_v6 = vrot.slane %v6100_v4, 5 }
 0x1d6   : > { %4393 = vmatprep.subr.mxu1 %v3256_v38  ;;  %4349 = vmatprep.subr.mxu0 %v2939_v39  ;;  %v3441_v38 = vld [vmem:[#allocation10 + $0x3e0] sm:$0xff] }
 0x1d7   : > { %4394 = vmatpush3.msra.mxu1 %v3240_v59  ;;  %4350 = vmatpush3.msra.mxu0 %v2923_v32  ;;  %v3124_v39 = vld [vmem:[#allocation10 + $0x320] sm:$0xff]  ;;  %v3440_v59 = vld [vmem:[#allocation10 + $0x3d8] sm:$0xff]  ;;  %v2920_v3 = vsel %vm5597_vm8, %v3851_v62, %v2919_v6  ;;  %vm3583_vm8 = vmor %vm3582_vm7, %vm3581_vm6 }
 0x1d8   : > { %4395 = vmatprep.subr.mxu1 %v3255_v8  ;;  %4351 = vmatprep.subr.mxu0 %v2938_v61  ;;  %v3123_v32 = vld [vmem:[#allocation10 + $0x318] sm:$0xff]  ;;  %v3136_v8 = vcombine.low %v5991_v16, %v2920_v3  ;;  %v3856_v16 = vrot.slane %v6084_v42, 10 }
 0x1d9   : > { %4396 = vmatpush3.msra.mxu1 %v3239_v29  ;;  %4352 = vmatpush3.msra.mxu0 %v2922_v1  ;;  %v3268_v61 = vld [vmem:[#allocation9 + $0xb38] sm:$0xff]  ;;  %v3267_v29 = vld [vmem:[#allocation9 + $0xb30] sm:$0xff] }
 0x1da   : > { %4397 = vmatprep.subr.mxu1 %v3254_v17  ;;  %3033 = vmatprep.mubr.f32.mxu0 %v5831_v15  ;;  %v3235_v15 = vld [vmem:[#allocation9 + $0xa30] sm:$0xff]  ;;  %v3436_v1 = vld [vmem:[#allocation10 + $0x3b8] sm:$0xff]  ;;  %v3218_v17 = vrot.slane %v6088_v43, 6  ;;  %v3857_v43 = vrot.slane %v6056_v25, 10 }
 0x1db   : > { %4398 = vmatpush3.msra.mxu1 %v3238_v31  ;;  %3034 = vmatmul.mubr.f32.vlgmr.msra.gmra.mxu0 %v5835_v0  ;;  %v3132_v0 = vld [vmem:[#allocation10 + $0x360] sm:$0xff]  ;;  %v3266_v31 = vld [vmem:[#allocation9 + $0xb28] sm:$0xff]  ;;  %v3264_v42 = vld [vmem:[#allocation9 + $0xb18] sm:$0xff] }
 0x1dc   : > { %4818 = vmatprep.subr.mxu0 %v3135_v10  ;;  %4399 = vmatprep.subr.mxu1 %v3253_v26  ;;  %v3219_v26 = vsel %vm5745_vm13, %v3856_v16, %v3218_v17  ;;  %v3431_v25 = vld [vmem:[#allocation10 + $0x390] sm:$0xff] }
 0x1dd   : > { %4819 = vmatpush3.msra.mxu0 %v3135_v10  ;;  %4400 = vmatpush3.msra.mxu1 %v3237_v55  ;;  %v3434_v10 = vld [vmem:[#allocation10 + $0x3a8] sm:$0xff]  ;;  %v3433_v55 = vld [vmem:[#allocation10 + $0x3a0] sm:$0xff] }
 0x1de   : > { %4820 = vmatprep.subr.mxu0 %v3134_v36  ;;  %4401 = vmatprep.subr.mxu1 %v3252_v2  ;;  %v3263_v2 = vld [vmem:[#allocation9 + $0xb10] sm:$0xff] }
 0x1df   : > { %3038 = vmatprep.mubr.f32.mxu0 %v2963_v21  ;;  %4821 = vmatpush3.msra.mxu0 %v3134_v36  ;;  %v3222_v36 = vrot.slane %v6072_v9, 6  ;;  %v3432_v21 = vld [vmem:[#allocation10 + $0x398] sm:$0xff] }
 0x1e0   : > { %4402 = vmatpush3.msra.mxu1 %v3236_v19  ;;  %3039 = vmatmul.mubr.f32.gmra.mxu0 %v2962_v23  ;;  %v3270_v23 = vcombine.high %v6028_v49, %v3219_v26  ;;  %v3269_v19 = vcombine.low %v6028_v49, %v3219_v26 }
 0x1e1   : > { %4822 = vmatprep.subr.mxu0 %v3133_v44  ;;  %4403 = vmatprep.subr.mxu1 %v3251_v60  ;;  %v3858_v60 = vrot.slane %v6060_v13, 10  ;;  %v3223_v9 = vsel %vm5745_vm13, %v3857_v43, %v3222_v36 }
 0x1e2   : > { %4823 = vmatpush3.msra.mxu0 %v3133_v44  ;;  %4404 = vmatpush3.msra.mxu1 %v3235_v15  ;;  %v3262_v44 = vld [vmem:[#allocation9 + $0xb08] sm:$0xff]  ;;  %v3226_v15 = vrot.slane %v6100_v4, 6  ;;  %v3271_v49 = vcombine.low %v6011_v45, %v3223_v9  ;;  %v761_v45 = vpop.f32.mrf.mxu0 }
 0x1e3   : > { %4824 = vmatprep.subr.mxu0 %v3132_v0  ;;  %4405 = vmatprep.subr.mxu1 %v3250_v51  ;;  %v3430_v51 = vld [vmem:[#allocation10 + $0x388] sm:$0xff] }
 0x1e4   : > { %4825 = vmatpush3.msra.mxu0 %v3132_v0  ;;  %4406 = vmatpush3.msra.mxu1 %v3234_v34  ;;  %v3261_v0 = vld [vmem:[#allocation9 + $0xb00] sm:$0xff]  ;;  %v3227_v13 = vsel %vm5745_vm13, %v3858_v60, %v3226_v15  ;;  %vm3616_vm13 = vcmask 654336  }
 0x1e5   : > { %4826 = vmatprep.subr.mxu0 %v3131_v24  ;;  %4407 = vmatprep.subr.mxu1 %v3249_v53  ;;  %v3429_v34 = vld [vmem:[#allocation10 + $0x380] sm:$0xff]  ;;  %v3921_v53 = vpop.f32.mrf.mxu1 }
 0x1e6   : > { %4827 = vmatpush3.msra.mxu0 %v3131_v24  ;;  %4408 = vmatpush3.msra.mxu1 %v3233_v56  ;;  %v3443_v24 = vcombine.low %v6040_v40, %v3227_v13  ;;  %v4498_v56 = vpop.f32.mrf.mxu0 }
 0x1e7   : > { %4828 = vmatprep.subr.mxu0 %v3130_v22  ;;  %4409 = vmatprep.subr.mxu1 %v3248_v14 }
 0x1e8   : > { %4829 = vmatpush3.msra.mxu0 %v3130_v22  ;;  %4410 = vmatpush3.msra.mxu1 %v3232_v20  ;;  %v3922_v22 = vpop.f32.mrf.mxu1  ;;  %v926_v14 = vpop.f32.mrf.mxu0 }
 0x1e9   : > { %4830 = vmatprep.subr.mxu0 %v3129_v57  ;;  %4411 = vmatprep.subr.mxu1 %v3247_v33  ;;  %v3923_v43 = vadd.f32 %v3922_v22, %v3921_v53 }
 0x1ea   : > { %4831 = vmatpush3.msra.mxu0 %v3129_v57  ;;  %4412 = vmatpush3.msra.mxu1 %v3231_v46  ;;  %v4517_v20 = vpop.f32.mrf.mxu0 }
 0x1eb   : > { %4832 = vmatprep.subr.mxu0 %v3128_v12  ;;  %4413 = vmatprep.subr.mxu1 %v3246_v27  ;;  %v852_v15 = vadd.f32 %v3923_v43, %v761_v45 }
 0x1ec   : > { %4833 = vmatpush3.msra.mxu0 %v3128_v12  ;;  %4414 = vmatpush3.msra.mxu1 %v3230_v7  ;;  %v1194_v57 = vpop.f32.mrf.mxu0 }
 0x1ed   : > { %4834 = vmatprep.subr.mxu0 %v3127_v52  ;;  %4415 = vmatprep.subr.mxu1 %v3245_v47 }
 0x1ee   : > { %4835 = vmatpush3.msra.mxu0 %v3127_v52  ;;  %4416 = vmatpush3.msra.mxu1 %v3229_v63  ;;  %v4548_v33 = vpop.f32.mrf.mxu0 }
 0x1ef   : > { %4836 = vmatprep.subr.mxu0 %v3126_v30  ;;  %3340 = vmatprep.mubr.f32.mxu1 %v5877_v54  ;;  %v3122_v54 = vld [vmem:[#allocation10 + $0x310] sm:$0xff] }
 0x1f0   : > { %4868 = vmatprep.subr.mxu1 %v3442_v37  ;;  %4837 = vmatpush3.msra.mxu0 %v3126_v30  ;;  %v1292_v12 = vpop.f32.mrf.mxu0 }
 0x1f1   : > { %3341 = vmatmul.mubr.f32.vlgmr.msra.gmra.mxu1 %v5881_v50  ;;  %4838 = vmatprep.subr.mxu0 %v3125_v58  ;;  %v3438_v50 = vld [vmem:[#allocation10 + $0x3c8] sm:$0xff] }
 0x1f2   : > { %4869 = vmatpush3.msra.mxu1 %v3442_v37  ;;  %4839 = vmatpush3.msra.mxu0 %v3125_v58  ;;  %v4567_v7 = vpop.f32.mrf.mxu0 }
 0x1f3   : > { %4870 = vmatprep.subr.mxu1 %v3441_v38  ;;  %4840 = vmatprep.subr.mxu0 %v3124_v39 }
 0x1f4   : > { %4871 = vmatpush3.msra.mxu1 %v3441_v38  ;;  %4841 = vmatpush3.msra.mxu0 %v3124_v39 }
 0x1f5   : > { %4872 = vmatprep.subr.mxu1 %v3440_v59  ;;  %4842 = vmatprep.subr.mxu0 %v3123_v32 }
 0x1f6   : > { %4873 = vmatpush3.msra.mxu1 %v3440_v59  ;;  %4843 = vmatpush3.msra.mxu0 %v3123_v32 }
 0x1f7   : > { %4874 = vmatprep.subr.mxu1 %v3439_v35  ;;  %4844 = vmatprep.subr.mxu0 %v3122_v54 }
 0x1f8   : > { %4875 = vmatpush3.msra.mxu1 %v3439_v35  ;;  %4845 = vmatpush3.msra.mxu0 %v3122_v54 }
 0x1f9   : > { %4876 = vmatprep.subr.mxu1 %v3438_v50  ;;  %4846 = vmatprep.mubr.msk.f32.mxu0 %vm690_vm5, %v5644_v18  ;;  %v3265_v18 = vld [vmem:[#allocation9 + $0xb20] sm:$0xff] }
 0x1fa   : > { %4877 = vmatpush3.msra.mxu1 %v3438_v50  ;;  %4847 = vmatmul.mubr.msk.f32.vlgmr.msra.gmra.mxu0 %vm690_vm5, %v3136_v8 }
 0x1fb   : > { %4849 = vmatprep.subr.mxu0 %v3268_v61  ;;  %4878 = vmatprep.subr.mxu1 %v3437_v48 }
 0x1fc   : > { %4850 = vmatpush3.msra.mxu0 %v3268_v61  ;;  %4879 = vmatpush3.msra.mxu1 %v3437_v48 }
 0x1fd   : > { %4851 = vmatprep.subr.mxu0 %v3267_v29  ;;  %4880 = vmatprep.subr.mxu1 %v3436_v1 }
 0x1fe   : > { %4852 = vmatpush3.msra.mxu0 %v3267_v29  ;;  %4881 = vmatpush3.msra.mxu1 %v3436_v1 }
 0x1ff   : > { %4853 = vmatprep.subr.mxu0 %v3266_v31  ;;  %4882 = vmatprep.subr.mxu1 %v3435_v11 }
 0x200   : > { %4854 = vmatpush3.msra.mxu0 %v3266_v31  ;;  %4883 = vmatpush3.msra.mxu1 %v3435_v11 }
 0x201   : > { %4855 = vmatprep.subr.mxu0 %v3265_v18  ;;  %4884 = vmatprep.subr.mxu1 %v3434_v10 }
 0x202   : > { %4856 = vmatpush3.msra.mxu0 %v3265_v18  ;;  %4885 = vmatpush3.msra.mxu1 %v3434_v10 }
 0x203   : > { %4857 = vmatprep.subr.mxu0 %v3264_v42  ;;  %4886 = vmatprep.subr.mxu1 %v3433_v55 }
 0x204   : > { %4858 = vmatpush3.msra.mxu0 %v3264_v42  ;;  %4887 = vmatpush3.msra.mxu1 %v3433_v55 }
 0x205   : > { %4859 = vmatprep.subr.mxu0 %v3263_v2  ;;  %4888 = vmatprep.subr.mxu1 %v3432_v21 }
 0x206   : > { %3345 = vmatprep.mubr.f32.mxu1 %v3270_v23  ;;  %4860 = vmatpush3.msra.mxu0 %v3263_v2 }
 0x207   : > { %4889 = vmatpush3.msra.mxu1 %v3432_v21  ;;  %4861 = vmatprep.subr.mxu0 %v3262_v44 }
 0x208   : > { %3346 = vmatmul.mubr.f32.gmra.mxu1 %v3269_v19  ;;  %4890 = vmatprep.subr.mxu1 %v3431_v25 }
 0x209   : > { %4862 = vmatpush3.msra.mxu0 %v3262_v44  ;;  %4891 = vmatpush3.msra.mxu1 %v3431_v25 }
 0x20a   : > { %4863 = vmatprep.subr.mxu0 %v3261_v0  ;;  %4892 = vmatprep.subr.mxu1 %v3430_v51 }
 0x20b   : > { %4864 = vmatpush3.msra.mxu0 %v3261_v0  ;;  %4865 = vmatprep.mubr.msk.f32.mxu0 %vm780_vm10, %v5804_v28  ;;  %v3924_v28 = vpop.f32.mrf.mxu1 }
 0x20c   : > { %4893 = vmatpush3.msra.mxu1 %v3430_v51  ;;  %4866 = vmatmul.mubr.msk.f32.vlgmr.msra.gmra.mxu0 %vm780_vm10, %v3271_v49  ;;  %v927_v49 = vadd.f32 %v926_v14, %v852_v15  ;;  %vm3601_vm10 = vcmask 654340  }
 0x20d   : > { %4894 = vmatprep.subr.mxu1 %v3429_v34  ;;  %4896 = vmatprep.mubr.msk.f32.mxu1 %vm690_vm5, %v5914_v41  ;;  %v3925_v40 = vpop.f32.mrf.mxu1  ;;  %v1550_v41 = vpop.f32.mrf.mxu0 }
 0x20e   : > { %4895 = vmatpush3.msra.mxu1 %v3429_v34  ;;  %v3926_v42 = vadd.f32 %v3925_v40, %v3924_v28 }
 0x20f   : > { %4897 = vmatmul.mubr.msk.f32.vlgmr.msra.gmra.mxu1 %vm690_vm5, %v3443_v24  ;;  %v3969_v46 = vpop.f32.mrf.mxu1  ;;  %v4097_v47 = vpop.f32.mrf.mxu0 }
 0x210   : > { %v857_v19 = vadd.f32 %v4479_v5, %v3926_v42 }
 0x211   : > { %v3970_v27 = vpop.f32.mrf.mxu1  ;;  %v4098_v30 = vpop.f32.mrf.mxu0 }
 0x212   : > { %v3971_v36 = vadd.f32 %v3970_v27, %v3969_v46  ;;  %v932_v0 = vadd.f32 %v4498_v56, %v857_v19 }
 0x213   : > { %v3972_v52 = vpop.f32.mrf.mxu1  ;;  %v4100_v37 = vpop.f32.mrf.mxu0 }
 0x214   : > { %v1195_v25 = vadd.f32 %v3971_v36, %v1194_v57 }
 0x215   : > { %v3973_v4 = vpop.f32.mrf.mxu1  ;;  %v4101_v62 = vpop.f32.mrf.mxu0 }
 0x216   : > { %v3974_v55 = vadd.f32 %v3973_v4, %v3972_v52  ;;  %v4102_v28 = vadd.f32 %v4101_v62, %v4100_v37  ;;  %v1203_v40 = vadd.f32 %v1195_v25, %v927_v49 }
 0x217   : > { %v4033_v63 = vpop.f32.mrf.mxu1  ;;  %v4617_v38 = vpop.f32.mrf.mxu0 }
 0x218   : > { %v1200_v44 = vadd.f32 %v4517_v20, %v3974_v55  ;;  %v1301_v27 = vadd.f32 %v1292_v12, %v1203_v40  ;;  %v4099_v20 = vadd.f32 %v4098_v30, %v4097_v47  ;;  %v1865_v4 = vadd.f32 %v4617_v38, %v4102_v28 }
 0x219   : > { %v4034_v58 = vpop.f32.mrf.mxu1  ;;  %v1859_v32 = vpop.f32.mrf.mxu0 }
 0x21a   : > { %v4035_v51 = vadd.f32 %v4034_v58, %v4033_v63  ;;  %v1204_v24 = vadd.f32 %v1200_v44, %v932_v0  ;;  %v1860_v14 = vadd.f32 %v4099_v20, %v1859_v32 }
 0x21b   : > { %v4036_v6 = vpop.f32.mrf.mxu1  ;;  %v4648_v3 = vpop.f32.mrf.mxu0 }
 0x21c   : > { %v1302_v22 = vadd.f32 %v4548_v33, %v1204_v24  ;;  %v1551_v46 = vadd.f32 %v4035_v51, %v1550_v41 }
 0x21d   : > { %v4037_v39 = vpop.f32.mrf.mxu1  ;;  %v1958_v8 = vpop.f32.mrf.mxu0 }
 0x21e   : > { %v4038_v60 = vadd.f32 %v4037_v39, %v4036_v6  ;;  %v1559_v63 = vadd.f32 %v1551_v46, %v1301_v27 }
 0x21f   : > { %v4598_v59 = vpop.f32.mrf.mxu1 }
 0x221   : > { %v1648_v35 = vpop.f32.mrf.mxu1 }
 0x222   : > { %v1657_v39 = vadd.f32 %v1648_v35, %v1559_v63 }
 0x223   : > { %v4161_v54 = vpop.f32.mrf.mxu1 }
 0x224   : > { %v1868_v33 = vadd.f32 %v1860_v14, %v1657_v39 }
 0x225   : > { %v4667_v50 = vpop.f32.mrf.mxu0  ;;  %v4162_v61 = vpop.f32.mrf.mxu1 }
 0x226   : > { %v4163_v42 = vadd.f32 %v4162_v61, %v4161_v54 }
 0x227   : > { %v4164_v48 = vpop.f32.mrf.mxu1  ;;  %v2180_v29 = vpop.f32.mrf.mxu0 }
 0x228   : > { %v2181_v41 = vadd.f32 %v4163_v42, %v2180_v29 }
 0x229   : > { %v4165_v16 = vpop.f32.mrf.mxu1 }
 0x22a   : > { %v4166_v45 = vadd.f32 %v4165_v16, %v4164_v48 }
 0x22b   : > { %v4698_v17 = vpop.f32.mrf.mxu1 }
 0x22c   : > { %v2186_v37 = vadd.f32 %v4667_v50, %v4166_v45  ;;  %v3863_v45 = vld [vmem:[#allocation12] ss:$0 sm:$0xff] }
 0x22d   : > { %v6134_v11 = vpop.f32.mrf.mxu1 }
 0x22e   : > { %6257 = vst [vmem:[#allocation19_spill] sm:$0xff] %v6134_v11  ;;  %v1556_v11 = vadd.f32 %v4567_v7, %v4038_v60 }
 0x230   : > { %v1560_v5 = vadd.f32 %v1556_v11, %v1302_v22  ;;  %v1967_v11 = vadd.f32 %v1958_v8, %v1868_v33 }
 0x232   : > { %v1658_v56 = vadd.f32 %v4598_v59, %v1560_v5  ;;  %v2189_v16 = vadd.f32 %v2181_v41, %v1967_v11 }
 0x234   : > { %v1869_v7 = vadd.f32 %v1865_v4, %v1658_v56 }
 0x235   : > { %v6258_v61 = vld [vmem:[#allocation19_spill] sm:$0xff] }
 0x236   : > { %v1968_v55 = vadd.f32 %v4648_v3, %v1869_v7  ;;  %v2287_v50 = vadd.f32 %v6258_v61, %v2189_v16 }
 0x238   : > { %v2190_v47 = vadd.f32 %v2186_v37, %v1968_v55 }
 0x23a   : > { %v4717_v10 = vpop.f32.mrf.mxu1  ;;  %v2288_v32 = vadd.f32 %v4698_v17, %v2190_v47 }
 0x23c   : > { %v2497_v2 = vpop.f32.mrf.mxu1 }
 0x247   : > { %v4225_v1 = vpop.f32.mrf.mxu0 }
 0x249   : > { %v4226_v31 = vpop.f32.mrf.mxu0 }
 0x24a   : > { %v4227_v30 = vadd.f32 %v4226_v31, %v4225_v1 }
 0x24c   : > { %v4228_v18 = vpop.f32.mrf.mxu0  ;;  %v2498_v19 = vadd.f32 %v4227_v30, %v2497_v2 }
 0x24e   : > { %v4229_v26 = vpop.f32.mrf.mxu0 }
 0x24f   : > { %v4230_v12 = vadd.f32 %v4229_v26, %v4228_v18  ;;  %v2506_v26 = vadd.f32 %v2498_v19, %v2287_v50 }
 0x251   : > { %v2503_v59 = vadd.f32 %v4717_v10, %v4230_v12 }
 0x253   : > { %v2507_v3 = vadd.f32 %v2503_v59, %v2288_v32 }
 0x25d   : > { %v4289_v23 = vpop.f32.mrf.mxu1 }
 0x25f   : > { %v4290_v13 = vpop.f32.mrf.mxu1 }
 0x260   : > { %v4291_v44 = vadd.f32 %v4290_v13, %v4289_v23 }
 0x266   : > { %v4748_v21 = vpop.f32.mrf.mxu0 }
 0x267   : > { %v2605_v18 = vadd.f32 %v4748_v21, %v2507_v3 }
 0x268   : > { %v2595_v9 = vpop.f32.mrf.mxu0 }
 0x269   : > { %v2604_v1 = vadd.f32 %v2595_v9, %v2506_v26 }
 0x274   : > { %v4292_v53 = vpop.f32.mrf.mxu1 }
 0x276   : > { %v4293_v57 = vpop.f32.mrf.mxu1 }
 0x277   : > { %v4294_v36 = vadd.f32 %v4293_v57, %v4292_v53 }
 0x278   : > { %v4767_v34 = vpop.f32.mrf.mxu0 }
 0x279   : > { %v2805_v60 = vadd.f32 %v4767_v34, %v4294_v36 }
 0x27a   : > { %v2799_v52 = vpop.f32.mrf.mxu0 }
 0x27b   : > { %v2800_v8 = vadd.f32 %v4291_v44, %v2799_v52  ;;  %v2809_v31 = vadd.f32 %v2805_v60, %v2605_v18 }
 0x27c   : > { %v4798_v58 = vpop.f32.mrf.mxu1 }
 0x27d   : > { %v2808_v51 = vadd.f32 %v2800_v8, %v2604_v1  ;;  %v2905_v49 = vadd.f32 %v4798_v58, %v2809_v31 }
 0x27e   : > { %v2895_v43 = vpop.f32.mrf.mxu1 }
 0x27f   : > { %v2904_v23 = vadd.f32 %v2895_v43, %v2808_v51 }
 0x28e   : > { %v4817_v38 = vpop.f32.mrf.mxu1 }
 0x290   : > { %v3110_v35 = vpop.f32.mrf.mxu1 }
 0x29b   : > { %v4353_v6 = vpop.f32.mrf.mxu0 }
 0x29d   : > { %v4354_v62 = vpop.f32.mrf.mxu0 }
 0x29e   : > { %v4355_v25 = vadd.f32 %v4354_v62, %v4353_v6 }
 0x2a0   : > { %v4356_v48 = vpop.f32.mrf.mxu0  ;;  %v3111_v24 = vadd.f32 %v4355_v25, %v3110_v35 }
 0x2a2   : > { %v4357_v54 = vpop.f32.mrf.mxu0  ;;  %v3119_v46 = vadd.f32 %v3111_v24, %v2904_v23 }
 0x2a3   : > { %v4358_v15 = vadd.f32 %v4357_v54, %v4356_v48 }
 0x2a5   : > { %v3116_v17 = vadd.f32 %v4817_v38, %v4358_v15 }
 0x2a7   : > { %v3120_v13 = vadd.f32 %v3116_v17, %v2905_v49 }
 0x2b1   : > { %v4417_v29 = vpop.f32.mrf.mxu1 }
 0x2b3   : > { %v4418_v0 = vpop.f32.mrf.mxu1 }
 0x2b4   : > { %v4419_v21 = vadd.f32 %v4418_v0, %v4417_v29 }
 0x2ba   : > { %v4848_v10 = vpop.f32.mrf.mxu0 }
 0x2bb   : > { %v3215_v22 = vadd.f32 %v4848_v10, %v3120_v13 }
 0x2bc   : > { %v3205_v28 = vpop.f32.mrf.mxu0 }
 0x2bd   : > { %v3214_v52 = vadd.f32 %v3205_v28, %v3119_v46 }
 0x2c8   : > { %v4420_v2 = vpop.f32.mrf.mxu1 }
 0x2ca   : > { %v4421_v40 = vpop.f32.mrf.mxu1 }
 0x2cb   : > { %v4422_v34 = vadd.f32 %v4421_v40, %v4420_v2 }
 0x2cc   : > { %v4867_v53 = vpop.f32.mrf.mxu0 }
 0x2cd   : > { %v3423_v27 = vadd.f32 %v4867_v53, %v4422_v34 }
 0x2ce   : > { %v3417_v9 = vpop.f32.mrf.mxu0 }
 0x2cf   : > { %v3418_v5 = vadd.f32 %v4419_v21, %v3417_v9  ;;  %v3427_v20 = vadd.f32 %v3423_v27, %v3215_v22  ;;  %v4898_v4 = vpop.f32.mrf.mxu1 }
 0x2d1   : > { %v3522_v57 = vadd.f32 %v4898_v4, %v3427_v20  ;;  %v3426_v6 = vadd.f32 %v3418_v5, %v3214_v52  ;;  %v3512_v56 = vpop.f32.mrf.mxu1 }
 0x2d3   : > { %v3531_v63 = vadd.f32 %v3863_v45, %v3522_v57  ;;  %v3521_v14 = vadd.f32 %v3512_v56, %v3426_v6 }
 0x2d5   : > { %v3865_v58 = vmul.f32 -1.442695, %v3531_v63  ;;  %v3530_v39 = vadd.f32 %v3863_v45, %v3521_v14 }
 0x2d7   : > { %5025 = vpow2.f32 %v3865_v58  ;;  %v3864_v42 = vmul.f32 -1.442695, %v3530_v39 }
 0x2d9   : > { %5027 = vpow2.f32 %v3864_v42 }
 0x2e4   : > { %v5026_v7 = vpop.eup %5025 }
 0x2e5   : > { %v3539_v37 = vadd.f32 1.0, %v5026_v7 }
 0x2e6   : > { %v5028_v62 = vpop.eup %5027 }
 0x2e7   : > { %5029 = vrcp.f32 %v3539_v37  ;;  %v3538_v55 = vadd.f32 1.0, %v5028_v62 }
 0x2e9   : > { %5031 = vrcp.f32 %v3538_v55 }
 0x2f4   : > { %v5030_v33 = vpop.eup %5029 }
 0x2f5   : > { %v3545_v41 = vmul.f32 %v5030_v33, %v3531_v63 }
 0x2f6   : > { %v5032_v12 = vpop.eup %5031 }
 0x2f7   : > { %v3544_v43 = vmul.f32 %v5032_v12, %v3530_v39  ;;  %v3549_v11 = vcombine.high %v3545_v41, %v3545_v41  ;;  %v3555_v30 = vrot.slane %v3545_v41, 6  ;;  %v3570_v16 = vrot.slane %v3545_v41, 7 }
 0x2f8   : > { %v3608_v36 = vrot.slane %v3545_v41, 1 }
 0x2f9   : > { %v3548_v47 = vcombine.high %v3544_v43, %v3544_v43  ;;  %v3567_v38 = vrot.slane %v3544_v43, 1  ;;  %v3585_v48 = vrot.slane %v3544_v43, 2  ;;  %v3604_v59 = vrot.slane %v3544_v43, 3 }
 0x2fa   : > { %v3560_v61 = vrot.slane %v3549_v11, 5  ;;  %v3573_v44 = vrot.slane %v3549_v11, 6  ;;  %v3591_v3 = vrot.slane %v3549_v11, 7 }
 0x2fb   : > { %v3568_v32 = vsel %vm3551_vm14, %v3548_v47, %v3567_v38  ;;  %v3550_v19 = vrot.slane %v3548_v47, 7  ;;  %v3605_v35 = vrot.slane %v3548_v47, 2  ;;  %v3586_v54 = vrot.slane %v3548_v47, 1 }
 0x2fc   : > { %v3569_v50 = vsel %vm3553_vm15, %v3548_v47, %v3568_v32 }
 0x2fd   : > { %v3571_v60 = vsel %vm3556_vm0, %v3570_v16, %v3569_v50  ;;  %v3552_v29 = vsel %vm3551_vm14, %v3550_v19, %v3544_v43  ;;  %v3606_v18 = vsel %vm3551_vm14, %v3605_v35, %v3604_v59  ;;  %v3587_v26 = vsel %vm3551_vm14, %v3586_v54, %v3585_v48  ;;  %vm3602_vm14 = vmor %vm3601_vm10, %vm3600_vm9 }
 0x2fe   : > { %v3572_v8 = vsel %vm3558_vm1, %v3570_v16, %v3571_v60  ;;  %v3554_v15 = vsel %vm3553_vm15, %v3550_v19, %v3552_v29  ;;  %v3607_v1 = vsel %vm3553_vm15, %v3605_v35, %v3606_v18  ;;  %v3588_v31 = vsel %vm3553_vm15, %v3586_v54, %v3587_v26 }
 0x2ff   : > { %v3574_v25 = vsel %vm3561_vm2, %v3573_v44, %v3572_v8  ;;  %v3557_v0 = vsel %vm3556_vm0, %v3555_v30, %v3554_v15  ;;  %v3609_v10 = vsel %vm3556_vm0, %v3608_v36, %v3607_v1  ;;  %v3589_v51 = vsel %vm3556_vm0, %v3545_v41, %v3588_v31 }
 0x300   : > { %v3575_v17 = vsel %vm3563_vm3, %v3573_v44, %v3574_v25  ;;  %v3559_v2 = vsel %vm3558_vm1, %v3555_v30, %v3557_v0  ;;  %v3610_v49 = vsel %vm3558_vm1, %v3608_v36, %v3609_v10  ;;  %v3590_v24 = vsel %vm3558_vm1, %v3545_v41, %v3589_v51 }
 0x301   : > { %3576 = vrot.lane.b32.xlu0 %v3575_v17, %s5262_s24  ;;  %v3562_v28 = vsel %vm3561_vm2, %v3560_v61, %v3559_v2  ;;  %v3611_v40 = vsel %vm3561_vm2, %v3549_v11, %v3610_v49  ;;  %v3592_v23 = vsel %vm3561_vm2, %v3591_v3, %v3590_v24 }
 0x302   : > { %v3564_v13 = vsel %vm3563_vm3, %v3560_v61, %v3562_v28  ;;  %v3612_v34 = vsel %vm3563_vm3, %v3549_v11, %v3611_v40  ;;  %v3593_v53 = vsel %vm3563_vm3, %v3591_v3, %v3592_v23 }
 0x303   : > { %3566 = vst.msk [vmem:[%s6162_s13] sm:$0xf] %vm585_vm4, %v3564_v13  ;;  %3613 = vrot.lane.b32.xlu1 %v3612_v34, %s5263_s17  ;;  %vm3619_vm4 = vcmask 1044096  }
 0x304   : > { %vm3621_vm15 = vmor %vm3620_vm11, %vm3619_vm4 }
 0x305   : > { %3594 = vrot.lane.b32.xlu0 %v3593_v53, %s5264_s23 }
 0x373   : > { %v3577_v21 = vpop.permute.xlu0 %3576 }
 0x374   : > { %v3578_v22 = vrot.slane %v3577_v21, 4 }
 0x375   : > { %v3614_v46 = vpop.permute.xlu1 %3613 }
 0x376   : > { %v3579_v27 = vsel %vm690_vm5, %v3578_v22, %v3577_v21  ;;  %v3615_v9 = vrot.slane %v3614_v46, 4 }
 0x377   : > { %3584 = vst.msk [vmem:[%s6162_s13] sm:$0xff] %vm3583_vm8, %v3579_v27  ;;  %v3595_v52 = vpop.permute.xlu0 %3594 }
 0x378   : > { %v3596_v5 = vrot.slane %v3595_v52, 4  ;;  %v3617_v4 = vsel %vm3616_vm13, %v3615_v9, %v3614_v46 }
 0x37a   : > { %v3598_v20 = vsel %vm3597_vm12, %v3596_v5, %v3595_v52 }
 0x37b   : > { %3603 = vst.msk [vmem:[%s6162_s13 + $0x4] sm:$0xff] %vm3602_vm14, %v3598_v20 }
 0x37c   : > { %3622 = vst.msk [vmem:[%s6162_s13 + $0x8] sm:$0xff] %vm3621_vm15, %v3617_v4 }
 0x37d   : > { %5184 = shalt.err (!%p5181_p1)
}
 0x37e   : > { %s5185_s14 = scalar_lea.hbm %s6174_s12, 256  ;;  %s5189_s2 = scalar_lea.hbm %s6224_s5, 512 }
 0x37f   : > { %p5186_p0 = scmp.ne.s32.totalorder %s6174_s12, %s5185_s14  ;;  %p5190_p11 = scmp.lt.s32.totalorder %s6174_s12, %s6224_s5 }
 0x380   : > { %p5191_p6 = scmp.lt.s32.totalorder %s5189_s2, %s5185_s14 }
 0x381   : > { %p5187_p13 = pnand %p5186_p0, %p6259_p10 }
 0x382   : > { %p5192_p5 = por %p5191_p6, %p5190_p11 }
 0x383   : > { %p5188_p8 = pneg %p5187_p13 }
 0x385   : > { %p5193_p3 = pnand %p5192_p5, %p5188_p8 }
 0x387   : > { %5196 = shalt.err (!%p5193_p3)
}
 0x388   : > { %4918 = dma.vmem_to_hbm [thread:$0]  (%p6259_p10), %s6176_s6, 256, %s6174_s12, %s3624_s22  }
 0x389 PF: > { %s3650_s24 = sand.u32 1, %s5235_s18   ;;  %p6260_p7 = scmp.ne.s32.totalorder %s6232_s25, 0 }
 0x38a   : > { %p6261_p9 = scmp.ge.s32.totalorder %s5247_s21, 2  ;;  %s3651_s13 = scalar_lea.sflag [#allocation6], %s3650_s24 }
 0x38c   : > { %p4938_p2 = pnand %p6261_p9, %p6260_p7 }
 0x38e   : > { %p4939_p12 = pneg %p4938_p2 }
 0x390   : > { %5230 = dma.done.wait (%p4939_p12), %s3651_s13, 256  }
 0x391   : > { %5232 = vsyncadd (%p4939_p12), %s3651_s13, 4294967040  ;;  %p22_p4 = scmp.ge.s32.totalorder %s5376_s30, 4   ;;  %s6262_s18 = smov %s5239_s19 }
 0x392   : > { %s6263_s19 = smov %s5243_s20  ;;  %s6264_s20 = smov %s5386_s7 }
 0x393   : > { %s6265_s21 = smov %s5376_s30  ;;  %24 = sbr.rel (!%p22_p4) target bundleno = 12 (0xc), region = 141 }
 0x398   :  { %3656 = vsyncpa [#allocation5], 1 }
 0x399   :  { %3658 = vsyncpa [#allocation5 + $0x1], 1 }
 0x39a   :  { %3659 = vsyncpa [#allocation8], 1 }
 0x39b   :  { %3661 = vsyncpa [#allocation8 + $0x1], 1 }
 0x39c   :  { %3662 = vsyncpa [#allocation11], 1 }
 0x39d   :  { %3663 = vsyncpa [#allocation6], 1 }
 0x39e   :  { %3665 = vsyncpa [#allocation6 + $0x1], 1 }

</bundles_post_ra>
